<compile_context>
chip_gen: v6e
topology: v6e:2x2x1
jax: 0.10.0
libtpu: 0.0.40
codegen_flags: <defaults>
</compile_context>

<pallas_src>
import functools

import jax
import jax.numpy as jnp
from jax import lax
from jax.experimental import pallas as pl
from jax.experimental.pallas import tpu as pltpu

EPS = 1e-5  # nn.BatchNorm1d default eps


# ---------------------------------------------------------------------------
# Kernel 1: streamed BN statistics  ->  folded (scale, shift) per BatchNorm
# ---------------------------------------------------------------------------
def bn_stats_kernel(x_ref, w1_ref, w2_ref, g1_ref, be1_ref, g2_ref, be2_ref,
                    a1_ref, c1_ref, a2_ref, c2_ref,          # outputs (H, 1)
                    s1_ref, q1_ref, s2_ref, q2_ref,          # scratch (H, 128)
                    *, seq_len, tile_l, inv_count, needs_mask,
                    compute_dtype, precision, x_resident):
    p = pl.program_id(0)
    n = pl.program_id(1)
    l = pl.program_id(2)
    first = jnp.logical_and(n == 0, l == 0)
    last = jnp.logical_and(n == pl.num_programs(1) - 1,
                           l == pl.num_programs(2) - 1)
    n_chunks = tile_l // 128  # tile_l is always a multiple of 128

    def load_x():
        if x_resident:
            start = pl.multiple_of(l * tile_l, 128)
            return x_ref[n, :, pl.ds(start, tile_l)]      # (Cin, tile_l)
        return x_ref[0]                                    # (Cin, tile_l)

    def accumulate(s_ref, q_ref, h, mask):
        # Lane-partial accumulation: pure VPU adds into (H, 128) accumulators.
        hm = jnp.where(mask, h, 0.0) if mask is not None else h
        ps = hm[:, 0:128]
        pq = hm[:, 0:128] * hm[:, 0:128]
        for c in range(1, n_chunks):
            blk = hm[:, c * 128:(c + 1) * 128]
            ps = ps + blk
            pq = pq + blk * blk
        s_ref[...] += ps
        q_ref[...] += pq

    def fold(s_ref, q_ref, g_ref, be_ref, a_out, c_out):
        # Single cross-lane reduction per BN, then per-channel scale/shift.
        ssum = jnp.sum(s_ref[...], axis=1, keepdims=True)
        qsum = jnp.sum(q_ref[...], axis=1, keepdims=True)
        mu = ssum * inv_count
        # TODO(synk): E[h^2]-mu^2 can cancel catastrophically for huge-mean
        # channels; shifted sums would be more robust.
        var = jnp.maximum(qsum * inv_count - mu * mu, 0.0)
        scale = g_ref[...] * lax.rsqrt(var + EPS)          # EUP
        a_out[...] = scale
        c_out[...] = be_ref[...] - mu * scale

    def layer1():
        # No conv bias: it is absorbed by the following training-mode BN.
        return jnp.dot(w1_ref[...], load_x(),
                       preferred_element_type=jnp.float32, precision=precision)

    @pl.when(jnp.logical_and(p == 0, first))
    def _init():
        s1_ref[...] = jnp.zeros_like(s1_ref)
        q1_ref[...] = jnp.zeros_like(q1_ref)
        s2_ref[...] = jnp.zeros_like(s2_ref)
        q2_ref[...] = jnp.zeros_like(q2_ref)

    @pl.when(jnp.logical_and(p == 1, first))
    def _fold_bn1():
        fold(s1_ref, q1_ref, g1_ref, be1_ref, a1_ref, c1_ref)

    @pl.when(p == 0)
    def _phase0():
        # Padded columns of x are exactly 0 and there is no bias -> h1 is 0
        # there, so no mask is needed for the BN1 statistics.
        accumulate(s1_ref, q1_ref, layer1(), None)

    @pl.when(p == 1)
    def _phase1():
        h1n = jnp.maximum(layer1() * a1_ref[...] + c1_ref[...], 0.0)
        h2 = jnp.dot(w2_ref[...], h1n.astype(compute_dtype),
                     preferred_element_type=jnp.float32, precision=precision)
        if needs_mask:
            lane = lax.broadcasted_iota(jnp.int32, (1, tile_l), 1)
            mask = (l * tile_l + lane) < seq_len
        else:
            mask = None
        accumulate(s2_ref, q2_ref, h2, mask)

    @pl.when(jnp.logical_and(p == 1, last))
    def _fold_bn2():
        fold(s2_ref, q2_ref, g2_ref, be2_ref, a2_ref, c2_ref)


# ---------------------------------------------------------------------------
# Kernel 2: apply  BN1+ReLU -> W2 -> BN2+ReLU -> W3 + b3   (fully parallel)
# ---------------------------------------------------------------------------
def mlp_apply_kernel(x_ref, w1_ref, w2_ref, w3_ref, b3_ref,
                     a1_ref, c1_ref, a2_ref, c2_ref, o_ref,
                     *, compute_dtype, precision):
    h1 = jnp.dot(w1_ref[...], x_ref[0],
                 preferred_element_type=jnp.float32, precision=precision)
    h1 = jnp.maximum(h1 * a1_ref[...] + c1_ref[...], 0.0)
    h2 = jnp.dot(w2_ref[...], h1.astype(compute_dtype),
                 preferred_element_type=jnp.float32, precision=precision)
    h2 = jnp.maximum(h2 * a2_ref[...] + c2_ref[...], 0.0)
    out = jnp.dot(w3_ref[...], h2.astype(compute_dtype),
                  preferred_element_type=jnp.float32, precision=precision)
    o_ref[0] = (out + b3_ref[...]).astype(o_ref.dtype)


# ---------------------------------------------------------------------------
# Wrapper
# ---------------------------------------------------------------------------
def _round_up(v, m):
    return ((v + m - 1) // m) * m


def _vmem_budget_bytes():
    cap = 128 << 20
    try:
        info = pltpu.get_tpu_info()
        cap = int(getattr(info, "vmem_capacity_bytes", cap))
    except Exception:
        pass
    if cap >= (96 << 20):        # 128 MiB parts (v5e / v6e)
        return 64 << 20
    return max(16 << 20, cap // 2)   # 64 MiB parts (v7x) -> ~32 MiB


def _pick_tile_l(L, Cin, H, Cout, budget, x_bytes):
    Lp_full = _round_up(L, 128)       # always lane-dense
    if Lp_full <= 512:
        return Lp_full
    candidates = (2048, 1024, 512, 256, 128) if budget >= (48 << 20) \
        else (1024, 512, 256, 128)
    for t in candidates:
        if t > Lp_full:
            continue
        # double-buffered x / out blocks + a few f32 activation slabs (rough)
        need = 2 * t * (x_bytes * Cin + 4 * Cout) + 4 * t * 3 * H
        if need <= budget // 2:
            return t
    return 128


def _resident_spec(arr, grid_ndim):
    zeros = (0,) * arr.ndim
    if grid_ndim == 3:
        idx = lambda p, n, l: zeros
    else:
        idx = lambda n, l: zeros
    return pl.BlockSpec(arr.shape, idx)


def conv_forward(x_ncl, params, *, compute_dtype=jnp.bfloat16, tile_l=None,
                 x_resident=None):
    """x_ncl: (N, Cin, L) float32 -> (N, Cout, L) float32."""
    (w1, _b1, g1, be1, w2, _b2, g2, be2, w3, b3) = params
    # _b1 / _b2 are mathematically absorbed by the following training-mode BN.
    N, Cin, L = x_ncl.shape
    H = w1.shape[0]
    Cout = w3.shape[0]

    budget = _vmem_budget_bytes()
    x_bytes = jnp.dtype(compute_dtype).itemsize
    if tile_l is None:
        tile_l = _pick_tile_l(L, Cin, H, Cout, budget, x_bytes)
    n_l = pl.cdiv(L, tile_l)
    Lp = n_l * tile_l
    needs_mask = Lp != L

    x_in = x_ncl.astype(compute_dtype)          # bf16 stream on the fast path
    if needs_mask:
        x_in = jnp.pad(x_in, ((0, 0), (0, 0), (0, Lp - L)))
    if x_resident is None:
        x_resident = (N * Cin * Lp * x_bytes) <= budget // 3

    f32_path = jnp.dtype(compute_dtype) == jnp.dtype(jnp.float32)
    precision = lax.Precision.HIGHEST if f32_path else None

    w1c = w1.astype(compute_dtype)
    w2c = w2.astype(compute_dtype)
    w3c = w3.astype(compute_dtype)

    # ---------------- call 1: BN statistics -> folded (scale, shift) --------
    stats_fn = functools.partial(
        bn_stats_kernel, seq_len=L, tile_l=tile_l,
        inv_count=1.0 / float(N * L), needs_mask=needs_mask,
        compute_dtype=compute_dtype, precision=precision,
        x_resident=x_resident)

    if x_resident:
        x_spec1 = pl.BlockSpec((N, Cin, Lp), lambda p, n, l: (0, 0, 0))
    else:
        x_spec1 = pl.BlockSpec((1, Cin, tile_l), lambda p, n, l: (n, 0, l))

    hcol = jax.ShapeDtypeStruct((H, 1), jnp.float32)
    scale_spec = pl.BlockSpec((H, 1), lambda p, n, l: (0, 0))

    a1, c1, a2, c2 = pl.pallas_call(
        stats_fn,
        out_shape=(hcol, hcol, hcol, hcol),
        grid=(2, N, n_l),
        in_specs=[x_spec1,
                  _resident_spec(w1c, 3), _resident_spec(w2c, 3),
                  _resident_spec(g1, 3), _resident_spec(be1, 3),
                  _resident_spec(g2, 3), _resident_spec(be2, 3)],
        out_specs=(scale_spec, scale_spec, scale_spec, scale_spec),
        scratch_shapes=[pltpu.VMEM((H, 128), jnp.float32)] * 4,
        compiler_params=pltpu.CompilerParams(
            # Global reduction across phases / N / L tiles -> sequential.
            dimension_semantics=("arbitrary", "arbitrary", "arbitrary"),
            vmem_limit_bytes=budget),
    )(x_in, w1c, w2c, g1, be1, g2, be2)

    # ---------------- call 2: fully parallel apply pass ---------------------
    apply_fn = functools.partial(
        mlp_apply_kernel, compute_dtype=compute_dtype, precision=precision)

    out = pl.pallas_call(
        apply_fn,
        out_shape=jax.ShapeDtypeStruct((N, Cout, Lp), x_ncl.dtype),
        grid=(N, n_l),
        in_specs=[pl.BlockSpec((1, Cin, tile_l), lambda n, l: (n, 0, l)),
                  _resident_spec(w1c, 2), _resident_spec(w2c, 2),
                  _resident_spec(w3c, 2), _resident_spec(b3, 2),
                  _resident_spec(a1, 2), _resident_spec(c1, 2),
                  _resident_spec(a2, 2), _resident_spec(c2, 2)],
        out_specs=pl.BlockSpec((1, Cout, tile_l), lambda n, l: (n, 0, l)),
        compiler_params=pltpu.CompilerParams(
            dimension_semantics=("parallel", "parallel"),  # megacore on v7x
            vmem_limit_bytes=budget),
    )(x_in, w1c, w2c, w3c, b3, a1, c1, a2, c2)

    return out[:, :, :L] if needs_mask else out


# ---------------------------------------------------------------------------
# Pure-JAX reference (PyTorch training-mode forward semantics) and params
# ---------------------------------------------------------------------------
def reference_forward(x_ncl, params):
    (w1, b1, g1, be1, w2, b2, g2, be2, w3, b3) = params

    def conv1x1(x, w, b):                     # x (N,C,L), w (O,C), b (O,1)
        return jnp.einsum('oc,ncl->nol', w, x) + b[None]

    def bn_relu(h, g, be):                    # stats over batch*length
        mu = jnp.mean(h, axis=(0, 2), keepdims=True)
        var = jnp.mean((h - mu) ** 2, axis=(0, 2), keepdims=True)
        return jnp.maximum((h - mu) / jnp.sqrt(var + EPS) * g[None] + be[None],
                           0.0)

    h = bn_relu(conv1x1(x_ncl, w1, b1), g1, be1)
    h = bn_relu(conv1x1(h, w2, b2), g2, be2)
    return conv1x1(h, w3, b3)


def init_params(key, in_size, hidden_size, out_size):
    """Conv1d(k=1) weights (out, in, 1) stored squeezed as (out, in); biases /
    BN params as (channels, 1) columns (matches the PyTorch module)."""
    ks = jax.random.split(key, 8)
    s1 = float(in_size) ** -0.5
    s2 = float(hidden_size) ** -0.5
    w1 = jax.random.uniform(ks[0], (hidden_size, in_size), jnp.float32, -s1, s1)
    b1 = jax.random.uniform(ks[1], (hidden_size, 1), jnp.float32, -s1, s1)
    w2 = jax.random.uniform(ks[2], (hidden_size, hidden_size), jnp.float32, -s2, s2)
    b2 = jax.random.uniform(ks[3], (hidden_size, 1), jnp.float32, -s2, s2)
    w3 = jax.random.uniform(ks[4], (out_size, hidden_size), jnp.float32, -s2, s2)
    b3 = jax.random.uniform(ks[5], (out_size, 1), jnp.float32, -s2, s2)
    g1 = 1.0 + 0.1 * jax.random.normal(ks[6], (hidden_size, 1), jnp.float32)
    be1 = 0.1 * jax.random.normal(ks[7], (hidden_size, 1), jnp.float32)
    g2 = jnp.full((hidden_size, 1), 0.9, jnp.float32)
    be2 = jnp.full((hidden_size, 1), 0.05, jnp.float32)
    return (w1, b1, g1, be1, w2, b2, g2, be2, w3, b3)


if __name__ == "__main__":
    # Small shapes consistent with the module:
    # CONV(in_size=32, out_size=16, hidden_size=64, used='proj'); x is (2, 32, 16).
    key = jax.random.PRNGKey(0)
    k_x, k_p = jax.random.split(key)
    B, CIN, HID, COUT, LEN = 2, 32, 64, 16, 16

    x = jax.random.normal(k_x, (B, CIN, LEN), jnp.float32)
    params = init_params(k_p, CIN, HID, COUT)
    ref = reference_forward(x, params)

    # 1) f32-operand path (HIGHEST precision matmuls): tight check, both the
    #    resident-x and streamed-x variants of the stats kernel.
    for res in (True, False):
        f32_fwd = jax.jit(functools.partial(
            conv_forward, compute_dtype=jnp.float32, x_resident=res))
        out_f32 = jax.block_until_ready(f32_fwd(x, params))
        assert out_f32.shape == (B, COUT, LEN), out_f32.shape
        assert jnp.allclose(out_f32, ref, atol=1e-4, rtol=1e-4), \
            f"f32 kernel mismatch vs JAX reference (x_resident={res})"

    # 2) Default bf16-MXU path: looser tolerance for bf16 operand rounding
    #    (accumulation and BN math stay in f32).
    out_bf16 = jax.block_until_ready(jax.jit(conv_forward)(x, params))
    assert out_bf16.shape == (B, COUT, LEN), out_bf16.shape
    max_err = float(jnp.max(jnp.abs(out_bf16 - ref)))
    assert max_err < 6e-2, f"bf16 kernel deviates too much: {max_err}"

    print("KERNEL_OK")
</pallas_src>

<mosaic_0001>
module attributes {stable_mosaic.version = 11 : i64} {
  func.func @bn_stats_kernel(%arg0: i32, %arg1: i32, %arg2: i32, %arg3: memref<2x32x128xf32, #tpu.memory_space<vmem>>, %arg4: memref<64x32xf32, #tpu.memory_space<vmem>>, %arg5: memref<64x64xf32, #tpu.memory_space<vmem>>, %arg6: memref<64x1xf32, #tpu.memory_space<vmem>>, %arg7: memref<64x1xf32, #tpu.memory_space<vmem>>, %arg8: memref<64x1xf32, #tpu.memory_space<vmem>>, %arg9: memref<64x1xf32, #tpu.memory_space<vmem>>, %arg10: memref<64x1xf32, #tpu.memory_space<vmem>>, %arg11: memref<64x1xf32, #tpu.memory_space<vmem>>, %arg12: memref<64x1xf32, #tpu.memory_space<vmem>>, %arg13: memref<64x1xf32, #tpu.memory_space<vmem>>, %arg14: memref<64x128xf32, #tpu.memory_space<vmem>>, %arg15: memref<64x128xf32, #tpu.memory_space<vmem>>, %arg16: memref<64x128xf32, #tpu.memory_space<vmem>>, %arg17: memref<64x128xf32, #tpu.memory_space<vmem>>) attributes {dimension_semantics = [#tpu.dimension_semantics<arbitrary>, #tpu.dimension_semantics<arbitrary>, #tpu.dimension_semantics<arbitrary>], iteration_bounds = array<i64: 2, 2, 1>, scalar_prefetch = 0 : i64, scratch_operands = 4 : i64, tpu.core_type = #tpu.core_type<tc>, window_params = [{pipeline_mode = #tpu.pipeline_mode<synchronous>, transform_indices = @transform_0, window_bounds = array<i64: 2, 32, 128>}, {pipeline_mode = #tpu.pipeline_mode<synchronous>, transform_indices = @transform_1, window_bounds = array<i64: 64, 32>}, {pipeline_mode = #tpu.pipeline_mode<synchronous>, transform_indices = @transform_2, window_bounds = array<i64: 64, 64>}, {pipeline_mode = #tpu.pipeline_mode<synchronous>, transform_indices = @transform_3, window_bounds = array<i64: 64, 1>}, {pipeline_mode = #tpu.pipeline_mode<synchronous>, transform_indices = @transform_4, window_bounds = array<i64: 64, 1>}, {pipeline_mode = #tpu.pipeline_mode<synchronous>, transform_indices = @transform_5, window_bounds = array<i64: 64, 1>}, {pipeline_mode = #tpu.pipeline_mode<synchronous>, transform_indices = @transform_6, window_bounds = array<i64: 64, 1>}, {pipeline_mode = #tpu.pipeline_mode<synchronous>, transform_indices = @transform_7, window_bounds = array<i64: 64, 1>}, {pipeline_mode = #tpu.pipeline_mode<synchronous>, transform_indices = @transform_8, window_bounds = array<i64: 64, 1>}, {pipeline_mode = #tpu.pipeline_mode<synchronous>, transform_indices = @transform_9, window_bounds = array<i64: 64, 1>}, {pipeline_mode = #tpu.pipeline_mode<synchronous>, transform_indices = @transform_10, window_bounds = array<i64: 64, 1>}]} {
    %c0_i32 = arith.constant 0 : i32
    %0 = arith.cmpi eq, %arg1, %c0_i32 : i32
    %c0_i32_0 = arith.constant 0 : i32
    %1 = arith.cmpi eq, %arg2, %c0_i32_0 : i32
    %2 = arith.andi %0, %1 : i1
    %c1_i32 = arith.constant 1 : i32
    %3 = arith.cmpi eq, %arg1, %c1_i32 : i32
    %c0_i32_1 = arith.constant 0 : i32
    %4 = arith.cmpi eq, %arg2, %c0_i32_1 : i32
    %5 = arith.andi %3, %4 : i1
    %c0_i32_2 = arith.constant 0 : i32
    %6 = arith.cmpi eq, %arg0, %c0_i32_2 : i32
    %7 = arith.andi %6, %2 : i1
    %8 = arith.extui %7 : i1 to i32
    %c0_i32_3 = arith.constant 0 : i32
    %9 = arith.cmpi ne, %8, %c0_i32_3 : i32
    scf.if %9 {
      %cst = arith.constant 0.000000e+00 : f32
      %24 = vector.broadcast %cst : f32 to vector<64x128xf32>
      %c0 = arith.constant 0 : index
      %c0_12 = arith.constant 0 : index
      %25 = vector.load %arg14[%c0, %c0_12] : memref<64x128xf32, #tpu.memory_space<vmem>>, vector<64x128xf32>
      tpu.vector_store %arg14[%c0, %c0_12], %24 {strides = array<i32>} : memref<64x128xf32, #tpu.memory_space<vmem>>, vector<64x128xf32>,
      %cst_13 = arith.constant 0.000000e+00 : f32
      %26 = vector.broadcast %cst_13 : f32 to vector<64x128xf32>
      %c0_14 = arith.constant 0 : index
      %c0_15 = arith.constant 0 : index
      %27 = vector.load %arg15[%c0_14, %c0_15] : memref<64x128xf32, #tpu.memory_space<vmem>>, vector<64x128xf32>
      tpu.vector_store %arg15[%c0_14, %c0_15], %26 {strides = array<i32>} : memref<64x128xf32, #tpu.memory_space<vmem>>, vector<64x128xf32>,
      %cst_16 = arith.constant 0.000000e+00 : f32
      %28 = vector.broadcast %cst_16 : f32 to vector<64x128xf32>
      %c0_17 = arith.constant 0 : index
      %c0_18 = arith.constant 0 : index
      %29 = vector.load %arg16[%c0_17, %c0_18] : memref<64x128xf32, #tpu.memory_space<vmem>>, vector<64x128xf32>
      tpu.vector_store %arg16[%c0_17, %c0_18], %28 {strides = array<i32>} : memref<64x128xf32, #tpu.memory_space<vmem>>, vector<64x128xf32>,
      %cst_19 = arith.constant 0.000000e+00 : f32
      %30 = vector.broadcast %cst_19 : f32 to vector<64x128xf32>
      %c0_20 = arith.constant 0 : index
      %c0_21 = arith.constant 0 : index
      %31 = vector.load %arg17[%c0_20, %c0_21] : memref<64x128xf32, #tpu.memory_space<vmem>>, vector<64x128xf32>
      tpu.vector_store %arg17[%c0_20, %c0_21], %30 {strides = array<i32>} : memref<64x128xf32, #tpu.memory_space<vmem>>, vector<64x128xf32>,
    } else {
    }
    %c1_i32_4 = arith.constant 1 : i32
    %10 = arith.cmpi eq, %arg0, %c1_i32_4 : i32
    %11 = arith.andi %10, %2 : i1
    %12 = arith.extui %11 : i1 to i32
    %c0_i32_5 = arith.constant 0 : i32
    %13 = arith.cmpi ne, %12, %c0_i32_5 : i32
    scf.if %13 {
      %c0 = arith.constant 0 : index
      %c0_12 = arith.constant 0 : index
      %24 = vector.load %arg14[%c0, %c0_12] : memref<64x128xf32, #tpu.memory_space<vmem>>, vector<64x128xf32>
      %cst = arith.constant dense<0.000000e+00> : vector<64xf32>
      %25 = vector.multi_reduction <add>, %24, %cst [1] : vector<64x128xf32> to vector<64xf32>
      %26 = vector.shape_cast %25 : vector<64xf32> to vector<64x1xf32>
      %c0_13 = arith.constant 0 : index
      %c0_14 = arith.constant 0 : index
      %27 = vector.load %arg15[%c0_13, %c0_14] : memref<64x128xf32, #tpu.memory_space<vmem>>, vector<64x128xf32>
      %cst_15 = arith.constant dense<0.000000e+00> : vector<64xf32>
      %28 = vector.multi_reduction <add>, %27, %cst_15 [1] : vector<64x128xf32> to vector<64xf32>
      %29 = vector.shape_cast %28 : vector<64xf32> to vector<64x1xf32>
      %cst_16 = arith.constant 3.125000e-02 : f32
      %30 = vector.broadcast %cst_16 : f32 to vector<64x1xf32>
      %31 = arith.mulf %26, %30 : vector<64x1xf32>
      %cst_17 = arith.constant 3.125000e-02 : f32
      %32 = vector.broadcast %cst_17 : f32 to vector<64x1xf32>
      %33 = arith.mulf %29, %32 : vector<64x1xf32>
      %34 = arith.mulf %31, %31 : vector<64x1xf32>
      %35 = arith.subf %33, %34 : vector<64x1xf32>
      %cst_18 = arith.constant 0.000000e+00 : f32
      %36 = vector.broadcast %cst_18 : f32 to vector<64x1xf32>
      %37 = arith.maximumf %35, %36 : vector<64x1xf32>
      %c0_19 = arith.constant 0 : index
      %c0_20 = arith.constant 0 : index
      %38 = vector.load %arg6[%c0_19, %c0_20] : memref<64x1xf32, #tpu.memory_space<vmem>>, vector<64x1xf32>
      %cst_21 = arith.constant 9.99999974E-6 : f32
      %39 = vector.broadcast %cst_21 : f32 to vector<64x1xf32>
      %40 = arith.addf %37, %39 : vector<64x1xf32>
      %41 = math.rsqrt %40 : vector<64x1xf32>
      %42 = arith.mulf %38, %41 : vector<64x1xf32>
      %c0_22 = arith.constant 0 : index
      %c0_23 = arith.constant 0 : index
      %43 = vector.load %arg10[%c0_22, %c0_23] : memref<64x1xf32, #tpu.memory_space<vmem>>, vector<64x1xf32>
      tpu.vector_store %arg10[%c0_22, %c0_23], %42 {strides = array<i32>} : memref<64x1xf32, #tpu.memory_space<vmem>>, vector<64x1xf32>,
      %c0_24 = arith.constant 0 : index
      %c0_25 = arith.constant 0 : index
      %44 = vector.load %arg7[%c0_24, %c0_25] : memref<64x1xf32, #tpu.memory_space<vmem>>, vector<64x1xf32>
      %45 = arith.mulf %31, %42 : vector<64x1xf32>
      %46 = arith.subf %44, %45 : vector<64x1xf32>
      %c0_26 = arith.constant 0 : index
      %c0_27 = arith.constant 0 : index
      %47 = vector.load %arg11[%c0_26, %c0_27] : memref<64x1xf32, #tpu.memory_space<vmem>>, vector<64x1xf32>
      tpu.vector_store %arg11[%c0_26, %c0_27], %46 {strides = array<i32>} : memref<64x1xf32, #tpu.memory_space<vmem>>, vector<64x1xf32>,
    } else {
    }
    %c0_i32_6 = arith.constant 0 : i32
    %14 = arith.cmpi eq, %arg0, %c0_i32_6 : i32
    %15 = arith.extui %14 : i1 to i32
    %c0_i32_7 = arith.constant 0 : i32
    %16 = arith.cmpi ne, %15, %c0_i32_7 : i32
    scf.if %16 {
      %c0 = arith.constant 0 : index
      %c0_12 = arith.constant 0 : index
      %24 = vector.load %arg4[%c0, %c0_12] : memref<64x32xf32, #tpu.memory_space<vmem>>, vector<64x32xf32>
      %c128_i32 = arith.constant 128 : i32
      %25 = arith.muli %arg2, %c128_i32 : i32
      %26 = tpu.assume_multiple %25, 128 : i32
      %27 = arith.index_cast %arg1 : i32 to index
      %c0_13 = arith.constant 0 : index
      %28 = arith.index_cast %26 : i32 to index
      %29 = vector.load %arg3[%27, %c0_13, %28] : memref<2x32x128xf32, #tpu.memory_space<vmem>>, vector<1x32x128xf32>
      %30 = vector.shape_cast %29 : vector<1x32x128xf32> to vector<32x128xf32>
      %cst = arith.constant dense<0.000000e+00> : vector<64x128xf32>
      %31 = tpu.matmul %24, %30, %cst {dimension_numbers = #tpu.dot_dimension_numbers<[1], [0], [0], [1], [0, 0, 1, 1], [], []>, precision = #tpu.contract_precision<fp32>} : vector<64x32xf32>, vector<32x128xf32>, vector<64x128xf32> -> vector<64x128xf32>
      %32 = arith.mulf %31, %31 : vector<64x128xf32>
      %c0_14 = arith.constant 0 : index
      %c0_15 = arith.constant 0 : index
      %33 = vector.load %arg14[%c0_14, %c0_15] : memref<64x128xf32, #tpu.memory_space<vmem>>, vector<64x128xf32>
      %34 = arith.addf %33, %31 : vector<64x128xf32>
      %c0_16 = arith.constant 0 : index
      %c0_17 = arith.constant 0 : index
      %35 = vector.load %arg14[%c0_16, %c0_17] : memref<64x128xf32, #tpu.memory_space<vmem>>, vector<64x128xf32>
      tpu.vector_store %arg14[%c0_16, %c0_17], %34 {strides = array<i32>} : memref<64x128xf32, #tpu.memory_space<vmem>>, vector<64x128xf32>,
      %c0_18 = arith.constant 0 : index
      %c0_19 = arith.constant 0 : index
      %36 = vector.load %arg15[%c0_18, %c0_19] : memref<64x128xf32, #tpu.memory_space<vmem>>, vector<64x128xf32>
      %37 = arith.addf %36, %32 : vector<64x128xf32>
      %c0_20 = arith.constant 0 : index
      %c0_21 = arith.constant 0 : index
      %38 = vector.load %arg15[%c0_20, %c0_21] : memref<64x128xf32, #tpu.memory_space<vmem>>, vector<64x128xf32>
      tpu.vector_store %arg15[%c0_20, %c0_21], %37 {strides = array<i32>} : memref<64x128xf32, #tpu.memory_space<vmem>>, vector<64x128xf32>,
    } else {
    }
    %c1_i32_8 = arith.constant 1 : i32
    %17 = arith.cmpi eq, %arg0, %c1_i32_8 : i32
    %18 = arith.extui %17 : i1 to i32
    %c0_i32_9 = arith.constant 0 : i32
    %19 = arith.cmpi ne, %18, %c0_i32_9 : i32
    scf.if %19 {
      %c0 = arith.constant 0 : index
      %c0_12 = arith.constant 0 : index
      %24 = vector.load %arg4[%c0, %c0_12] : memref<64x32xf32, #tpu.memory_space<vmem>>, vector<64x32xf32>
      %c128_i32 = arith.constant 128 : i32
      %25 = arith.muli %arg2, %c128_i32 : i32
      %26 = tpu.assume_multiple %25, 128 : i32
      %27 = arith.index_cast %arg1 : i32 to index
      %c0_13 = arith.constant 0 : index
      %28 = arith.index_cast %26 : i32 to index
      %29 = vector.load %arg3[%27, %c0_13, %28] : memref<2x32x128xf32, #tpu.memory_space<vmem>>, vector<1x32x128xf32>
      %30 = vector.shape_cast %29 : vector<1x32x128xf32> to vector<32x128xf32>
      %cst = arith.constant dense<0.000000e+00> : vector<64x128xf32>
      %31 = tpu.matmul %24, %30, %cst {dimension_numbers = #tpu.dot_dimension_numbers<[1], [0], [0], [1], [0, 0, 1, 1], [], []>, precision = #tpu.contract_precision<fp32>} : vector<64x32xf32>, vector<32x128xf32>, vector<64x128xf32> -> vector<64x128xf32>
      %c0_14 = arith.constant 0 : index
      %c0_15 = arith.constant 0 : index
      %32 = vector.load %arg10[%c0_14, %c0_15] : memref<64x1xf32, #tpu.memory_space<vmem>>, vector<64x1xf32>
      %33 = vector.broadcast %32 : vector<64x1xf32> to vector<64x128xf32>
      %34 = arith.mulf %31, %33 : vector<64x128xf32>
      %c0_16 = arith.constant 0 : index
      %c0_17 = arith.constant 0 : index
      %35 = vector.load %arg11[%c0_16, %c0_17] : memref<64x1xf32, #tpu.memory_space<vmem>>, vector<64x1xf32>
      %36 = vector.broadcast %35 : vector<64x1xf32> to vector<64x128xf32>
      %37 = arith.addf %34, %36 : vector<64x128xf32>
      %cst_18 = arith.constant 0.000000e+00 : f32
      %38 = vector.broadcast %cst_18 : f32 to vector<64x128xf32>
      %39 = arith.maximumf %37, %38 : vector<64x128xf32>
      %c0_19 = arith.constant 0 : index
      %c0_20 = arith.constant 0 : index
      %40 = vector.load %arg5[%c0_19, %c0_20] : memref<64x64xf32, #tpu.memory_space<vmem>>, vector<64x64xf32>
      %cst_21 = arith.constant dense<0.000000e+00> : vector<64x128xf32>
      %41 = tpu.matmul %40, %39, %cst_21 {dimension_numbers = #tpu.dot_dimension_numbers<[1], [0], [0], [1], [0, 0, 1, 1], [], []>, precision = #tpu.contract_precision<fp32>} : vector<64x64xf32>, vector<64x128xf32>, vector<64x128xf32> -> vector<64x128xf32>
      %42 = tpu.iota {dimensions = array<i32: 1>} : vector<1x128xi32>
      %c128_i32_22 = arith.constant 128 : i32
      %43 = arith.muli %arg2, %c128_i32_22 : i32
      %44 = vector.broadcast %43 : i32 to vector<1x128xi32>
      %45 = arith.addi %44, %42 : vector<1x128xi32>
      %c16_i32 = arith.constant 16 : i32
      %46 = vector.broadcast %c16_i32 : i32 to vector<1x128xi32>
      %47 = arith.cmpi slt, %45, %46 : vector<1x128xi32>
      %cst_23 = arith.constant 0.000000e+00 : f32
      %48 = vector.shape_cast %47 : vector<1x128xi1> to vector<1x128xi1>
      %49 = vector.broadcast %48 : vector<1x128xi1> to vector<64x128xi1>
      %50 = vector.broadcast %cst_23 : f32 to vector<64x128xf32>
      %51 = arith.select %49, %41, %50 : vector<64x128xi1>, vector<64x128xf32>
      %52 = arith.mulf %51, %51 : vector<64x128xf32>
      %c0_24 = arith.constant 0 : index
      %c0_25 = arith.constant 0 : index
      %53 = vector.load %arg16[%c0_24, %c0_25] : memref<64x128xf32, #tpu.memory_space<vmem>>, vector<64x128xf32>
      %54 = arith.addf %53, %51 : vector<64x128xf32>
      %c0_26 = arith.constant 0 : index
      %c0_27 = arith.constant 0 : index
      %55 = vector.load %arg16[%c0_26, %c0_27] : memref<64x128xf32, #tpu.memory_space<vmem>>, vector<64x128xf32>
      tpu.vector_store %arg16[%c0_26, %c0_27], %54 {strides = array<i32>} : memref<64x128xf32, #tpu.memory_space<vmem>>, vector<64x128xf32>,
      %c0_28 = arith.constant 0 : index
      %c0_29 = arith.constant 0 : index
      %56 = vector.load %arg17[%c0_28, %c0_29] : memref<64x128xf32, #tpu.memory_space<vmem>>, vector<64x128xf32>
      %57 = arith.addf %56, %52 : vector<64x128xf32>
      %c0_30 = arith.constant 0 : index
      %c0_31 = arith.constant 0 : index
      %58 = vector.load %arg17[%c0_30, %c0_31] : memref<64x128xf32, #tpu.memory_space<vmem>>, vector<64x128xf32>
      tpu.vector_store %arg17[%c0_30, %c0_31], %57 {strides = array<i32>} : memref<64x128xf32, #tpu.memory_space<vmem>>, vector<64x128xf32>,
    } else {
    }
    %c1_i32_10 = arith.constant 1 : i32
    %20 = arith.cmpi eq, %arg0, %c1_i32_10 : i32
    %21 = arith.andi %20, %5 : i1
    %22 = arith.extui %21 : i1 to i32
    %c0_i32_11 = arith.constant 0 : i32
    %23 = arith.cmpi ne, %22, %c0_i32_11 : i32
    scf.if %23 {
      %c0 = arith.constant 0 : index
      %c0_12 = arith.constant 0 : index
      %24 = vector.load %arg16[%c0, %c0_12] : memref<64x128xf32, #tpu.memory_space<vmem>>, vector<64x128xf32>
      %cst = arith.constant dense<0.000000e+00> : vector<64xf32>
      %25 = vector.multi_reduction <add>, %24, %cst [1] : vector<64x128xf32> to vector<64xf32>
      %26 = vector.shape_cast %25 : vector<64xf32> to vector<64x1xf32>
      %c0_13 = arith.constant 0 : index
      %c0_14 = arith.constant 0 : index
      %27 = vector.load %arg17[%c0_13, %c0_14] : memref<64x128xf32, #tpu.memory_space<vmem>>, vector<64x128xf32>
      %cst_15 = arith.constant dense<0.000000e+00> : vector<64xf32>
      %28 = vector.multi_reduction <add>, %27, %cst_15 [1] : vector<64x128xf32> to vector<64xf32>
      %29 = vector.shape_cast %28 : vector<64xf32> to vector<64x1xf32>
      %cst_16 = arith.constant 3.125000e-02 : f32
      %30 = vector.broadcast %cst_16 : f32 to vector<64x1xf32>
      %31 = arith.mulf %26, %30 : vector<64x1xf32>
      %cst_17 = arith.constant 3.125000e-02 : f32
      %32 = vector.broadcast %cst_17 : f32 to vector<64x1xf32>
      %33 = arith.mulf %29, %32 : vector<64x1xf32>
      %34 = arith.mulf %31, %31 : vector<64x1xf32>
      %35 = arith.subf %33, %34 : vector<64x1xf32>
      %cst_18 = arith.constant 0.000000e+00 : f32
      %36 = vector.broadcast %cst_18 : f32 to vector<64x1xf32>
      %37 = arith.maximumf %35, %36 : vector<64x1xf32>
      %c0_19 = arith.constant 0 : index
      %c0_20 = arith.constant 0 : index
      %38 = vector.load %arg8[%c0_19, %c0_20] : memref<64x1xf32, #tpu.memory_space<vmem>>, vector<64x1xf32>
      %cst_21 = arith.constant 9.99999974E-6 : f32
      %39 = vector.broadcast %cst_21 : f32 to vector<64x1xf32>
      %40 = arith.addf %37, %39 : vector<64x1xf32>
      %41 = math.rsqrt %40 : vector<64x1xf32>
      %42 = arith.mulf %38, %41 : vector<64x1xf32>
      %c0_22 = arith.constant 0 : index
      %c0_23 = arith.constant 0 : index
      %43 = vector.load %arg12[%c0_22, %c0_23] : memref<64x1xf32, #tpu.memory_space<vmem>>, vector<64x1xf32>
      tpu.vector_store %arg12[%c0_22, %c0_23], %42 {strides = array<i32>} : memref<64x1xf32, #tpu.memory_space<vmem>>, vector<64x1xf32>,
      %c0_24 = arith.constant 0 : index
      %c0_25 = arith.constant 0 : index
      %44 = vector.load %arg9[%c0_24, %c0_25] : memref<64x1xf32, #tpu.memory_space<vmem>>, vector<64x1xf32>
      %45 = arith.mulf %31, %42 : vector<64x1xf32>
      %46 = arith.subf %44, %45 : vector<64x1xf32>
      %c0_26 = arith.constant 0 : index
      %c0_27 = arith.constant 0 : index
      %47 = vector.load %arg13[%c0_26, %c0_27] : memref<64x1xf32, #tpu.memory_space<vmem>>, vector<64x1xf32>
      tpu.vector_store %arg13[%c0_26, %c0_27], %46 {strides = array<i32>} : memref<64x1xf32, #tpu.memory_space<vmem>>, vector<64x1xf32>,
    } else {
    }
    return
  }
  func.func @transform_0(%arg0: i32, %arg1: i32, %arg2: i32) -> (i32, i32, i32) {
    %c0_i32 = arith.constant 0 : i32
    %c0_i32_0 = arith.constant 0 : i32
    %c0_i32_1 = arith.constant 0 : i32
    %c0_i32_2 = arith.constant 0 : i32
    return %c0_i32, %c0_i32_0, %c0_i32_1 : i32, i32, i32
  }
  func.func @transform_1(%arg0: i32, %arg1: i32, %arg2: i32) -> (i32, i32) {
    %c0_i32 = arith.constant 0 : i32
    %c0_i32_0 = arith.constant 0 : i32
    %c0_i32_1 = arith.constant 0 : i32
    return %c0_i32, %c0_i32_0 : i32, i32
  }
  func.func @transform_2(%arg0: i32, %arg1: i32, %arg2: i32) -> (i32, i32) {
    %c0_i32 = arith.constant 0 : i32
    %c0_i32_0 = arith.constant 0 : i32
    %c0_i32_1 = arith.constant 0 : i32
    return %c0_i32, %c0_i32_0 : i32, i32
  }
  func.func @transform_3(%arg0: i32, %arg1: i32, %arg2: i32) -> (i32, i32) {
    %c0_i32 = arith.constant 0 : i32
    %c0_i32_0 = arith.constant 0 : i32
    %c0_i32_1 = arith.constant 0 : i32
    return %c0_i32, %c0_i32_0 : i32, i32
  }
  func.func @transform_4(%arg0: i32, %arg1: i32, %arg2: i32) -> (i32, i32) {
    %c0_i32 = arith.constant 0 : i32
    %c0_i32_0 = arith.constant 0 : i32
    %c0_i32_1 = arith.constant 0 : i32
    return %c0_i32, %c0_i32_0 : i32, i32
  }
  func.func @transform_5(%arg0: i32, %arg1: i32, %arg2: i32) -> (i32, i32) {
    %c0_i32 = arith.constant 0 : i32
    %c0_i32_0 = arith.constant 0 : i32
    %c0_i32_1 = arith.constant 0 : i32
    return %c0_i32, %c0_i32_0 : i32, i32
  }
  func.func @transform_6(%arg0: i32, %arg1: i32, %arg2: i32) -> (i32, i32) {
    %c0_i32 = arith.constant 0 : i32
    %c0_i32_0 = arith.constant 0 : i32
    %c0_i32_1 = arith.constant 0 : i32
    return %c0_i32, %c0_i32_0 : i32, i32
  }
  func.func @transform_7(%arg0: i32, %arg1: i32, %arg2: i32) -> (i32, i32) {
    %c0_i32 = arith.constant 0 : i32
    %c0_i32_0 = arith.constant 0 : i32
    %c0_i32_1 = arith.constant 0 : i32
    return %c0_i32, %c0_i32_0 : i32, i32
  }
  func.func @transform_8(%arg0: i32, %arg1: i32, %arg2: i32) -> (i32, i32) {
    %c0_i32 = arith.constant 0 : i32
    %c0_i32_0 = arith.constant 0 : i32
    %c0_i32_1 = arith.constant 0 : i32
    return %c0_i32, %c0_i32_0 : i32, i32
  }
  func.func @transform_9(%arg0: i32, %arg1: i32, %arg2: i32) -> (i32, i32) {
    %c0_i32 = arith.constant 0 : i32
    %c0_i32_0 = arith.constant 0 : i32
    %c0_i32_1 = arith.constant 0 : i32
    return %c0_i32, %c0_i32_0 : i32, i32
  }
  func.func @transform_10(%arg0: i32, %arg1: i32, %arg2: i32) -> (i32, i32) {
    %c0_i32 = arith.constant 0 : i32
    %c0_i32_0 = arith.constant 0 : i32
    %c0_i32_1 = arith.constant 0 : i32
    return %c0_i32, %c0_i32_0 : i32, i32
  }
}

module attributes {stable_mosaic.version = 11 : i64} {
  func.func @mlp_apply_kernel(%arg0: i32, %arg1: i32, %arg2: memref<1x32x128xf32, #tpu.memory_space<vmem>>, %arg3: memref<64x32xf32, #tpu.memory_space<vmem>>, %arg4: memref<64x64xf32, #tpu.memory_space<vmem>>, %arg5: memref<16x64xf32, #tpu.memory_space<vmem>>, %arg6: memref<16x1xf32, #tpu.memory_space<vmem>>, %arg7: memref<64x1xf32, #tpu.memory_space<vmem>>, %arg8: memref<64x1xf32, #tpu.memory_space<vmem>>, %arg9: memref<64x1xf32, #tpu.memory_space<vmem>>, %arg10: memref<64x1xf32, #tpu.memory_space<vmem>>, %arg11: memref<1x16x128xf32, #tpu.memory_space<vmem>>) attributes {dimension_semantics = [#tpu.dimension_semantics<parallel>, #tpu.dimension_semantics<parallel>], iteration_bounds = array<i64: 2, 1>, scalar_prefetch = 0 : i64, scratch_operands = 0 : i64, tpu.core_type = #tpu.core_type<tc>, window_params = [{transform_indices = @transform_0, window_bounds = array<i64: 1, 32, 128>}, {pipeline_mode = #tpu.pipeline_mode<synchronous>, transform_indices = @transform_1, window_bounds = array<i64: 64, 32>}, {pipeline_mode = #tpu.pipeline_mode<synchronous>, transform_indices = @transform_2, window_bounds = array<i64: 64, 64>}, {pipeline_mode = #tpu.pipeline_mode<synchronous>, transform_indices = @transform_3, window_bounds = array<i64: 16, 64>}, {pipeline_mode = #tpu.pipeline_mode<synchronous>, transform_indices = @transform_4, window_bounds = array<i64: 16, 1>}, {pipeline_mode = #tpu.pipeline_mode<synchronous>, transform_indices = @transform_5, window_bounds = array<i64: 64, 1>}, {pipeline_mode = #tpu.pipeline_mode<synchronous>, transform_indices = @transform_6, window_bounds = array<i64: 64, 1>}, {pipeline_mode = #tpu.pipeline_mode<synchronous>, transform_indices = @transform_7, window_bounds = array<i64: 64, 1>}, {pipeline_mode = #tpu.pipeline_mode<synchronous>, transform_indices = @transform_8, window_bounds = array<i64: 64, 1>}, {transform_indices = @transform_9, window_bounds = array<i64: 1, 16, 128>}]} {
    %c0 = arith.constant 0 : index
    %c0_0 = arith.constant 0 : index
    %0 = vector.load %arg3[%c0, %c0_0] : memref<64x32xf32, #tpu.memory_space<vmem>>, vector<64x32xf32>
    %c0_1 = arith.constant 0 : index
    %c0_2 = arith.constant 0 : index
    %c0_3 = arith.constant 0 : index
    %1 = vector.load %arg2[%c0_1, %c0_2, %c0_3] : memref<1x32x128xf32, #tpu.memory_space<vmem>>, vector<1x32x128xf32>
    %2 = vector.shape_cast %1 : vector<1x32x128xf32> to vector<32x128xf32>
    %cst = arith.constant dense<0.000000e+00> : vector<64x128xf32>
    %3 = tpu.matmul %0, %2, %cst {dimension_numbers = #tpu.dot_dimension_numbers<[1], [0], [0], [1], [0, 0, 1, 1], [], []>, precision = #tpu.contract_precision<fp32>} : vector<64x32xf32>, vector<32x128xf32>, vector<64x128xf32> -> vector<64x128xf32>
    %c0_4 = arith.constant 0 : index
    %c0_5 = arith.constant 0 : index
    %4 = vector.load %arg7[%c0_4, %c0_5] : memref<64x1xf32, #tpu.memory_space<vmem>>, vector<64x1xf32>
    %5 = vector.broadcast %4 : vector<64x1xf32> to vector<64x128xf32>
    %6 = arith.mulf %3, %5 : vector<64x128xf32>
    %c0_6 = arith.constant 0 : index
    %c0_7 = arith.constant 0 : index
    %7 = vector.load %arg8[%c0_6, %c0_7] : memref<64x1xf32, #tpu.memory_space<vmem>>, vector<64x1xf32>
    %8 = vector.broadcast %7 : vector<64x1xf32> to vector<64x128xf32>
    %9 = arith.addf %6, %8 : vector<64x128xf32>
    %cst_8 = arith.constant 0.000000e+00 : f32
    %10 = vector.broadcast %cst_8 : f32 to vector<64x128xf32>
    %11 = arith.maximumf %9, %10 : vector<64x128xf32>
    %c0_9 = arith.constant 0 : index
    %c0_10 = arith.constant 0 : index
    %12 = vector.load %arg4[%c0_9, %c0_10] : memref<64x64xf32, #tpu.memory_space<vmem>>, vector<64x64xf32>
    %cst_11 = arith.constant dense<0.000000e+00> : vector<64x128xf32>
    %13 = tpu.matmul %12, %11, %cst_11 {dimension_numbers = #tpu.dot_dimension_numbers<[1], [0], [0], [1], [0, 0, 1, 1], [], []>, precision = #tpu.contract_precision<fp32>} : vector<64x64xf32>, vector<64x128xf32>, vector<64x128xf32> -> vector<64x128xf32>
    %c0_12 = arith.constant 0 : index
    %c0_13 = arith.constant 0 : index
    %14 = vector.load %arg9[%c0_12, %c0_13] : memref<64x1xf32, #tpu.memory_space<vmem>>, vector<64x1xf32>
    %15 = vector.broadcast %14 : vector<64x1xf32> to vector<64x128xf32>
    %16 = arith.mulf %13, %15 : vector<64x128xf32>
    %c0_14 = arith.constant 0 : index
    %c0_15 = arith.constant 0 : index
    %17 = vector.load %arg10[%c0_14, %c0_15] : memref<64x1xf32, #tpu.memory_space<vmem>>, vector<64x1xf32>
    %18 = vector.broadcast %17 : vector<64x1xf32> to vector<64x128xf32>
    %19 = arith.addf %16, %18 : vector<64x128xf32>
    %cst_16 = arith.constant 0.000000e+00 : f32
    %20 = vector.broadcast %cst_16 : f32 to vector<64x128xf32>
    %21 = arith.maximumf %19, %20 : vector<64x128xf32>
    %c0_17 = arith.constant 0 : index
    %c0_18 = arith.constant 0 : index
    %22 = vector.load %arg5[%c0_17, %c0_18] : memref<16x64xf32, #tpu.memory_space<vmem>>, vector<16x64xf32>
    %cst_19 = arith.constant dense<0.000000e+00> : vector<16x128xf32>
    %23 = tpu.matmul %22, %21, %cst_19 {dimension_numbers = #tpu.dot_dimension_numbers<[1], [0], [0], [1], [0, 0, 1, 1], [], []>, precision = #tpu.contract_precision<fp32>} : vector<16x64xf32>, vector<64x128xf32>, vector<16x128xf32> -> vector<16x128xf32>
    %c0_20 = arith.constant 0 : index
    %c0_21 = arith.constant 0 : index
    %24 = vector.load %arg6[%c0_20, %c0_21] : memref<16x1xf32, #tpu.memory_space<vmem>>, vector<16x1xf32>
    %25 = vector.broadcast %24 : vector<16x1xf32> to vector<16x128xf32>
    %26 = arith.addf %23, %25 : vector<16x128xf32>
    %c0_22 = arith.constant 0 : index
    %c0_23 = arith.constant 0 : index
    %c0_24 = arith.constant 0 : index
    %27 = vector.load %arg11[%c0_22, %c0_23, %c0_24] : memref<1x16x128xf32, #tpu.memory_space<vmem>>, vector<1x16x128xf32>
    %28 = vector.shape_cast %27 : vector<1x16x128xf32> to vector<16x128xf32>
    %29 = vector.shape_cast %26 : vector<16x128xf32> to vector<1x16x128xf32>
    tpu.vector_store %arg11[%c0_22, %c0_23, %c0_24], %29 {strides = array<i32>} : memref<1x16x128xf32, #tpu.memory_space<vmem>>, vector<1x16x128xf32>,
    return
  }
  func.func @transform_0(%arg0: i32, %arg1: i32) -> (i32, i32, i32) {
    %c0_i32 = arith.constant 0 : i32
    %c0_i32_0 = arith.constant 0 : i32
    return %arg0, %c0_i32, %arg1 : i32, i32, i32
  }
  func.func @transform_1(%arg0: i32, %arg1: i32) -> (i32, i32) {
    %c0_i32 = arith.constant 0 : i32
    %c0_i32_0 = arith.constant 0 : i32
    %c0_i32_1 = arith.constant 0 : i32
    return %c0_i32, %c0_i32_0 : i32, i32
  }
  func.func @transform_2(%arg0: i32, %arg1: i32) -> (i32, i32) {
    %c0_i32 = arith.constant 0 : i32
    %c0_i32_0 = arith.constant 0 : i32
    %c0_i32_1 = arith.constant 0 : i32
    return %c0_i32, %c0_i32_0 : i32, i32
  }
  func.func @transform_3(%arg0: i32, %arg1: i32) -> (i32, i32) {
    %c0_i32 = arith.constant 0 : i32
    %c0_i32_0 = arith.constant 0 : i32
    %c0_i32_1 = arith.constant 0 : i32
    return %c0_i32, %c0_i32_0 : i32, i32
  }
  func.func @transform_4(%arg0: i32, %arg1: i32) -> (i32, i32) {
    %c0_i32 = arith.constant 0 : i32
    %c0_i32_0 = arith.constant 0 : i32
    %c0_i32_1 = arith.constant 0 : i32
    return %c0_i32, %c0_i32_0 : i32, i32
  }
  func.func @transform_5(%arg0: i32, %arg1: i32) -> (i32, i32) {
    %c0_i32 = arith.constant 0 : i32
    %c0_i32_0 = arith.constant 0 : i32
    %c0_i32_1 = arith.constant 0 : i32
    return %c0_i32, %c0_i32_0 : i32, i32
  }
  func.func @transform_6(%arg0: i32, %arg1: i32) -> (i32, i32) {
    %c0_i32 = arith.constant 0 : i32
    %c0_i32_0 = arith.constant 0 : i32
    %c0_i32_1 = arith.constant 0 : i32
    return %c0_i32, %c0_i32_0 : i32, i32
  }
  func.func @transform_7(%arg0: i32, %arg1: i32) -> (i32, i32) {
    %c0_i32 = arith.constant 0 : i32
    %c0_i32_0 = arith.constant 0 : i32
    %c0_i32_1 = arith.constant 0 : i32
    return %c0_i32, %c0_i32_0 : i32, i32
  }
  func.func @transform_8(%arg0: i32, %arg1: i32) -> (i32, i32) {
    %c0_i32 = arith.constant 0 : i32
    %c0_i32_0 = arith.constant 0 : i32
    %c0_i32_1 = arith.constant 0 : i32
    return %c0_i32, %c0_i32_0 : i32, i32
  }
  func.func @transform_9(%arg0: i32, %arg1: i32) -> (i32, i32, i32) {
    %c0_i32 = arith.constant 0 : i32
    %c0_i32_0 = arith.constant 0 : i32
    return %arg0, %c0_i32, %arg1 : i32, i32, i32
  }
}

</mosaic_0001>

<bundles_post_ra>
// kernel: conv_forward.3
= control target key start
LH: loop header
LB: loop body
LE: loop exit
PB: predicated region body
PF: predicated region fallthrough
CT: control target
= control target key end

     0   :  { %14 = vsyncpa [#allocation3], 0  ;;  %s4818_s0 = inlined_call_operand.vmem [shape: f32[2,32,128], index: 0, kind: input, shape index: {}]   ;;  %s4819_s1 = inlined_call_operand.vmem [shape: f32[64,32], index: 1, kind: input, shape index: {}]   ;;  %s4820_s2 = inlined_call_operand.vmem [shape: f32[64,64], index: 2, kind: input, shape index: {}]   ;;  %s4821_s3 = inlined_call_operand.vmem [shape: f32[16,64], index: 3, kind: input, shape index: {}]   ;;  %s4822_s4 = inlined_call_operand.vmem [shape: f32[16,1], index: 4, kind: input, shape index: {}]   ;;  %s4823_s5 = inlined_call_operand.vmem [shape: f32[64,1], index: 5, kind: input, shape index: {}]   ;;  %s4824_s6 = inlined_call_operand.vmem [shape: f32[64,1], index: 6, kind: input, shape index: {}]   ;;  %s4825_s7 = inlined_call_operand.vmem [shape: f32[64,1], index: 7, kind: input, shape index: {}]   ;;  %s4826_s8 = inlined_call_operand.vmem [shape: f32[64,1], index: 8, kind: input, shape index: {}]   ;;  %s4827_s9 = inlined_call_operand.hbm [shape: f32[2,16,128], index: 9, kind: output, shape index: {}]  }
   0x1   :  { %16 = vsyncpa [#allocation3 + $0x1], 0  ;;  %s3822_s30 = smov 0   ;;  %s3824_s10 = smov 0  }
   0x2   :  { %s3826_s11 = smov 0   ;;  %s3828_s12 = smov 0  }
   0x3   :  { %s3830_s13 = smov 0   ;;  %s3832_s14 = smov 0  }
   0x4 LB: > { %s2985_s15 = sadd.s32 4294967295, %s3766_s14   ;;  %s2986_s16 = sadd.s32 4294967294, %s3766_s14   ;;  %s3766_s14 = sphi %s3832_s14, %s22_s14   ;;  %s3762_s13 = sphi %s3830_s13, %s4858_s13   ;;  %s3758_s12 = sphi %s3828_s12, %s4857_s12   ;;  %s3754_s11 = sphi %s3826_s11, %s4856_s11   ;;  %s3750_s10 = sphi %s3824_s10, %s4855_s10   ;;  %s3746_s30 = sphi %s3822_s30, %s4854_s30  }
   0x5   : > { %s34_s17 = sadd.s32 1, %s3762_s13  ;;  %s239_s18 = sadd.s32 1, %s3754_s11 }
   0x6   : > { %p36_p0 = scmp.ge.s32.totalorder %s34_s17, 2  ;;  %p249_p1 = scmp.ne.s32.totalorder %s3754_s11, %s3750_s10 }
   0x7   : > { %p250_p2 = scmp.eq.s32.totalorder %s2985_s15, 1  ;;  %p255_p3 = scmp.ne.s32.totalorder %s3750_s10, %s3746_s30 }
   0x8   : > { %s4860_s17 = smov (%p36_p0, %s34_s17), 0  ;;  %p256_p5 = scmp.eq.s32.totalorder %s2986_s16, 1 }
   0x9   : > { %p3862_p4 = por %p250_p2, %p249_p1  ;;  %s234_s20 = ssub.s32 %s3762_s13, %s4860_s17 }
   0xa   : > { %p2989_p6 = scmp.ge.s32.totalorder %s3766_s14, 1  ;;  %p237_p7 = scmp.eq.s32.totalorder %s234_s20, 0 }
   0xb   : > { %p3869_p8 = por %p256_p5, %p255_p3  ;;  %p309_p9 = scmp.lt.s32.totalorder %s3766_s14, 3 }
   0xc   : > { %s3875_s22 = scalar_select %p237_p7, %s3754_s11, %s239_s18  }
   0xd   : > { %p310_p10 = pnand %p2989_p6, %p309_p9 }
   0xf   : > { %313 = sbr.rel (%p310_p10) target bundleno = 849 (0x351), region = 56 }
  0x14   : > { %p348_p11 = scmp.lt.s32.totalorder %s3758_s12, 1  ;;  %v356_v0 = vld [vmem:[%s4819_s1] sm:$0xff]  ;;  %vm368_vm0 = vcmask 261120   ;;  %v357_v1 = vld [vmem:[%s4819_s1 + $0x8] sm:$0xff]  ;;  %v358_v2 = vld [vmem:[%s4819_s1 + $0x10] sm:$0xff]  ;;  %v3768_v9 = vmov 0  }
  0x15   : > { %v370_v3 = vsel %vm368_vm0, %v356_v0, 0  ;;  %v373_v4 = vsel %vm368_vm0, %v357_v1, 0  ;;  %v376_v5 = vsel %vm368_vm0, %v358_v2, 0  ;;  %v359_v6 = vld [vmem:[%s4819_s1 + $0x18] sm:$0xff]  ;;  %v360_v7 = vld [vmem:[%s4819_s1 + $0x20] sm:$0xff]  ;;  %v361_v8 = vld [vmem:[%s4819_s1 + $0x28] sm:$0xff]  ;;  %3688 = vset.pattern.permute.xlu0 %v3768_v9  ;;  %3689 = vset.pattern.permute.xlu1 %v3768_v9 }
  0x16   : > { %s349_s24 = scalar_select %p348_p11, %s3758_s12, 1  ;;  %v3902_v10 = vand.u32 4294901760, %v370_v3  ;;  %v3904_v11 = vand.u32 4294901760, %v373_v4  ;;  %v3906_v12 = vand.u32 4294901760, %v376_v5  ;;  %v379_v13 = vsel %vm368_vm0, %v359_v6, 0  ;;  %v362_v14 = vld [vmem:[%s4819_s1 + $0x30] sm:$0xff] }
  0x17   : > { %v3912_v15 = vand.u32 4294901760, %v379_v13  ;;  %v382_v16 = vsel %vm368_vm0, %v360_v7, 0  ;;  %v385_v17 = vsel %vm368_vm0, %v361_v8, 0  ;;  %v388_v18 = vsel %vm368_vm0, %v362_v14, 0  ;;  %v1186_v19 = vld [vmem:[%s4823_s5 + $0x38] sm:$0xff]  ;;  %v1185_v29 = vld [vmem:[%s4823_s5 + $0x30] sm:$0xff] }
  0x18   : > { %s2998_s29 = sshll.u32 %s349_s24, 5  ;;  %v3921_v20 = vsub.f32 %v370_v3, %v3902_v10  ;;  %v3924_v21 = vsub.f32 %v373_v4, %v3904_v11  ;;  %v3927_v22 = vsub.f32 %v376_v5, %v3906_v12  ;;  %v3929_v23 = vand.u32 4294901760, %v382_v16  ;;  %3256 = vmatprep.mubr.f32.mxu1 %v3902_v10  ;;  %1224 = vperm.xlu0 %3688, %v1186_v19   ;;  %v1242_v24 = vld [vmem:[%s4824_s6 + $0x38] sm:$0xff]  ;;  %v1184_v41 = vld [vmem:[%s4823_s5 + $0x28] sm:$0xff]  ;;  %v1241_v54 = vld [vmem:[%s4824_s6 + $0x30] sm:$0xff]  ;;  %s345_s20 = sand.u32 1, %s3750_s10  }
  0x19   : > { %s355_s23 = scalar_lea.vmem %s4818_s0, %s2998_s29  ;;  %v3939_v25 = vsub.f32 %v379_v13, %v3912_v15  ;;  %v3941_v26 = vand.u32 4294901760, %v385_v17  ;;  %v3943_v27 = vand.u32 4294901760, %v388_v18  ;;  %v363_v28 = vld [vmem:[%s4819_s1 + $0x38] sm:$0xff]  ;;  %1280 = vperm.xlu1 %3689, %v1242_v24   ;;  %v1183_v59 = vld [vmem:[%s4823_s5 + $0x20] sm:$0xff]  ;;  %vm1307_vm1 = vcmask 523264   ;;  %s2999_s26 = sshll.u32 %s3758_s12, 8 }
  0x1a   : > { %v367_v30 = vld [vmem:[%s355_s23 + $0x18] sm:$0xff]  ;;  %v366_v31 = vld [vmem:[%s355_s23 + $0x10] sm:$0xff]  ;;  %v365_v32 = vld [vmem:[%s355_s23 + $0x8] sm:$0xff]  ;;  %v464_v33 = vand.u32 4294901760, %v3921_v20  ;;  %v474_v34 = vand.u32 4294901760, %v3924_v21  ;;  %v484_v35 = vand.u32 4294901760, %v3927_v22  ;;  %v3973_v45 = vsub.f32 %v382_v16, %v3929_v23  ;;  %s4771_s29 = scalar_lea.hbm %s4827_s9, %s2999_s26 }
  0x1b   : > { %v3954_v36 = vand.u32 4294901760, %v367_v30  ;;  %v3956_v37 = vand.u32 4294901760, %v366_v31  ;;  %v3958_v38 = vand.u32 4294901760, %v365_v32  ;;  %v364_v39 = vld [vmem:[%s355_s23] sm:$0xff]  ;;  %v494_v40 = vand.u32 4294901760, %v3939_v25  ;;  %s2990_s23 = sshll.u32 %s345_s20, 4 }
  0x1c   : > { %v3964_v42 = vand.u32 4294901760, %v364_v39  ;;  %v465_v43 = vsub.f32 %v3921_v20, %v464_v33  ;;  %v475_v44 = vsub.f32 %v3924_v21, %v474_v34  ;;  %1219 = vperm.xlu0 %3688, %v1185_v29   ;;  %v391_v49 = vsel %vm368_vm0, %v363_v28, 0  ;;  %s347_s24 = scalar_lea.vmem [#allocation2], %s2990_s23  ;;  %s4773_s15 = scalar_lea.sflag [#allocation3], %s345_s20 }
  0x1d   : > { %3228 = vmatprep.subr.mxu0 %v3954_v36  ;;  %v568_v46 = vsub.f32 %v367_v30, %v3954_v36  ;;  %v3978_v47 = vsub.f32 %v366_v31, %v3956_v37  ;;  %v3981_v48 = vsub.f32 %v365_v32, %v3958_v38  ;;  %v485_v51 = vsub.f32 %v3927_v22, %v484_v35  ;;  %s2907_s25 = sshll.u32 %s347_s24, 4  ;;  %s3769_s16 = smov [#allocation2]   ;;  %s4766_s25 = int_to_ptr.vmem [resolvable:$true] %s2907_s25 }
  0x1e   : > { %3229 = vmatpush3.msra.mxu0 %v3954_v36  ;;  %v466_v50 = vand.u32 4294901760, %v465_v43  ;;  %v495_v52 = vsub.f32 %v3939_v25, %v494_v40  ;;  %v3992_v53 = vsub.f32 %v364_v39, %v3964_v42  ;;  %1214 = vperm.xlu1 %3689, %v1184_v41   ;;  %v476_v55 = vand.u32 4294901760, %v475_v44  ;;  %v2230_v41 = vld [vmem:[%s4826_s8 + $0x20] sm:$0xff]  ;;  %v2229_v43 = vld [vmem:[%s4826_s8 + $0x18] sm:$0xff]  ;;  %v2171_v44 = vld [vmem:[%s4825_s7 + $0x8] sm:$0xff]  ;;  %s3690_s12 = scalar_lea.vmem %s4766_s25, 256 }
  0x1f   : > { %3230 = vmatprep.subr.mxu0 %v3956_v37  ;;  %v3998_v56 = vand.u32 4294901760, %v568_v46  ;;  %v4001_v57 = vand.u32 4294901760, %v3978_v47  ;;  %v4004_v58 = vand.u32 4294901760, %v3981_v48  ;;  %v504_v61 = vand.u32 4294901760, %v3973_v45  ;;  %p3691_p12 = scmp.ne.s32.totalorder %s4766_s25, %s3690_s12  ;;  %s3694_s18 = sshll.u32 %s3769_s16, 4  ;;  %s3695_s18 = int_to_ptr.vmem [resolvable:$false] %s3694_s18 }
  0x20   : > { %3231 = vmatpush3.msra.mxu0 %v3956_v37  ;;  %3236 = vmatprep.mubr.f32.mxu0 %v466_v50  ;;  %v4011_v60 = vand.u32 4294901760, %v3992_v53  ;;  %v4015_v62 = vsub.f32 %v385_v17, %v3941_v26  ;;  %v4018_v63 = vsub.f32 %v388_v18, %v3943_v27  ;;  %v4026_v3 = vand.u32 4294901760, %v391_v49  ;;  %v2293_v50 = vld [vmem:[%s4822_s4 + $0x8] sm:$0xff]  ;;  %s3696_s23 = scalar_lea.vmem %s3695_s18, 512  ;;  %p3697_p1 = scmp.lt.s32.totalorder %s4766_s25, %s3695_s18 }
  0x21   : > { %3232 = vmatprep.subr.mxu0 %v3958_v38  ;;  %v570_v0 = vsub.f32 %v568_v46, %v3998_v56  ;;  %v577_v1 = vsub.f32 %v3978_v47, %v4001_v57  ;;  %v584_v2 = vsub.f32 %v3981_v48, %v4004_v58  ;;  %1275 = vperm.xlu0 %3688, %v1241_v54   ;;  %v486_v4 = vand.u32 4294901760, %v485_v51  ;;  %v1299_v51 = vld [vmem:[%s4820_s2] sm:$0xff]  ;;  %p3692_p13 = pnand %p3691_p12, %p3862_p4  ;;  %p3698_p2 = scmp.lt.s32.totalorder %s3696_s23, %s3690_s12 }
  0x22   : > { %3233 = vmatpush3.msra.mxu0 %v3958_v38  ;;  %v505_v5 = vsub.f32 %v3973_v45, %v504_v61  ;;  %v514_v6 = vand.u32 4294901760, %v4015_v62  ;;  %v524_v7 = vand.u32 4294901760, %v4018_v63  ;;  %1209 = vperm.xlu1 %3689, %v1183_v59   ;;  %v591_v13 = vsub.f32 %v3992_v53, %v4011_v60 }
  0x23   : > { %3234 = vmatprep.subr.mxu0 %v3964_v42  ;;  %v571_v8 = vand.u32 4294901760, %v570_v0  ;;  %v578_v9 = vand.u32 4294901760, %v577_v1  ;;  %v4038_v14 = vsub.f32 %v391_v49, %v4026_v3  ;;  %v496_v16 = vand.u32 4294901760, %v495_v52  ;;  %v2292_v49 = vld [vmem:[%s4822_s4] sm:$0xff]  ;;  %p3693_p0 = pneg %p3692_p13  ;;  %p3699_p3 = por %p3698_p2, %p3697_p1 }
  0x24   : > { %3235 = vmatpush3.msra.mxu0 %v3964_v42  ;;  %v585_v17 = vand.u32 4294901760, %v584_v2  ;;  %v515_v18 = vsub.f32 %v4015_v62, %v514_v6  ;;  %v506_v24 = vand.u32 4294901760, %v505_v5  ;;  %v525_v28 = vsub.f32 %v4018_v63, %v524_v7 }
  0x25   : > { %3237 = vmatmul.mubr.f32.vlgmr.msra.gmra.mxu0 %v476_v55  ;;  %3248 = vmatprep.subr.mxu1 %v571_v8  ;;  %v534_v19 = vand.u32 4294901760, %v4038_v14  ;;  %v592_v29 = vand.u32 4294901760, %v591_v13  ;;  %v1309_v52 = vsel %vm1307_vm1, %v1299_v51, 0  ;;  %p3700_p5 = pnand %p3699_p3, %p3693_p0 }
  0x26   : > { %3249 = vmatpush3.msra.mxu1 %v571_v8  ;;  %3239 = vmatprep.mubr.f32.mxu0 %v486_v4  ;;  %v516_v30 = vand.u32 4294901760, %v515_v18  ;;  %v526_v32 = vand.u32 4294901760, %v525_v28 }
  0x27   : > { %3250 = vmatprep.subr.mxu1 %v578_v9  ;;  %3268 = vmatprep.subr.mxu0 %v568_v46  ;;  %v535_v31 = vsub.f32 %v4038_v14, %v534_v19 }
  0x28   : > { %3251 = vmatpush3.msra.mxu1 %v578_v9  ;;  %3269 = vmatpush3.msra.mxu0 %v568_v46  ;;  %v2170_v46 = vld [vmem:[%s4825_s7] sm:$0xff] }
  0x29   : > { %3240 = vmatmul.mubr.f32.gmra.mxu0 %v496_v16  ;;  %3252 = vmatprep.subr.mxu1 %v585_v17  ;;  %v536_v39 = vand.u32 4294901760, %v535_v31 }
  0x2a   : > { %3253 = vmatpush3.msra.mxu1 %v585_v17  ;;  %3242 = vmatprep.mubr.f32.mxu0 %v506_v24 }
  0x2b   : > { %3254 = vmatprep.subr.mxu1 %v592_v29  ;;  %3270 = vmatprep.subr.mxu0 %v3978_v47 }
  0x2c   : > { %3255 = vmatpush3.msra.mxu1 %v592_v29  ;;  %3271 = vmatpush3.msra.mxu0 %v3978_v47  ;;  %v2227_v47 = vld [vmem:[%s4826_s8 + $0x8] sm:$0xff] }
  0x2d   : > { %3243 = vmatmul.mubr.f32.gmra.mxu0 %v516_v30  ;;  %3257 = vmatmul.mubr.f32.vlgmr.msra.gmra.mxu1 %v3904_v11 }
  0x2e   : > { %3288 = vmatprep.subr.mxu1 %v3954_v36  ;;  %3245 = vmatprep.mubr.f32.mxu0 %v526_v32 }
  0x2f   : > { %3289 = vmatpush3.msra.mxu1 %v3954_v36  ;;  %3259 = vmatprep.mubr.f32.mxu1 %v3906_v12 }
  0x30   : > { %3272 = vmatprep.subr.mxu0 %v3981_v48  ;;  %3290 = vmatprep.subr.mxu1 %v3956_v37 }
  0x31   : > { %3246 = vmatmul.mubr.f32.gmra.mxu0 %v536_v39  ;;  %3260 = vmatmul.mubr.f32.gmra.mxu1 %v3912_v15 }
  0x32   : > { %3273 = vmatpush3.msra.mxu0 %v3981_v48  ;;  %3291 = vmatpush3.msra.mxu1 %v3956_v37  ;;  %v2226_v48 = vld [vmem:[%s4826_s8] sm:$0xff] }
  0x33   : > { %3274 = vmatprep.subr.mxu0 %v3992_v53  ;;  %3262 = vmatprep.mubr.f32.mxu1 %v3929_v23 }
  0x34   : > { %3275 = vmatpush3.msra.mxu0 %v3992_v53  ;;  %3276 = vmatprep.mubr.f32.mxu0 %v3921_v20  ;;  %v1240_v20 = vld [vmem:[%s4824_s6 + $0x28] sm:$0xff]  ;;  %v4216_v53 = vand.u32 4294901760, %v1309_v52 }
  0x35   : > { %3263 = vmatmul.mubr.f32.gmra.mxu1 %v3941_v26  ;;  %3277 = vmatmul.mubr.f32.vlgmr.msra.gmra.mxu0 %v3924_v21  ;;  %v1182_v21 = vld [vmem:[%s4823_s5 + $0x18] sm:$0xff] }
  0x36   : > { %3292 = vmatprep.subr.mxu1 %v3958_v38  ;;  %3265 = vmatprep.mubr.f32.mxu1 %v3943_v27  ;;  %4840 = vst [vmem:[#allocation5_spill] sm:$0xff] %v4216_v53  ;;  %v4219_v54 = vsub.f32 %v1309_v52, %v4216_v53 }
  0x37   : > { %3293 = vmatpush3.msra.mxu1 %v3958_v38  ;;  %3279 = vmatprep.mubr.f32.mxu0 %v3927_v22  ;;  %v1239_v22 = vld [vmem:[%s4824_s6 + $0x20] sm:$0xff] }
  0x38   : > { %3294 = vmatprep.subr.mxu1 %v3964_v42  ;;  %3308 = vmatprep.subr.mxu0 %v3998_v56  ;;  %4841 = vst [vmem:[#allocation6_spill] sm:$0xff] %v4219_v54  ;;  %v4828_v55 = vand.u32 4294901760, %v4219_v54 }
  0x39   : > { %3266 = vmatmul.mubr.f32.gmra.mxu1 %v4026_v3  ;;  %3280 = vmatmul.mubr.f32.gmra.mxu0 %v3939_v25  ;;  %v1181_v25 = vld [vmem:[%s4823_s5 + $0x10] sm:$0xff] }
  0x3a   : > { %3295 = vmatpush3.msra.mxu1 %v3964_v42  ;;  %3282 = vmatprep.mubr.f32.mxu0 %v3973_v45  ;;  %v2228_v45 = vld [vmem:[%s4826_s8 + $0x10] sm:$0xff] }
  0x3b   : > { %3296 = vmatprep.mubr.f32.mxu1 %v464_v33  ;;  %3309 = vmatpush3.msra.mxu0 %v3998_v56  ;;  %v1238_v33 = vld [vmem:[%s4824_s6 + $0x18] sm:$0xff]  ;;  %v1408_v56 = vsub.f32 %v4219_v54, %v4828_v55 }
  0x3c   : > { %3328 = vmatprep.subr.mxu1 %v3954_v36  ;;  %3310 = vmatprep.subr.mxu0 %v4001_v57 }
  0x3d   : > { %3283 = vmatmul.mubr.f32.gmra.mxu0 %v4015_v62  ;;  %3297 = vmatmul.mubr.f32.vlgmr.msra.gmra.mxu1 %v474_v34  ;;  %v1236_v34 = vld [vmem:[%s4824_s6 + $0x8] sm:$0xff] }
  0x3e   : > { %3329 = vmatpush3.msra.mxu1 %v3954_v36  ;;  %3285 = vmatprep.mubr.f32.mxu0 %v4018_v63  ;;  %v2232_v36 = vld [vmem:[%s4826_s8 + $0x30] sm:$0xff] }
  0x3f   : > { %3299 = vmatprep.mubr.f32.mxu1 %v484_v35  ;;  %3311 = vmatpush3.msra.mxu0 %v4001_v57  ;;  %v2175_v35 = vld [vmem:[%s4825_s7 + $0x28] sm:$0xff]  ;;  %v1409_v57 = vand.u32 4294901760, %v1408_v56 }
  0x40   : > { %3312 = vmatprep.subr.mxu0 %v4004_v58  ;;  %3330 = vmatprep.subr.mxu1 %v3956_v37 }
  0x41   : > { %3286 = vmatmul.mubr.f32.gmra.mxu0 %v4038_v14  ;;  %3300 = vmatmul.mubr.f32.gmra.mxu1 %v494_v40  ;;  %v2173_v40 = vld [vmem:[%s4825_s7 + $0x18] sm:$0xff] }
  0x42   : > { %3313 = vmatpush3.msra.mxu0 %v4004_v58  ;;  %3331 = vmatpush3.msra.mxu1 %v3956_v37  ;;  %v2174_v37 = vld [vmem:[%s4825_s7 + $0x20] sm:$0xff] }
  0x43   : > { %3314 = vmatprep.subr.mxu0 %v4011_v60  ;;  %3302 = vmatprep.mubr.f32.mxu1 %v504_v61 }
  0x44   : > { %3315 = vmatpush3.msra.mxu0 %v4011_v60  ;;  %3316 = vmatprep.mubr.f32.mxu0 %v3902_v10 }
  0x45   : > { %3303 = vmatmul.mubr.f32.gmra.mxu1 %v514_v6  ;;  %3317 = vmatmul.mubr.f32.vlgmr.msra.gmra.mxu0 %v3904_v11 }
  0x46   : > { %3332 = vmatprep.subr.mxu1 %v3958_v38  ;;  %3305 = vmatprep.mubr.f32.mxu1 %v524_v7 }
  0x47   : > { %3333 = vmatpush3.msra.mxu1 %v3958_v38  ;;  %3319 = vmatprep.mubr.f32.mxu0 %v3906_v12  ;;  %v2231_v38 = vld [vmem:[%s4826_s8 + $0x28] sm:$0xff] }
  0x48   : > { %3334 = vmatprep.subr.mxu1 %v3964_v42  ;;  %1270 = vperm.xlu0 %3688, %v1240_v20  }
  0x49   : > { %3306 = vmatmul.mubr.f32.gmra.mxu1 %v534_v19  ;;  %3320 = vmatmul.mubr.f32.gmra.mxu0 %v3912_v15 }
  0x4a   : > { %3335 = vmatpush3.msra.mxu1 %v3964_v42  ;;  %3322 = vmatprep.mubr.f32.mxu0 %v3929_v23  ;;  %v2172_v42 = vld [vmem:[%s4825_s7 + $0x10] sm:$0xff] }
  0x4b   : > { %3336 = vmatprep.mubr.f32.mxu1 %v3902_v10  ;;  %1204 = vperm.xlu1 %3689, %v1182_v21   ;;  %v1180_v10 = vld [vmem:[%s4823_s5 + $0x8] sm:$0xff] }
  0x4c   : > { %1265 = vperm.xlu0 %3688, %v1239_v22  }
  0x4d   : > { %3323 = vmatmul.mubr.f32.gmra.mxu0 %v3941_v26  ;;  %3337 = vmatmul.mubr.f32.vlgmr.msra.gmra.mxu1 %v3904_v11  ;;  %v1237_v11 = vld [vmem:[%s4824_s6 + $0x10] sm:$0xff] }
  0x4e   : > { %3325 = vmatprep.mubr.f32.mxu0 %v3943_v27  ;;  %3339 = vmatprep.mubr.f32.mxu1 %v3906_v12  ;;  %v1179_v12 = vld [vmem:[%s4823_s5] sm:$0xff] }
  0x4f   : > { %1199 = vperm.xlu1 %3689, %v1181_v25  }
  0x50   : > { %1260 = vperm.xlu0 %3688, %v1238_v33  }
  0x51   : > { %3326 = vmatmul.mubr.f32.gmra.mxu0 %v4026_v3  ;;  %3340 = vmatmul.mubr.f32.gmra.mxu1 %v3912_v15  ;;  %v1235_v15 = vld [vmem:[%s4824_s6] sm:$0xff] }
  0x52   : > { %3342 = vmatprep.mubr.f32.mxu1 %v3929_v23  ;;  %v2177_v23 = vld [vmem:[%s4825_s7 + $0x38] sm:$0xff]  ;;  %3364 = vmatprep.mubr.f32.mxu0 %v1409_v57 }
  0x53   : > { %1194 = vperm.xlu1 %3689, %v1180_v10  }
  0x54   : > { %1255 = vperm.xlu0 %3688, %v1237_v11  }
  0x55   : > { %3343 = vmatmul.mubr.f32.gmra.mxu1 %v3941_v26  ;;  %v2176_v26 = vld [vmem:[%s4825_s7 + $0x30] sm:$0xff] }
  0x56   : > { %3345 = vmatprep.mubr.f32.mxu1 %v3943_v27  ;;  %v2233_v27 = vld [vmem:[%s4826_s8 + $0x38] sm:$0xff] }
  0x57   : > { %1189 = vperm.xlu1 %3689, %v1179_v12  }
  0x58   : > { %1250 = vperm.xlu0 %3688, %v1236_v34  }
  0x59   : > { %3346 = vmatmul.mubr.f32.gmra.mxu1 %v4026_v3 }
  0x5a   : > { %3392 = vmatprep.mubr.f32.mxu1 %v4216_v53 }
  0x5b   : > { %1245 = vperm.xlu1 %3689, %v1235_v15  }
  0x5c   : > { %2215 = vperm.xlu0 %3688, %v2177_v23  }
  0x5f   : > { %2210 = vperm.xlu1 %3689, %v2176_v26  }
  0x60   : > { %2271 = vperm.xlu0 %3688, %v2233_v27  }
  0x63   : > { %2205 = vperm.xlu1 %3689, %v2175_v35  }
  0x64   : > { %2266 = vperm.xlu0 %3688, %v2232_v36  }
  0x67   : > { %2200 = vperm.xlu1 %3689, %v2174_v37  }
  0x68   : > { %2261 = vperm.xlu0 %3688, %v2231_v38  }
  0x6b   : > { %2195 = vperm.xlu1 %3689, %v2173_v40  }
  0x6c   : > { %2256 = vperm.xlu0 %3688, %v2230_v41  }
  0x6f   : > { %2190 = vperm.xlu1 %3689, %v2172_v42  }
  0x70   : > { %2251 = vperm.xlu0 %3688, %v2229_v43  }
  0x73   : > { %2185 = vperm.xlu1 %3689, %v2171_v44  }
  0x74   : > { %2246 = vperm.xlu0 %3688, %v2228_v45  }
  0x77   : > { %2180 = vperm.xlu1 %3689, %v2170_v46  }
  0x78   : > { %2241 = vperm.xlu0 %3688, %v2227_v47  }
  0x7b   : > { %2236 = vperm.xlu1 %3689, %v2226_v48  }
  0x7c   : > { %2296 = vperm.xlu0 %3688, %v2292_v49  }
  0x7f   : > { %2301 = vperm.xlu1 %3689, %v2293_v50  }
  0x93   : > { %v4228_v6 = vpop.permute.xlu0 %1224 }
  0x94   : > { %v4230_v9 = vpop.permute.xlu1 %1280 }
  0x97   : > { %v4232_v18 = vpop.permute.xlu0 %1219 }
  0x99   : > { %v4234_v28 = vpop.permute.xlu1 %1214 }
  0x9c   : > { %v4236_v39 = vpop.permute.xlu0 %1275 }
  0x9d   : > { %4842 = vst [vmem:[#allocation7_spill] sm:$0xff] %v4236_v39  ;;  %v4238_v22 = vpop.permute.xlu1 %1209 }
  0xc3   : > { %v4240_v12 = vpop.permute.xlu0 %1270 }
  0xc6   : > { %v1205_v23 = vpop.permute.xlu1 %1204 }
  0xc7   : > { %v4242_v38 = vpop.permute.xlu0 %1265 }
  0xca   : > { %v1200_v44 = vpop.permute.xlu1 %1199 }
  0xcb   : > { %v1261_v53 = vpop.permute.xlu0 %1260 }
  0xe5   : > { %v3238_v58 = vpop.f32.mrf.mxu0 }
  0xe7   : > { %v468_v59 = vpop.f32.mrf.mxu0 }
  0xe9   : > { %v3241_v60 = vpop.f32.mrf.mxu0 }
  0xeb   : > { %v488_v61 = vpop.f32.mrf.mxu0 }
  0xed   : > { %v3244_v62 = vpop.f32.mrf.mxu0  ;;  %v3258_v63 = vpop.f32.mrf.mxu1 }
  0xee   : > { %v636_v47 = vadd.f32 %v3258_v63, %v3238_v58  ;;  %v1195_v63 = vpop.permute.xlu1 %1194 }
  0xef   : > { %v508_v0 = vpop.f32.mrf.mxu0  ;;  %v629_v1 = vpop.f32.mrf.mxu1 }
  0xf0   : > { %v630_v56 = vadd.f32 %v629_v1, %v468_v59 }
  0xf1   : > { %v3247_v2 = vpop.f32.mrf.mxu0  ;;  %v3261_v3 = vpop.f32.mrf.mxu1 }
  0xf2   : > { %v648_v35 = vadd.f32 %v3261_v3, %v3241_v60 }
  0xf3   : > { %v4226_v4 = vpop.f32.mrf.mxu0  ;;  %v641_v5 = vpop.f32.mrf.mxu1 }
  0xf4   : > { %v642_v41 = vadd.f32 %v641_v5, %v488_v61 }
  0xf5   : > { %v3264_v7 = vpop.f32.mrf.mxu1  ;;  %v3278_v8 = vpop.f32.mrf.mxu0 }
  0xf6   : > { %v660_v45 = vadd.f32 %v3264_v7, %v3244_v62  ;;  %v759_v57 = vadd.f32 %v3278_v8, %v636_v47 }
  0xf7   : > { %v653_v13 = vpop.f32.mrf.mxu1  ;;  %v751_v14 = vpop.f32.mrf.mxu0 }
  0xf8   : > { %v654_v60 = vadd.f32 %v653_v13, %v508_v0  ;;  %v752_v5 = vadd.f32 %v751_v14, %v630_v56 }
  0xf9   : > { %v3267_v16 = vpop.f32.mrf.mxu1  ;;  %v3281_v17 = vpop.f32.mrf.mxu0 }
  0xfa   : > { %v773_v40 = vadd.f32 %v3281_v17, %v648_v35  ;;  %v672_v54 = vadd.f32 %v3267_v16, %v3247_v2 }
  0xfb   : > { %v665_v19 = vpop.f32.mrf.mxu1  ;;  %v765_v24 = vpop.f32.mrf.mxu0 }
  0xfc   : > { %v766_v48 = vadd.f32 %v765_v24, %v642_v41  ;;  %v666_v24 = vadd.f32 %v665_v19, %v4226_v4  ;;  %v1300_v19 = vld [vmem:[%s4820_s2 + $0x8] sm:$0xff] }
  0xfd   : > { %v3284_v29 = vpop.f32.mrf.mxu0  ;;  %v3298_v30 = vpop.f32.mrf.mxu1 }
  0xfe   : > { %v787_v51 = vadd.f32 %v3284_v29, %v660_v45  ;;  %v886_v35 = vadd.f32 %v3298_v30, %v759_v57 }
  0xff   : > { %v779_v31 = vpop.f32.mrf.mxu0  ;;  %v877_v32 = vpop.f32.mrf.mxu1 }
 0x100   : > { %v780_v39 = vadd.f32 %v779_v31, %v654_v60  ;;  %v878_v59 = vadd.f32 %v877_v32, %v752_v5 }
 0x101   : > { %v3287_v20 = vpop.f32.mrf.mxu0  ;;  %v3301_v21 = vpop.f32.mrf.mxu1 }
 0x102   : > { %v902_v46 = vadd.f32 %v3301_v21, %v773_v40  ;;  %v801_v29 = vadd.f32 %v3287_v20, %v672_v54 }
 0x103   : > { %v793_v25 = vpop.f32.mrf.mxu0  ;;  %v893_v33 = vpop.f32.mrf.mxu1 }
 0x104   : > { %v894_v3 = vadd.f32 %v893_v33, %v766_v48  ;;  %v794_v33 = vadd.f32 %v793_v25, %v666_v24  ;;  %v1190_v25 = vpop.permute.xlu1 %1189 }
 0x105   : > { %v3304_v10 = vpop.f32.mrf.mxu1  ;;  %v3318_v11 = vpop.f32.mrf.mxu0 }
 0x106   : > { %v918_v17 = vadd.f32 %v3304_v10, %v787_v51  ;;  %v1023_v1 = vadd.f32 %v3318_v11, %v886_v35 }
 0x107   : > { %v909_v34 = vpop.f32.mrf.mxu1  ;;  %v1016_v15 = vpop.f32.mrf.mxu0 }
 0x108   : > { %v910_v0 = vadd.f32 %v909_v34, %v780_v39  ;;  %v1017_v14 = vadd.f32 %v1016_v15, %v878_v59 }
 0x109   : > { %v3307_v26 = vpop.f32.mrf.mxu1  ;;  %v3321_v27 = vpop.f32.mrf.mxu0 }
 0x10a   : > { %v1035_v52 = vadd.f32 %v3321_v27, %v902_v46  ;;  %v934_v2 = vadd.f32 %v3307_v26, %v801_v29  ;;  %v1304_v29 = vld [vmem:[%s4820_s2 + $0x28] sm:$0xff] }
 0x10b   : > { %v925_v36 = vpop.f32.mrf.mxu1  ;;  %v1028_v37 = vpop.f32.mrf.mxu0 }
 0x10c   : > { %v1029_v62 = vadd.f32 %v1028_v37, %v894_v3  ;;  %v1256_v37 = vpop.permute.xlu0 %1255  ;;  %v926_v40 = vadd.f32 %v925_v36, %v794_v33 }
 0x10d   : > { %v3324_v42 = vpop.f32.mrf.mxu0  ;;  %v3338_v43 = vpop.f32.mrf.mxu1 }
 0x10e   : > { %v1047_v21 = vadd.f32 %v3324_v42, %v918_v17  ;;  %v1140_v30 = vadd.f32 %v3338_v43, %v1023_v1  ;;  %v1312_v43 = vsel %vm1307_vm1, %v1300_v19, 0  ;;  %v4843_v17 = vld [vmem:[#allocation7_spill] sm:$0xff] }
 0x10f   : > { %v1040_v49 = vpop.f32.mrf.mxu0  ;;  %v1133_v50 = vpop.f32.mrf.mxu1  ;;  %v4264_v57 = vand.u32 4294901760, %v1312_v43 }
 0x110   : > { %v1041_v31 = vadd.f32 %v1040_v49, %v910_v0  ;;  %v1134_v32 = vadd.f32 %v1133_v50, %v1017_v14  ;;  %v1228_v26 = vmul.f32 %v1195_v63, %v1140_v30  ;;  %v1324_v14 = vsel %vm1307_vm1, %v1304_v29, 0 }
 0x111   : > { %v3341_v55 = vpop.f32.mrf.mxu1  ;;  %v3327_v7 = vpop.f32.mrf.mxu0  ;;  %v4285_v59 = vsub.f32 %v1312_v43, %v4264_v57 }
 0x112   : > { %v1152_v61 = vadd.f32 %v3341_v55, %v1035_v52  ;;  %v1059_v41 = vadd.f32 %v3327_v7, %v934_v2  ;;  %v1227_v47 = vmul.f32 %v1190_v25, %v1134_v32 }
 0x113   : > { %v1145_v58 = vpop.f32.mrf.mxu1  ;;  %v1052_v10 = vpop.f32.mrf.mxu0 }
 0x114   : > { %v1146_v8 = vadd.f32 %v1145_v58, %v1029_v62  ;;  %v1230_v16 = vmul.f32 %v1205_v23, %v1152_v61  ;;  %v1053_v34 = vadd.f32 %v1052_v10, %v926_v40  ;;  %v1417_v40 = vand.u32 4294901760, %v4285_v59 }
 0x115   : > { %v3344_v13 = vpop.f32.mrf.mxu1 }
 0x116   : > { %v1164_v55 = vadd.f32 %v3344_v13, %v1047_v21  ;;  %v1229_v4 = vmul.f32 %v1200_v44, %v1146_v8  ;;  %v1286_v11 = vadd.f32 %v1261_v53, %v1230_v16  ;;  %v1301_v53 = vld [vmem:[%s4820_s2 + $0x10] sm:$0xff] }
 0x117   : > { %v1157_v27 = vpop.f32.mrf.mxu1  ;;  %v1315_v5 = vsel %vm1307_vm1, %v1301_v53, 0 }
 0x118   : > { %v1232_v54 = vmul.f32 %v4234_v28, %v1164_v55  ;;  %v1158_v39 = vadd.f32 %v1157_v27, %v1041_v31  ;;  %v1285_v28 = vadd.f32 %v1256_v37, %v1229_v4  ;;  %v1294_v49 = vmax.f32 %v1286_v11, 0.0 }
 0x119   : > { %v3347_v20 = vpop.f32.mrf.mxu1  ;;  %v4287_v1 = vand.u32 4294901760, %v1315_v5 }
 0x11a   : > { %v1288_v15 = vadd.f32 %v4240_v12, %v1232_v54  ;;  %v1176_v23 = vadd.f32 %v3347_v20, %v1059_v41  ;;  %v1231_v36 = vmul.f32 %v4238_v22, %v1158_v39  ;;  %v1251_v12 = vpop.permute.xlu0 %1250  ;;  %v1293_v60 = vmax.f32 %v1285_v28, 0.0  ;;  %v1305_v20 = vld [vmem:[%s4820_s2 + $0x30] sm:$0xff] }
 0x11b   : > { %v1169_v42 = vpop.f32.mrf.mxu1  ;;  %v1284_v52 = vadd.f32 %v1251_v12, %v1228_v26  ;;  %v4274_v7 = vand.u32 4294901760, %v1294_v49  ;;  %v4323_v41 = vsub.f32 %v1315_v5, %v4287_v1  ;;  %v1418_v28 = vsub.f32 %v4285_v59, %v1417_v40 }
 0x11c   : > { %v1296_v44 = vmax.f32 %v1288_v15, 0.0  ;;  %v1234_v45 = vmul.f32 %v4228_v6, %v1176_v23  ;;  %v1170_v46 = vadd.f32 %v1169_v42, %v1053_v34  ;;  %v1287_v48 = vadd.f32 %v4242_v38, %v1231_v36  ;;  %v1302_v6 = vld [vmem:[%s4820_s2 + $0x18] sm:$0xff]  ;;  %v1246_v38 = vpop.permute.xlu1 %1245 }
 0x11d   : > { %v1318_v62 = vsel %vm1307_vm1, %v1302_v6, 0  ;;  %v1292_v21 = vmax.f32 %v1284_v52, 0.0  ;;  %v4290_v8 = vand.u32 4294901760, %v1293_v60  ;;  %v4306_v30 = vsub.f32 %v1294_v49, %v4274_v7  ;;  %v1306_v42 = vld [vmem:[%s4820_s2 + $0x38] sm:$0xff] }
 0x11e   : > { %v4257_v50 = vand.u32 4294901760, %v1296_v44  ;;  %v1290_v22 = vadd.f32 %v4230_v9, %v1234_v45  ;;  %v1233_v51 = vmul.f32 %v4232_v18, %v1170_v46  ;;  %v1295_v56 = vmax.f32 %v1287_v48, 0.0  ;;  %v1303_v9 = vld [vmem:[%s4820_s2 + $0x20] sm:$0xff] }
 0x11f   : > { %v1283_v18 = vadd.f32 %v1246_v38, %v1227_v47  ;;  %v1321_v0 = vsel %vm1307_vm1, %v1303_v9, 0  ;;  %v4302_v55 = vand.u32 4294901760, %v1318_v62  ;;  %v4318_v37 = vand.u32 4294901760, %v1292_v21 }
 0x120   : > { %v1298_v3 = vmax.f32 %v1290_v22, 0.0  ;;  %v1289_v61 = vadd.f32 %v4843_v17, %v1233_v51  ;;  %v4271_v35 = vand.u32 4294901760, %v1295_v56  ;;  %v4277_v58 = vsub.f32 %v1296_v44, %v4257_v50 }
 0x121   : > { %v1291_v16 = vmax.f32 %v1283_v18, 0.0  ;;  %v4325_v4 = vand.u32 4294901760, %v1321_v0  ;;  %v4328_v54 = vsub.f32 %v1293_v60, %v4290_v8  ;;  %v4346_v11 = vsub.f32 %v1318_v62, %v4302_v55 }
 0x122   : > { %v4279_v63 = vand.u32 4294901760, %v1298_v3  ;;  %v1297_v24 = vmax.f32 %v1289_v61, 0.0  ;;  %v4293_v13 = vsub.f32 %v1295_v56, %v4271_v35  ;;  %v4316_v27 = vand.u32 4294901760, %v4277_v58 }
 0x123   : > { %v4342_v25 = vand.u32 4294901760, %v1291_v16  ;;  %v4348_v34 = vand.u32 4294901760, %v1324_v14  ;;  %v4356_v36 = vand.u32 4294901760, %v4306_v30  ;;  %v4362_v43 = vsub.f32 %v1292_v21, %v4318_v37 }
 0x124   : > { %v4296_v33 = vsub.f32 %v1298_v3, %v4279_v63  ;;  %v4298_v2 = vand.u32 4294901760, %v1297_v24  ;;  %3348 = vmatprep.subr.mxu0 %v4279_v63  ;;  %v4337_v39 = vand.u32 4294901760, %v4293_v13  ;;  %v1519_v26 = vsub.f32 %v4277_v58, %v4316_v27 }
 0x125   : > { %3349 = vmatpush3.msra.mxu0 %v4279_v63  ;;  %v1427_v44 = vand.u32 4294901760, %v4323_v41  ;;  %v1327_v45 = vsel %vm1307_vm1, %v1305_v20, 0  ;;  %v4374_v48 = vand.u32 4294901760, %v4328_v54  ;;  %v4377_v53 = vsub.f32 %v1321_v0, %v4325_v4 }
 0x126   : > { %v4309_v31 = vsub.f32 %v1297_v24, %v4298_v2  ;;  %3350 = vmatprep.subr.mxu0 %v4298_v2  ;;  %v4313_v10 = vand.u32 4294901760, %v4296_v33  ;;  %v1526_v47 = vsub.f32 %v4293_v13, %v4337_v39  ;;  %v4380_v12 = vsub.f32 %v1291_v16, %v4342_v25 }
 0x127   : > { %3351 = vmatpush3.msra.mxu0 %v4298_v2  ;;  %v1437_v49 = vand.u32 4294901760, %v4346_v11  ;;  %v1330_v22 = vsel %vm1307_vm1, %v1306_v42, 0  ;;  %v1520_v51 = vand.u32 4294901760, %v1519_v26  ;;  %v1533_v6 = vsub.f32 %v4306_v30, %v4356_v36 }
 0x128   : > { %3352 = vmatprep.subr.mxu0 %v4257_v50  ;;  %v1505_v19 = vsub.f32 %v4296_v33, %v4313_v10  ;;  %v4334_v32 = vand.u32 4294901760, %v4309_v31  ;;  %v4389_v52 = vsub.f32 %v1324_v14, %v4348_v34  ;;  %v4391_v56 = vand.u32 4294901760, %v1327_v45 }
 0x129   : > { %3353 = vmatpush3.msra.mxu0 %v4257_v50  ;;  %v1419_v38 = vand.u32 4294901760, %v1418_v28  ;;  %v1428_v60 = vsub.f32 %v4323_v41, %v1427_v44  ;;  %v4398_v3 = vand.u32 4294901760, %v4362_v43  ;;  %v1527_v17 = vand.u32 4294901760, %v1526_v47 }
 0x12a   : > { %3354 = vmatprep.subr.mxu0 %v4271_v35  ;;  %v1506_v15 = vand.u32 4294901760, %v1505_v19  ;;  %v1512_v23 = vsub.f32 %v4309_v31, %v4334_v32  ;;  %v1540_v61 = vsub.f32 %v4328_v54, %v4374_v48  ;;  %v1447_v5 = vand.u32 4294901760, %v4377_v53 }
 0x12b   : > { %3355 = vmatpush3.msra.mxu0 %v4271_v35  ;;  %v4404_v9 = vand.u32 4294901760, %v1330_v22  ;;  %v1438_v18 = vsub.f32 %v4346_v11, %v1437_v49  ;;  %v4411_v62 = vand.u32 4294901760, %v4380_v12  ;;  %v1534_v24 = vand.u32 4294901760, %v1533_v6 }
 0x12c   : > { %3356 = vmatprep.subr.mxu0 %v4274_v7  ;;  %3376 = vmatprep.subr.mxu1 %v1506_v15  ;;  %v1513_v46 = vand.u32 4294901760, %v1512_v23  ;;  %v1457_v29 = vand.u32 4294901760, %v4389_v52  ;;  %v4416_v21 = vsub.f32 %v1327_v45, %v4391_v56  ;;  %v1429_v0 = vand.u32 4294901760, %v1428_v60 }
 0x12d   : > { %3357 = vmatpush3.msra.mxu0 %v4274_v7  ;;  %3377 = vmatpush3.msra.mxu1 %v1506_v15  ;;  %v1547_v16 = vsub.f32 %v4362_v43, %v4398_v3  ;;  %v1541_v14 = vand.u32 4294901760, %v1540_v61  ;;  %v1448_v19 = vsub.f32 %v4377_v53, %v1447_v5  ;;  %v4425_v20 = vsub.f32 %v1330_v22, %v4404_v9 }
 0x12e   : > { %3358 = vmatprep.subr.mxu0 %v4290_v8  ;;  %3378 = vmatprep.subr.mxu1 %v1513_v46  ;;  %v1439_v15 = vand.u32 4294901760, %v1438_v18  ;;  %v1554_v23 = vsub.f32 %v4380_v12, %v4411_v62  ;;  %v1458_v26 = vsub.f32 %v4389_v52, %v1457_v29  ;;  %v1467_v42 = vand.u32 4294901760, %v4416_v21 }
 0x12f   : > { %3359 = vmatpush3.msra.mxu0 %v4290_v8  ;;  %3379 = vmatpush3.msra.mxu1 %v1513_v46  ;;  %v1548_v28 = vand.u32 4294901760, %v1547_v16  ;;  %v1449_v45 = vand.u32 4294901760, %v1448_v19  ;;  %v1477_v46 = vand.u32 4294901760, %v4425_v20 }
 0x130   : > { %3360 = vmatprep.subr.mxu0 %v4318_v37  ;;  %3380 = vmatprep.subr.mxu1 %v1520_v51  ;;  %v1459_v47 = vand.u32 4294901760, %v1458_v26  ;;  %v1468_v22 = vsub.f32 %v4416_v21, %v1467_v42 }
 0x131   : > { %3361 = vmatpush3.msra.mxu0 %v4318_v37  ;;  %3381 = vmatpush3.msra.mxu1 %v1520_v51 }
 0x132   : > { %3362 = vmatprep.subr.mxu0 %v4342_v25  ;;  %3382 = vmatprep.subr.mxu1 %v1527_v17  ;;  %v1469_v51 = vand.u32 4294901760, %v1468_v22 }
 0x133   : > { %3363 = vmatpush3.msra.mxu0 %v4342_v25  ;;  %3383 = vmatpush3.msra.mxu1 %v1527_v17 }
 0x134   : > { %3365 = vmatmul.mubr.f32.vlgmr.msra.gmra.mxu0 %v1419_v38  ;;  %3384 = vmatprep.subr.mxu1 %v1534_v24 }
 0x135   : > { %3404 = vmatprep.subr.mxu0 %v4296_v33  ;;  %3385 = vmatpush3.msra.mxu1 %v1534_v24 }
 0x136   : > { %3405 = vmatpush3.msra.mxu0 %v4296_v33  ;;  %3386 = vmatprep.subr.mxu1 %v1541_v14  ;;  %v1555_v33 = vand.u32 4294901760, %v1554_v23 }
 0x137   : > { %3406 = vmatprep.subr.mxu0 %v4309_v31  ;;  %3367 = vmatprep.mubr.f32.mxu0 %v1429_v0 }
 0x138   : > { %3387 = vmatpush3.msra.mxu1 %v1541_v14  ;;  %3407 = vmatpush3.msra.mxu0 %v4309_v31  ;;  %v1478_v31 = vsub.f32 %v4425_v20, %v1477_v46 }
 0x139   : > { %3368 = vmatmul.mubr.f32.gmra.mxu0 %v1439_v15  ;;  %3388 = vmatprep.subr.mxu1 %v1548_v28 }
 0x13a   : > { %3408 = vmatprep.subr.mxu0 %v4277_v58  ;;  %3389 = vmatpush3.msra.mxu1 %v1548_v28 }
 0x13b   : > { %3409 = vmatpush3.msra.mxu0 %v4277_v58  ;;  %3390 = vmatprep.subr.mxu1 %v1555_v33  ;;  %v1479_v58 = vand.u32 4294901760, %v1478_v31 }
 0x13c   : > { %3410 = vmatprep.subr.mxu0 %v4293_v13  ;;  %3370 = vmatprep.mubr.f32.mxu0 %v1449_v45 }
 0x13d   : > { %3391 = vmatpush3.msra.mxu1 %v1555_v33  ;;  %3411 = vmatpush3.msra.mxu0 %v4293_v13  ;;  %v4844_v13 = vld [vmem:[#allocation6_spill] sm:$0xff] }
 0x13e   : > { %3371 = vmatmul.mubr.f32.gmra.mxu0 %v1459_v47  ;;  %3393 = vmatmul.mubr.f32.vlgmr.msra.gmra.mxu1 %v4264_v57 }
 0x13f   : > { %3412 = vmatprep.subr.mxu0 %v4306_v30  ;;  %3432 = vmatprep.subr.mxu1 %v4279_v63 }
 0x140   : > { %3413 = vmatpush3.msra.mxu0 %v4306_v30  ;;  %3433 = vmatpush3.msra.mxu1 %v4279_v63  ;;  %v4845_v30 = vand.u32 4294901760, %v4844_v13 }
 0x141   : > { %3414 = vmatprep.subr.mxu0 %v4328_v54  ;;  %3434 = vmatprep.subr.mxu1 %v4298_v2 }
 0x142   : > { %3373 = vmatprep.mubr.f32.mxu0 %v1469_v51  ;;  %3395 = vmatprep.mubr.f32.mxu1 %v4287_v1 }
 0x143   : > { %3415 = vmatpush3.msra.mxu0 %v4328_v54  ;;  %3435 = vmatpush3.msra.mxu1 %v4298_v2 }
 0x144   : > { %3374 = vmatmul.mubr.f32.gmra.mxu0 %v1479_v58  ;;  %3396 = vmatmul.mubr.f32.gmra.mxu1 %v4302_v55 }
 0x145   : > { %3416 = vmatprep.subr.mxu0 %v4362_v43  ;;  %3436 = vmatprep.subr.mxu1 %v4257_v50 }
 0x146   : > { %3417 = vmatpush3.msra.mxu0 %v4362_v43  ;;  %3437 = vmatpush3.msra.mxu1 %v4257_v50 }
 0x147   : > { %3418 = vmatprep.subr.mxu0 %v4380_v12  ;;  %3438 = vmatprep.subr.mxu1 %v4271_v35 }
 0x148   : > { %3398 = vmatprep.mubr.f32.mxu1 %v4325_v4  ;;  %3419 = vmatpush3.msra.mxu0 %v4380_v12  ;;  %v4569_v12 = vpop.permute.xlu1 %2210 }
 0x149   : > { %3420 = vmatprep.mubr.f32.mxu0 %v4844_v13  ;;  %3439 = vmatpush3.msra.mxu1 %v4271_v35 }
 0x14a   : > { %3399 = vmatmul.mubr.f32.gmra.mxu1 %v4348_v34  ;;  %3421 = vmatmul.mubr.f32.vlgmr.msra.gmra.mxu0 %v4285_v59 }
 0x14b   : > { %3440 = vmatprep.subr.mxu1 %v4274_v7  ;;  %3460 = vmatprep.subr.mxu0 %v4313_v10 }
 0x14c   : > { %3441 = vmatpush3.msra.mxu1 %v4274_v7  ;;  %3461 = vmatpush3.msra.mxu0 %v4313_v10  ;;  %v4573_v60 = vpop.permute.xlu1 %2205 }
 0x14d   : > { %3442 = vmatprep.subr.mxu1 %v4290_v8  ;;  %3462 = vmatprep.subr.mxu0 %v4334_v32 }
 0x14e   : > { %3401 = vmatprep.mubr.f32.mxu1 %v4391_v56  ;;  %3423 = vmatprep.mubr.f32.mxu0 %v4323_v41 }
 0x14f   : > { %3443 = vmatpush3.msra.mxu1 %v4290_v8  ;;  %3463 = vmatpush3.msra.mxu0 %v4334_v32 }
 0x150   : > { %3402 = vmatmul.mubr.f32.gmra.mxu1 %v4404_v9  ;;  %3424 = vmatmul.mubr.f32.gmra.mxu0 %v4346_v11  ;;  %v4577_v18 = vpop.permute.xlu1 %2200 }
 0x151   : > { %3444 = vmatprep.subr.mxu1 %v4318_v37  ;;  %3464 = vmatprep.subr.mxu0 %v4316_v27 }
 0x152   : > { %3445 = vmatpush3.msra.mxu1 %v4318_v37  ;;  %3465 = vmatpush3.msra.mxu0 %v4316_v27 }
 0x153   : > { %3446 = vmatprep.subr.mxu1 %v4342_v25  ;;  %3466 = vmatprep.subr.mxu0 %v4337_v39 }
 0x154   : > { %3426 = vmatprep.mubr.f32.mxu0 %v4377_v53  ;;  %3447 = vmatpush3.msra.mxu1 %v4342_v25  ;;  %v2196_v16 = vpop.permute.xlu1 %2195 }
 0x155   : > { %3448 = vmatprep.mubr.f32.mxu1 %v4845_v30  ;;  %3467 = vmatpush3.msra.mxu0 %v4337_v39 }
 0x156   : > { %3427 = vmatmul.mubr.f32.gmra.mxu0 %v4389_v52  ;;  %3449 = vmatmul.mubr.f32.vlgmr.msra.gmra.mxu1 %v1417_v40 }
 0x157   : > { %3468 = vmatprep.subr.mxu0 %v4356_v36  ;;  %3488 = vmatprep.subr.mxu1 %v4279_v63 }
 0x158   : > { %3469 = vmatpush3.msra.mxu0 %v4356_v36  ;;  %3489 = vmatpush3.msra.mxu1 %v4279_v63  ;;  %v4846_v63 = vld [vmem:[#allocation5_spill] sm:$0xff]  ;;  %v2191_v45 = vpop.permute.xlu1 %2190 }
 0x159   : > { %3470 = vmatprep.subr.mxu0 %v4374_v48  ;;  %3490 = vmatprep.subr.mxu1 %v4298_v2 }
 0x15a   : > { %3429 = vmatprep.mubr.f32.mxu0 %v4416_v21  ;;  %3451 = vmatprep.mubr.f32.mxu1 %v1427_v44  ;;  %v4567_v44 = vpop.permute.xlu0 %2215 }
 0x15b   : > { %3471 = vmatpush3.msra.mxu0 %v4374_v48  ;;  %3491 = vmatpush3.msra.mxu1 %v4298_v2 }
 0x15c   : > { %3430 = vmatmul.mubr.f32.gmra.mxu0 %v4425_v20  ;;  %3452 = vmatmul.mubr.f32.gmra.mxu1 %v1437_v49 }
 0x15d   : > { %3472 = vmatprep.subr.mxu0 %v4398_v3  ;;  %3492 = vmatprep.subr.mxu1 %v4257_v50 }
 0x15e   : > { %3473 = vmatpush3.msra.mxu0 %v4398_v3  ;;  %3493 = vmatpush3.msra.mxu1 %v4257_v50  ;;  %v2290_v50 = vld [vmem:[%s4821_s3] sm:$0xff]  ;;  %v4571_v52 = vpop.permute.xlu0 %2271 }
 0x15f   : > { %3474 = vmatprep.subr.mxu0 %v4411_v62  ;;  %3494 = vmatprep.subr.mxu1 %v4271_v35 }
 0x160   : > { %3454 = vmatprep.mubr.f32.mxu1 %v1447_v5  ;;  %3475 = vmatpush3.msra.mxu0 %v4411_v62 }
 0x161   : > { %3476 = vmatprep.mubr.f32.mxu0 %v4846_v63  ;;  %3495 = vmatpush3.msra.mxu1 %v4271_v35 }
 0x162   : > { %3455 = vmatmul.mubr.f32.gmra.mxu1 %v1457_v29  ;;  %3477 = vmatmul.mubr.f32.vlgmr.msra.gmra.mxu0 %v4264_v57  ;;  %v4575_v61 = vpop.permute.xlu0 %2266 }
 0x163   : > { %3496 = vmatprep.subr.mxu1 %v4274_v7  ;;  %3457 = vmatprep.mubr.f32.mxu1 %v1467_v42  ;;  %4849 = vst [vmem:[#allocation5_spill] sm:$0xff] %v4575_v61 }
 0x164   : > { %3497 = vmatpush3.msra.mxu1 %v4274_v7  ;;  %3479 = vmatprep.mubr.f32.mxu0 %v4287_v1 }
 0x165   : > { %3498 = vmatprep.subr.mxu1 %v4290_v8 }
 0x166   : > { %3499 = vmatpush3.msra.mxu1 %v4290_v8  ;;  %3480 = vmatmul.mubr.f32.gmra.mxu0 %v4302_v55  ;;  %v4579_v29 = vpop.permute.xlu0 %2261 }
 0x167   : > { %3458 = vmatmul.mubr.f32.gmra.mxu1 %v1477_v46  ;;  %3500 = vmatprep.subr.mxu1 %v4318_v37 }
 0x168   : > { %3501 = vmatpush3.msra.mxu1 %v4318_v37  ;;  %3482 = vmatprep.mubr.f32.mxu0 %v4325_v4 }
 0x169   : > { %3502 = vmatprep.subr.mxu1 %v4342_v25  ;;  %3504 = vmatprep.mubr.f32.mxu1 %v4846_v63 }
 0x16a   : > { %3503 = vmatpush3.msra.mxu1 %v4342_v25  ;;  %3483 = vmatmul.mubr.f32.gmra.mxu0 %v4348_v34  ;;  %v4581_v23 = vpop.permute.xlu0 %2256 }
 0x16b   : > { %3505 = vmatmul.mubr.f32.vlgmr.msra.gmra.mxu1 %v4264_v57  ;;  %3485 = vmatprep.mubr.f32.mxu0 %v4391_v56  ;;  %v2305_v57 = vsel %vm1307_vm1, %v2290_v50, 0 }
 0x16c   : > { %3507 = vmatprep.mubr.f32.mxu1 %v4287_v1  ;;  %v4555_v35 = vand.u32 4294901760, %v2305_v57 }
 0x16e   : > { %3486 = vmatmul.mubr.f32.gmra.mxu0 %v4404_v9  ;;  %4847 = vst [vmem:[#allocation7_spill] sm:$0xff] %v4555_v35  ;;  %v4558_v7 = vsub.f32 %v2305_v57, %v4555_v35 }
 0x16f   : > { %3508 = vmatmul.mubr.f32.gmra.mxu1 %v4302_v55 }
 0x170   : > { %3510 = vmatprep.mubr.f32.mxu1 %v4325_v4  ;;  %4848 = vst [vmem:[#allocation6_spill] sm:$0xff] %v4558_v7  ;;  %v4833_v59 = vand.u32 4294901760, %v4558_v7 }
 0x172   : > { %v2386_v1 = vsub.f32 %v4558_v7, %v4833_v59 }
 0x173   : > { %3511 = vmatmul.mubr.f32.gmra.mxu1 %v4348_v34 }
 0x174   : > { %3513 = vmatprep.mubr.f32.mxu1 %v4391_v56  ;;  %v2387_v8 = vand.u32 4294901760, %v2386_v1  ;;  %v2252_v1 = vpop.permute.xlu0 %2251 }
 0x176   : > { %3532 = vmatprep.mubr.f32.mxu0 %v2387_v8 }
 0x177   : > { %3514 = vmatmul.mubr.f32.gmra.mxu1 %v4404_v9 }
 0x178   : > { %3551 = vmatprep.mubr.f32.mxu1 %v4555_v35 }
 0x1f4   : > { %v3366_v2 = vpop.f32.mrf.mxu0 }
 0x1f6   : > { %v1411_v55 = vpop.f32.mrf.mxu0 }
 0x1f9   : > { %v3369_v10 = vpop.f32.mrf.mxu0 }
 0x1fb   : > { %v1431_v27 = vpop.f32.mrf.mxu0 }
 0x1fe   : > { %v3372_v37 = vpop.f32.mrf.mxu0  ;;  %v3394_v40 = vpop.f32.mrf.mxu1 }
 0x1ff   : > { %v1599_v22 = vadd.f32 %v3394_v40, %v3366_v2 }
 0x200   : > { %v1451_v41 = vpop.f32.mrf.mxu0  ;;  %v1592_v4 = vpop.f32.mrf.mxu1 }
 0x201   : > { %v1593_v13 = vadd.f32 %v1592_v4, %v1411_v55 }
 0x204   : > { %v3375_v54 = vpop.f32.mrf.mxu0  ;;  %v3397_v32 = vpop.f32.mrf.mxu1 }
 0x205   : > { %v1611_v26 = vadd.f32 %v3397_v32, %v3369_v10 }
 0x206   : > { %v4565_v39 = vpop.f32.mrf.mxu0  ;;  %v1604_v25 = vpop.f32.mrf.mxu1 }
 0x207   : > { %v1605_v46 = vadd.f32 %v1604_v25, %v1431_v27  ;;  %v2186_v27 = vpop.permute.xlu1 %2185 }
 0x20a   : > { %v3400_v11 = vpop.f32.mrf.mxu1  ;;  %v3422_v34 = vpop.f32.mrf.mxu0 }
 0x20b   : > { %v1623_v30 = vadd.f32 %v3400_v11, %v3372_v37  ;;  %v1730_v63 = vadd.f32 %v3422_v34, %v1599_v22 }
 0x20c   : > { %v1616_v36 = vpop.f32.mrf.mxu1  ;;  %v1722_v43 = vpop.f32.mrf.mxu0 }
 0x20d   : > { %v1617_v35 = vadd.f32 %v1616_v36, %v1451_v41  ;;  %v1723_v10 = vadd.f32 %v1722_v43, %v1593_v13 }
 0x210   : > { %v3403_v48 = vpop.f32.mrf.mxu1  ;;  %v3425_v53 = vpop.f32.mrf.mxu0 }
 0x211   : > { %v1744_v33 = vadd.f32 %v3425_v53, %v1611_v26  ;;  %v1635_v25 = vadd.f32 %v3403_v48, %v3375_v54 }
 0x212   : > { %v1628_v49 = vpop.f32.mrf.mxu1  ;;  %v1736_v6 = vpop.f32.mrf.mxu0 }
 0x213   : > { %v1737_v51 = vadd.f32 %v1736_v6, %v1605_v46  ;;  %v1629_v11 = vadd.f32 %v1628_v49, %v4565_v39 }
 0x216   : > { %v3428_v56 = vpop.f32.mrf.mxu0  ;;  %v3450_v38 = vpop.f32.mrf.mxu1 }
 0x217   : > { %v1758_v32 = vadd.f32 %v3428_v56, %v1623_v30  ;;  %v1861_v7 = vadd.f32 %v3450_v38, %v1730_v63  ;;  %v2247_v38 = vpop.permute.xlu0 %2246 }
 0x218   : > { %v1750_v3 = vpop.f32.mrf.mxu0  ;;  %v1852_v17 = vpop.f32.mrf.mxu1 }
 0x219   : > { %v1751_v40 = vadd.f32 %v1750_v3, %v1617_v35  ;;  %v1853_v6 = vadd.f32 %v1852_v17, %v1723_v10 }
 0x21b   : > { %v2242_v22 = vpop.permute.xlu0 %2241 }
 0x21c   : > { %v3431_v5 = vpop.f32.mrf.mxu0  ;;  %v3453_v9 = vpop.f32.mrf.mxu1 }
 0x21d   : > { %v1877_v58 = vadd.f32 %v3453_v9, %v1744_v33  ;;  %v1772_v34 = vadd.f32 %v3431_v5, %v1635_v25 }
 0x21e   : > { %v1764_v62 = vpop.f32.mrf.mxu0  ;;  %v1868_v24 = vpop.f32.mrf.mxu1 }
 0x21f   : > { %v1869_v8 = vadd.f32 %v1868_v24, %v1737_v51  ;;  %v1765_v26 = vadd.f32 %v1764_v62, %v1629_v11  ;;  %v2291_v62 = vld [vmem:[%s4821_s3 + $0x8] sm:$0xff] }
 0x220   : > { %v2308_v51 = vsel %vm1307_vm1, %v2291_v62, 0 }
 0x221   : > { %v4597_v10 = vand.u32 4294901760, %v2308_v51 }
 0x222   : > { %v3456_v21 = vpop.f32.mrf.mxu1  ;;  %v3478_v0 = vpop.f32.mrf.mxu0 }
 0x223   : > { %v1893_v9 = vadd.f32 %v3456_v21, %v1758_v32  ;;  %v2010_v55 = vadd.f32 %v3478_v0, %v1861_v7 }
 0x224   : > { %v1884_v14 = vpop.f32.mrf.mxu1  ;;  %v2003_v19 = vpop.f32.mrf.mxu0 }
 0x225   : > { %v2004_v41 = vadd.f32 %v2003_v19, %v1853_v6 }
 0x226   : > { %v3481_v20 = vpop.f32.mrf.mxu0 }
 0x227   : > { %v3459_v15 = vpop.f32.mrf.mxu1  ;;  %v2022_v59 = vadd.f32 %v3481_v20, %v1877_v58  ;;  %v1885_v20 = vadd.f32 %v1884_v14, %v1751_v40 }
 0x228   : > { %v2015_v42 = vpop.f32.mrf.mxu0  ;;  %v1909_v54 = vadd.f32 %v3459_v15, %v1772_v34 }
 0x229   : > { %v1900_v28 = vpop.f32.mrf.mxu1  ;;  %v2016_v53 = vadd.f32 %v2015_v42, %v1869_v8 }
 0x22a   : > { %v3484_v47 = vpop.f32.mrf.mxu0  ;;  %v1901_v21 = vadd.f32 %v1900_v28, %v1765_v26 }
 0x22b   : > { %v3506_v31 = vpop.f32.mrf.mxu1  ;;  %v2034_v36 = vadd.f32 %v3484_v47, %v1893_v9  ;;  %v4610_v9 = vsub.f32 %v2308_v51, %v4597_v10  ;;  %v4853_v51 = vld [vmem:[#allocation7_spill] sm:$0xff] }
 0x22c   : > { %v2027_v50 = vpop.f32.mrf.mxu0  ;;  %v2131_v43 = vadd.f32 %v3506_v31, %v2010_v55 }
 0x22d   : > { %v2124_v57 = vpop.f32.mrf.mxu1 }
 0x22e   : > { %v3487_v37 = vpop.f32.mrf.mxu0  ;;  %v2125_v35 = vadd.f32 %v2124_v57, %v2004_v41  ;;  %v2219_v49 = vmul.f32 %v2186_v27, %v2131_v43  ;;  %v4850_v27 = vld [vmem:[#allocation5_spill] sm:$0xff] }
 0x22f   : > { %v3509_v61 = vpop.f32.mrf.mxu1  ;;  %v2046_v0 = vadd.f32 %v3487_v37, %v1909_v54 }
 0x230   : > { %v2143_v2 = vadd.f32 %v3509_v61, %v2022_v59  ;;  %v2028_v59 = vadd.f32 %v2027_v50, %v1885_v20  ;;  %v2039_v3 = vpop.f32.mrf.mxu0  ;;  %v2181_v61 = vpop.permute.xlu1 %2180  ;;  %v2275_v58 = vadd.f32 %v2242_v22, %v2219_v49 }
 0x231   : > { %v2136_v4 = vpop.f32.mrf.mxu1  ;;  %v2218_v46 = vmul.f32 %v2181_v61, %v2125_v35 }
 0x232   : > { %v2137_v24 = vadd.f32 %v2136_v4, %v2016_v53  ;;  %v2221_v48 = vmul.f32 %v2196_v16, %v2143_v2  ;;  %v2040_v16 = vadd.f32 %v2039_v3, %v1901_v21  ;;  %v2283_v53 = vmax.f32 %v2275_v58, 0.0 }
 0x233   : > { %v3512_v56 = vpop.f32.mrf.mxu1 }
 0x234   : > { %v2155_v17 = vadd.f32 %v3512_v56, %v2034_v36  ;;  %v2220_v39 = vmul.f32 %v2191_v45, %v2137_v24  ;;  %v2277_v15 = vadd.f32 %v2252_v1, %v2221_v48  ;;  %v2237_v63 = vpop.permute.xlu1 %2236  ;;  %v4621_v34 = vand.u32 4294901760, %v2283_v53 }
 0x235   : > { %v2148_v7 = vpop.f32.mrf.mxu1  ;;  %v2274_v1 = vadd.f32 %v2237_v63, %v2218_v46  ;;  %v2395_v56 = vand.u32 4294901760, %v4610_v9 }
 0x236   : > { %v2223_v5 = vmul.f32 %v4573_v60, %v2155_v17  ;;  %v2149_v14 = vadd.f32 %v2148_v7, %v2028_v59  ;;  %v2276_v45 = vadd.f32 %v2247_v38, %v2220_v39  ;;  %v2285_v50 = vmax.f32 %v2277_v15, 0.0 }
 0x237   : > { %v3515_v19 = vpop.f32.mrf.mxu1  ;;  %v2282_v6 = vmax.f32 %v2274_v1, 0.0  ;;  %v4649_v59 = vsub.f32 %v2283_v53, %v4621_v34  ;;  %v2396_v61 = vsub.f32 %v4610_v9, %v2395_v56 }
 0x238   : > { %v2167_v42 = vadd.f32 %v3515_v19, %v2046_v0  ;;  %v2279_v33 = vadd.f32 %v4579_v29, %v2223_v5  ;;  %v2222_v47 = vmul.f32 %v4577_v18, %v2149_v14 }
 0x239   : > { %v2160_v28 = vpop.f32.mrf.mxu1  ;;  %v4634_v43 = vand.u32 4294901760, %v2282_v6  ;;  %v4677_v19 = vand.u32 4294901760, %v4649_v59  ;;  %v2397_v15 = vand.u32 4294901760, %v2396_v61 }
 0x23a   : > { %v2225_v31 = vmul.f32 %v4567_v44, %v2167_v42  ;;  %v2161_v60 = vadd.f32 %v2160_v28, %v2040_v16  ;;  %v2287_v13 = vmax.f32 %v2279_v33, 0.0  ;;  %v2278_v30 = vadd.f32 %v4581_v23, %v2222_v47 }
 0x23b   : > { %v2284_v44 = vmax.f32 %v2276_v45, 0.0  ;;  %v4602_v23 = vand.u32 4294901760, %v2285_v50  ;;  %v4664_v21 = vsub.f32 %v2282_v6, %v4634_v43  ;;  %v2465_v33 = vsub.f32 %v4649_v59, %v4677_v19 }
 0x23c   : > { %v2281_v57 = vadd.f32 %v4571_v52, %v2225_v31  ;;  %v2224_v29 = vmul.f32 %v4569_v12, %v2161_v60  ;;  %v4595_v18 = vand.u32 4294901760, %v2287_v13  ;;  %v2286_v8 = vmax.f32 %v2278_v30, 0.0  ;;  %v4851_v31 = vld [vmem:[#allocation6_spill] sm:$0xff] }
 0x23d   : > { %v4612_v55 = vand.u32 4294901760, %v2284_v44  ;;  %v4625_v24 = vsub.f32 %v2285_v50, %v4602_v23  ;;  %v4684_v42 = vand.u32 4294901760, %v4664_v21  ;;  %v2466_v22 = vand.u32 4294901760, %v2465_v33  ;;  %v2302_v50 = vpop.permute.xlu1 %2301 }
 0x23e   : > { %v2289_v32 = vmax.f32 %v2281_v57, 0.0  ;;  %v2280_v25 = vadd.f32 %v4850_v27, %v2224_v29  ;;  %v4600_v2 = vand.u32 4294901760, %v2286_v8  ;;  %v4605_v40 = vsub.f32 %v2287_v13, %v4595_v18  ;;  %v2297_v29 = vpop.permute.xlu0 %2296 }
 0x23f   : > { %v4639_v38 = vsub.f32 %v2284_v44, %v4612_v55  ;;  %v4657_v7 = vand.u32 4294901760, %v4625_v24  ;;  %v2472_v28 = vsub.f32 %v4664_v21, %v4684_v42  ;;  %v4852_v60 = vand.u32 4294901760, %v4851_v31 }
 0x240   : > { %v4607_v52 = vand.u32 4294901760, %v2289_v32  ;;  %v2288_v12 = vmax.f32 %v2280_v25, 0.0  ;;  %v4615_v37 = vsub.f32 %v2286_v8, %v4600_v2  ;;  %v4632_v36 = vand.u32 4294901760, %v4605_v40 }
 0x241   : > { %v4670_v49 = vand.u32 4294901760, %v4639_v38  ;;  %v2451_v14 = vsub.f32 %v4625_v24, %v4657_v7  ;;  %v2473_v45 = vand.u32 4294901760, %v2472_v28 }
 0x242   : > { %v2421_v4 = vsub.f32 %v2289_v32, %v4607_v52  ;;  %v4618_v11 = vand.u32 4294901760, %v2288_v12  ;;  %3516 = vmatprep.subr.mxu0 %v4607_v52  ;;  %v4646_v48 = vand.u32 4294901760, %v4615_v37  ;;  %v2437_v17 = vsub.f32 %v4605_v40, %v4632_v36 }
 0x243   : > { %3517 = vmatpush3.msra.mxu0 %v4607_v52  ;;  %v2458_v16 = vsub.f32 %v4639_v38, %v4670_v49  ;;  %v2452_v46 = vand.u32 4294901760, %v2451_v14 }
 0x244   : > { %v2428_v20 = vsub.f32 %v2288_v12, %v4618_v11  ;;  %3518 = vmatprep.subr.mxu0 %v4618_v11  ;;  %v4629_v41 = vand.u32 4294901760, %v2421_v4  ;;  %v2444_v39 = vsub.f32 %v4615_v37, %v4646_v48  ;;  %v2438_v5 = vand.u32 4294901760, %v2437_v17 }
 0x245   : > { %3519 = vmatpush3.msra.mxu0 %v4618_v11  ;;  %v2459_v47 = vand.u32 4294901760, %v2458_v16 }
 0x246   : > { %3520 = vmatprep.subr.mxu0 %v4595_v18  ;;  %v2423_v26 = vsub.f32 %v2421_v4, %v4629_v41  ;;  %v4643_v54 = vand.u32 4294901760, %v2428_v20  ;;  %v2445_v62 = vand.u32 4294901760, %v2444_v39 }
 0x247   : > { %3521 = vmatpush3.msra.mxu0 %v4595_v18 }
 0x248   : > { %3522 = vmatprep.subr.mxu0 %v4600_v2  ;;  %v2424_v35 = vand.u32 4294901760, %v2423_v26  ;;  %v2430_v3 = vsub.f32 %v2428_v20, %v4643_v54 }
 0x249   : > { %3523 = vmatpush3.msra.mxu0 %v4600_v2 }
 0x24a   : > { %3524 = vmatprep.subr.mxu0 %v4602_v23  ;;  %3535 = vmatprep.subr.mxu1 %v2424_v35  ;;  %v2431_v0 = vand.u32 4294901760, %v2430_v3 }
 0x24b   : > { %3525 = vmatpush3.msra.mxu0 %v4602_v23  ;;  %3536 = vmatpush3.msra.mxu1 %v2424_v35 }
 0x24c   : > { %3526 = vmatprep.subr.mxu0 %v4612_v55  ;;  %3537 = vmatprep.subr.mxu1 %v2431_v0 }
 0x24d   : > { %3527 = vmatpush3.msra.mxu0 %v4612_v55  ;;  %3538 = vmatpush3.msra.mxu1 %v2431_v0 }
 0x24e   : > { %3528 = vmatprep.subr.mxu0 %v4621_v34  ;;  %3539 = vmatprep.subr.mxu1 %v2438_v5 }
 0x24f   : > { %3529 = vmatpush3.msra.mxu0 %v4621_v34  ;;  %3540 = vmatpush3.msra.mxu1 %v2438_v5 }
 0x250   : > { %3530 = vmatprep.subr.mxu0 %v4634_v43  ;;  %3541 = vmatprep.subr.mxu1 %v2445_v62 }
 0x251   : > { %3531 = vmatpush3.msra.mxu0 %v4634_v43  ;;  %3542 = vmatpush3.msra.mxu1 %v2445_v62 }
 0x252   : > { %3533 = vmatmul.mubr.f32.vlgmr.msra.gmra.mxu0 %v2397_v15  ;;  %3543 = vmatprep.subr.mxu1 %v2452_v46 }
 0x253   : > { %3554 = vmatprep.subr.mxu0 %v2421_v4  ;;  %3544 = vmatpush3.msra.mxu1 %v2452_v46 }
 0x254   : > { %3555 = vmatpush3.msra.mxu0 %v2421_v4  ;;  %3545 = vmatprep.subr.mxu1 %v2459_v47 }
 0x255   : > { %3556 = vmatprep.subr.mxu0 %v2428_v20  ;;  %3546 = vmatpush3.msra.mxu1 %v2459_v47 }
 0x256   : > { %3557 = vmatpush3.msra.mxu0 %v2428_v20  ;;  %3547 = vmatprep.subr.mxu1 %v2466_v22 }
 0x257   : > { %3558 = vmatprep.subr.mxu0 %v4605_v40  ;;  %3548 = vmatpush3.msra.mxu1 %v2466_v22 }
 0x258   : > { %3559 = vmatpush3.msra.mxu0 %v4605_v40  ;;  %3549 = vmatprep.subr.mxu1 %v2473_v45 }
 0x259   : > { %3560 = vmatprep.subr.mxu0 %v4615_v37  ;;  %3550 = vmatpush3.msra.mxu1 %v2473_v45 }
 0x25a   : > { %3561 = vmatpush3.msra.mxu0 %v4615_v37  ;;  %3552 = vmatmul.mubr.f32.vlgmr.msra.gmra.mxu1 %v4597_v10 }
 0x25b   : > { %3562 = vmatprep.subr.mxu0 %v4625_v24  ;;  %3573 = vmatprep.subr.mxu1 %v4607_v52 }
 0x25c   : > { %3563 = vmatpush3.msra.mxu0 %v4625_v24  ;;  %3574 = vmatpush3.msra.mxu1 %v4607_v52 }
 0x25d   : > { %3564 = vmatprep.subr.mxu0 %v4639_v38  ;;  %3575 = vmatprep.subr.mxu1 %v4618_v11 }
 0x25e   : > { %3565 = vmatpush3.msra.mxu0 %v4639_v38  ;;  %3576 = vmatpush3.msra.mxu1 %v4618_v11 }
 0x25f   : > { %3566 = vmatprep.subr.mxu0 %v4649_v59  ;;  %3577 = vmatprep.subr.mxu1 %v4595_v18 }
 0x260   : > { %3567 = vmatpush3.msra.mxu0 %v4649_v59  ;;  %3578 = vmatpush3.msra.mxu1 %v4595_v18 }
 0x261   : > { %3568 = vmatprep.subr.mxu0 %v4664_v21  ;;  %3579 = vmatprep.subr.mxu1 %v4600_v2 }
 0x262   : > { %3569 = vmatpush3.msra.mxu0 %v4664_v21  ;;  %3570 = vmatprep.mubr.f32.mxu0 %v4851_v31 }
 0x263   : > { %3580 = vmatpush3.msra.mxu1 %v4600_v2  ;;  %3571 = vmatmul.mubr.f32.vlgmr.msra.gmra.mxu0 %v4610_v9 }
 0x264   : > { %3581 = vmatprep.subr.mxu1 %v4602_v23  ;;  %3592 = vmatprep.subr.mxu0 %v4629_v41 }
 0x265   : > { %3582 = vmatpush3.msra.mxu1 %v4602_v23  ;;  %3593 = vmatpush3.msra.mxu0 %v4629_v41 }
 0x266   : > { %3583 = vmatprep.subr.mxu1 %v4612_v55  ;;  %3594 = vmatprep.subr.mxu0 %v4643_v54 }
 0x267   : > { %3584 = vmatpush3.msra.mxu1 %v4612_v55  ;;  %3595 = vmatpush3.msra.mxu0 %v4643_v54 }
 0x268   : > { %3585 = vmatprep.subr.mxu1 %v4621_v34  ;;  %3596 = vmatprep.subr.mxu0 %v4632_v36 }
 0x269   : > { %3586 = vmatpush3.msra.mxu1 %v4621_v34  ;;  %3597 = vmatpush3.msra.mxu0 %v4632_v36 }
 0x26a   : > { %3587 = vmatprep.subr.mxu1 %v4634_v43  ;;  %3598 = vmatprep.subr.mxu0 %v4646_v48 }
 0x26b   : > { %3588 = vmatpush3.msra.mxu1 %v4634_v43  ;;  %3589 = vmatprep.mubr.f32.mxu1 %v4852_v60 }
 0x26c   : > { %3599 = vmatpush3.msra.mxu0 %v4646_v48  ;;  %3590 = vmatmul.mubr.f32.vlgmr.msra.gmra.mxu1 %v2395_v56 }
 0x26d   : > { %3600 = vmatprep.subr.mxu0 %v4657_v7  ;;  %3611 = vmatprep.subr.mxu1 %v4607_v52 }
 0x26e   : > { %3601 = vmatpush3.msra.mxu0 %v4657_v7  ;;  %3612 = vmatpush3.msra.mxu1 %v4607_v52 }
 0x26f   : > { %3602 = vmatprep.subr.mxu0 %v4670_v49  ;;  %3613 = vmatprep.subr.mxu1 %v4618_v11 }
 0x270   : > { %3603 = vmatpush3.msra.mxu0 %v4670_v49  ;;  %3614 = vmatpush3.msra.mxu1 %v4618_v11 }
 0x271   : > { %3604 = vmatprep.subr.mxu0 %v4677_v19  ;;  %3615 = vmatprep.subr.mxu1 %v4595_v18 }
 0x272   : > { %3605 = vmatpush3.msra.mxu0 %v4677_v19  ;;  %3616 = vmatpush3.msra.mxu1 %v4595_v18 }
 0x273   : > { %3606 = vmatprep.subr.mxu0 %v4684_v42  ;;  %3617 = vmatprep.subr.mxu1 %v4600_v2 }
 0x274   : > { %3607 = vmatpush3.msra.mxu0 %v4684_v42  ;;  %3608 = vmatprep.mubr.f32.mxu0 %v4853_v51 }
 0x275   : > { %3618 = vmatpush3.msra.mxu1 %v4600_v2  ;;  %3609 = vmatmul.mubr.f32.vlgmr.msra.gmra.mxu0 %v4597_v10 }
 0x276   : > { %3619 = vmatprep.subr.mxu1 %v4602_v23  ;;  %3627 = vmatprep.mubr.f32.mxu1 %v4853_v51 }
 0x277   : > { %3620 = vmatpush3.msra.mxu1 %v4602_v23 }
 0x278   : > { %3621 = vmatprep.subr.mxu1 %v4612_v55 }
 0x279   : > { %3622 = vmatpush3.msra.mxu1 %v4612_v55 }
 0x27a   : > { %3623 = vmatprep.subr.mxu1 %v4621_v34 }
 0x27b   : > { %3624 = vmatpush3.msra.mxu1 %v4621_v34 }
 0x27c   : > { %3625 = vmatprep.subr.mxu1 %v4634_v43 }
 0x27d   : > { %3626 = vmatpush3.msra.mxu1 %v4634_v43 }
 0x27e   : > { %3628 = vmatmul.mubr.f32.vlgmr.msra.gmra.mxu1 %v4597_v10 }
 0x312   : > { %v3534_v58 = vpop.f32.mrf.mxu0 }
 0x313   : > { %v2400_v1 = vadd.f32 %v3534_v58, %v2302_v50 }
 0x314   : > { %v2389_v13 = vpop.f32.mrf.mxu0 }
 0x315   : > { %v2390_v44 = vadd.f32 %v2389_v13, %v2297_v29 }
 0x31a   : > { %v3553_v30 = vpop.f32.mrf.mxu1 }
 0x31b   : > { %v2517_v32 = vadd.f32 %v3553_v30, %v2400_v1 }
 0x31c   : > { %v2510_v57 = vpop.f32.mrf.mxu1 }
 0x31d   : > { %v2511_v25 = vadd.f32 %v2510_v57, %v2390_v44 }
 0x323   : > { %v3572_v63 = vpop.f32.mrf.mxu0 }
 0x324   : > { %v2612_v53 = vadd.f32 %v3572_v63, %v2517_v32 }
 0x325   : > { %v2604_v18 = vpop.f32.mrf.mxu0 }
 0x326   : > { %v2605_v10 = vadd.f32 %v2604_v18, %v2511_v25 }
 0x32c   : > { %v3591_v8 = vpop.f32.mrf.mxu1 }
 0x32d   : > { %v2701_v23 = vadd.f32 %v3591_v8, %v2612_v53 }
 0x32e   : > { %v2692_v2 = vpop.f32.mrf.mxu1 }
 0x32f   : > { %v2693_v52 = vadd.f32 %v2692_v2, %v2605_v10 }
 0x335   : > { %v3610_v27 = vpop.f32.mrf.mxu0 }
 0x336   : > { %v2802_v12 = vadd.f32 %v3610_v27, %v2701_v23 }
 0x337   : > { %v2795_v40 = vpop.f32.mrf.mxu0 }
 0x338   : > { %v2796_v9 = vadd.f32 %v2795_v40, %v2693_v52 }
 0x33e   : > { %v3629_v6 = vpop.f32.mrf.mxu1 }
 0x33f   : > { %v2887_v55 = vadd.f32 %v3629_v6, %v2802_v12 }
 0x340   : > { %v2880_v37 = vpop.f32.mrf.mxu1 }
 0x341   : > { %2891 = vst [vmem:[%s347_s24 + $0x8] sm:$0xff] %v2887_v55  ;;  %v2881_v4 = vadd.f32 %v2880_v37, %v2796_v9 }
 0x343   : > { %2890 = vst [vmem:[%s347_s24] sm:$0xff] %v2881_v4 }
 0x344   : > { %3703 = shalt.err (!%p3700_p5)
}
 0x345   : > { %s3704_s20 = scalar_lea.hbm %s4771_s29, 256  ;;  %s3708_s27 = scalar_lea.hbm %s4827_s9, 512 }
 0x346   : > { %p3705_p6 = scmp.ne.s32.totalorder %s4771_s29, %s3704_s20  ;;  %p3709_p10 = scmp.lt.s32.totalorder %s4771_s29, %s4827_s9 }
 0x347   : > { %p3710_p11 = scmp.lt.s32.totalorder %s3708_s27, %s3704_s20 }
 0x348   : > { %p3706_p7 = pnand %p3705_p6, %p3862_p4 }
 0x349   : > { %p3711_p12 = por %p3710_p11, %p3709_p10 }
 0x34a   : > { %p3707_p9 = pneg %p3706_p7 }
 0x34c   : > { %p3712_p13 = pnand %p3711_p12, %p3707_p9 }
 0x34e   : > { %3715 = shalt.err (!%p3712_p13)
}
 0x34f   : > { %s3770_s12 = smov 128   ;;  %s3771_s18 = smov 8  }
 0x350   : > { %3630 = dma.vmem_to_hbm [thread:$0]  (%p3862_p4), %s4766_s25, 256, %s4771_s29, %s4773_s15, %s3770_s12, %s3770_s12, %s3771_s18  }
 0x351 PF: > { %p3636_p0 = scmp.ge.s32.totalorder %s3766_s14, 2  ;;  %s2922_s23 = sand.u32 1, %s3746_s30  }
 0x352   : > { %s2923_s20 = scalar_lea.sflag [#allocation3], %s2922_s23 }
 0x353   : > { %p3633_p1 = pnand %p3636_p0, %p3869_p8 }
 0x355   : > { %p3634_p2 = pneg %p3633_p1 }
 0x357   : > { %3741 = dma.done.wait (%p3634_p2), %s2923_s20, 256  }
 0x358   : > { %3743 = vsyncadd (%p3634_p2), %s2923_s20, 4294967040  ;;  %s22_s14 = sadd.s32 1, %s3766_s14   ;;  %s4854_s30 = smov %s3750_s10 }
 0x359   : > { %p19_p3 = scmp.ge.s32.totalorder %s22_s14, 4   ;;  %s4855_s10 = smov %s3754_s11 }
 0x35a   : > { %s4856_s11 = smov %s3875_s22  ;;  %s4857_s12 = smov %s3762_s13 }
 0x35b   : > { %s4858_s13 = smov %s4860_s17  ;;  %21 = sbr.rel (!%p19_p3) target bundleno = 4 (0x4), region = 91 }
 0x360   :  { %2928 = vsyncpa [#allocation3], 1 }
 0x361   :  { %2930 = vsyncpa [#allocation3 + $0x1], 1 }

// kernel: conv_forward.2
= control target key start
LH: loop header
LB: loop body
LE: loop exit
PB: predicated region body
PF: predicated region fallthrough
CT: control target
= control target key end

     0   :  { %s4381_s13 = smov 0   ;;  %s4383_s14 = smov 0   ;;  %s5624_s0 = inlined_call_operand.vmem [shape: f32[2,32,128], index: 0, kind: input, shape index: {}]   ;;  %s5625_s1 = inlined_call_operand.vmem [shape: f32[64,32], index: 1, kind: input, shape index: {}]   ;;  %s5626_s2 = inlined_call_operand.vmem [shape: f32[64,64], index: 2, kind: input, shape index: {}]   ;;  %s5627_s3 = inlined_call_operand.vmem [shape: f32[64,1], index: 3, kind: input, shape index: {}]   ;;  %s5628_s4 = inlined_call_operand.vmem [shape: f32[64,1], index: 4, kind: input, shape index: {}]   ;;  %s5629_s5 = inlined_call_operand.vmem [shape: f32[64,1], index: 5, kind: input, shape index: {}]   ;;  %s5630_s6 = inlined_call_operand.vmem [shape: f32[64,1], index: 6, kind: input, shape index: {}]   ;;  %s5631_s7 = inlined_call_operand.vmem [shape: f32[64,1], index: 7, kind: output, shape index: {0}]   ;;  %s5632_s8 = inlined_call_operand.vmem [shape: f32[64,1], index: 8, kind: output, shape index: {1}]   ;;  %s5633_s9 = inlined_call_operand.vmem [shape: f32[64,1], index: 9, kind: output, shape index: {2}]   ;;  %s5634_s10 = inlined_call_operand.vmem [shape: f32[64,1], index: 10, kind: output, shape index: {3}]  }
   0x1   :  { %s4385_s15 = smov 0   ;;  %s4387_s16 = smov 0  }
   0x2   :  { %s4389_s17 = smov 0  }
   0x3 LB: > { %s36_s18 = sadd.s32 1, %s4314_s15  ;;  %s40_s19 = sadd.s32 1, %s4318_s16  ;;  %s4322_s17 = sphi %s4389_s17, %s21_s17   ;;  %s4318_s16 = sphi %s4387_s16, %s5644_s16   ;;  %s4314_s15 = sphi %s4385_s15, %s5643_s15   ;;  %s4310_s14 = sphi %s4383_s14, %s5642_s14   ;;  %s4306_s13 = sphi %s4381_s13, %s5641_s13  }
   0x4   : > { %p38_p0 = scmp.ge.s32.totalorder %s36_s18, 2  ;;  %p3549_p1 = scmp.ge.s32.totalorder %s4322_s17, 1 }
   0x5   : > { %p308_p2 = scmp.lt.s32.totalorder %s4322_s17, 5 }
   0x6   : > { %s5646_s18 = smov (%p38_p0, %s36_s18), 0  ;;  %s5648_s19 = smov (!%p38_p0, %s40_s19), %s4318_s16 }
   0x7   : > { %p309_p3 = pnand %p3549_p1, %p308_p2  ;;  %p42_p4 = scmp.ge.s32.totalorder %s5648_s19, 2 }
   0x8   : > { %p336_p5 = scmp.eq.s32.totalorder (!%p309_p3), %s4306_s13, 0  ;;  %p340_p6 = scmp.eq.s32.totalorder (!%p309_p3), %s4306_s13, 1 }
   0x9   : > { %s5650_s19 = smov (%p42_p4, %s5648_s19), 0  ;;  %312 = sbr.rel (%p309_p3) target bundleno = 1283 (0x503), region = 48 }
   0xa   : > { %p343_p7 = scmp.eq.s32.totalorder (!%p309_p3), %s4310_s14, 0 }
   0xc   : > { %p344_p8 = pnand (!%p309_p3), %p343_p7, %p336_p5 }
   0xe   : > { %347 = sbr.rel (%p344_p8) target bundleno = 36 (0x24), region = 52 }
  0x13   : > { %v4324_v0 = vmov 0.0  }
  0x14   : > { %348 = vst [vmem:[#allocation2 + $0x30] sm:$0xff] %v4324_v0  ;;  %349 = vst [vmem:[#allocation2] sm:$0xff] %v4324_v0 }
  0x15   : > { %350 = vst [vmem:[#allocation2 + $0x18] sm:$0xff] %v4324_v0  ;;  %351 = vst [vmem:[#allocation2 + $0x10] sm:$0xff] %v4324_v0 }
  0x16   : > { %352 = vst [vmem:[#allocation2 + $0x8] sm:$0xff] %v4324_v0  ;;  %353 = vst [vmem:[#allocation2 + $0x20] sm:$0xff] %v4324_v0 }
  0x17   : > { %354 = vst [vmem:[#allocation2 + $0x28] sm:$0xff] %v4324_v0  ;;  %355 = vst [vmem:[#allocation2 + $0x38] sm:$0xff] %v4324_v0 }
  0x18   : > { %356 = vst [vmem:[#allocation3] sm:$0xff] %v4324_v0  ;;  %357 = vst [vmem:[#allocation3 + $0x18] sm:$0xff] %v4324_v0 }
  0x19   : > { %358 = vst [vmem:[#allocation3 + $0x10] sm:$0xff] %v4324_v0  ;;  %359 = vst [vmem:[#allocation3 + $0x20] sm:$0xff] %v4324_v0 }
  0x1a   : > { %360 = vst [vmem:[#allocation3 + $0x28] sm:$0xff] %v4324_v0  ;;  %361 = vst [vmem:[#allocation3 + $0x8] sm:$0xff] %v4324_v0 }
  0x1b   : > { %362 = vst [vmem:[#allocation3 + $0x30] sm:$0xff] %v4324_v0  ;;  %363 = vst [vmem:[#allocation3 + $0x38] sm:$0xff] %v4324_v0 }
  0x1c   : > { %364 = vst [vmem:[#allocation4 + $0x28] sm:$0xff] %v4324_v0  ;;  %365 = vst [vmem:[#allocation4 + $0x20] sm:$0xff] %v4324_v0 }
  0x1d   : > { %366 = vst [vmem:[#allocation4 + $0x38] sm:$0xff] %v4324_v0  ;;  %367 = vst [vmem:[#allocation4 + $0x10] sm:$0xff] %v4324_v0 }
  0x1e   : > { %368 = vst [vmem:[#allocation4 + $0x8] sm:$0xff] %v4324_v0  ;;  %369 = vst [vmem:[#allocation4 + $0x30] sm:$0xff] %v4324_v0 }
  0x1f   : > { %370 = vst [vmem:[#allocation4 + $0x18] sm:$0xff] %v4324_v0  ;;  %371 = vst [vmem:[#allocation4] sm:$0xff] %v4324_v0 }
  0x20   : > { %372 = vst [vmem:[#allocation5 + $0x8] sm:$0xff] %v4324_v0  ;;  %373 = vst [vmem:[#allocation5] sm:$0xff] %v4324_v0 }
  0x21   : > { %374 = vst [vmem:[#allocation5 + $0x10] sm:$0xff] %v4324_v0  ;;  %375 = vst [vmem:[#allocation5 + $0x20] sm:$0xff] %v4324_v0 }
  0x22   : > { %376 = vst [vmem:[#allocation5 + $0x30] sm:$0xff] %v4324_v0  ;;  %377 = vst [vmem:[#allocation5 + $0x18] sm:$0xff] %v4324_v0 }
  0x23   : > { %378 = vst [vmem:[#allocation5 + $0x28] sm:$0xff] %v4324_v0  ;;  %379 = vst [vmem:[#allocation5 + $0x38] sm:$0xff] %v4324_v0 }
  0x24 PF: > { %p380_p9 = scmp.eq.s32.totalorder %s4310_s14, 1 }
  0x26   : > { %p381_p10 = pnand %p380_p9, %p336_p5 }
  0x28   : > { %384 = sbr.rel (%p381_p10) target bundleno = 242 (0xf2), region = 56 }
  0x2d   : > { %v387_v1 = vld [vmem:[#allocation2 + $0x18] sm:$0xff]  ;;  %v385_v2 = vld [vmem:[#allocation2 + $0x30] sm:$0xff]  ;;  %v386_v4 = vld [vmem:[#allocation2] sm:$0xff]  ;;  %vm505_vm0 = vcmask 7168  }
  0x2e   : > { %397 = vadd.xlane.f32.xlu1 %v387_v1  ;;  %393 = vadd.xlane.f32.xlu0 %v385_v2  ;;  %v388_v3 = vld [vmem:[#allocation2 + $0x10] sm:$0xff]  ;;  %v390_v5 = vld [vmem:[#allocation2 + $0x20] sm:$0xff]  ;;  %v389_v6 = vld [vmem:[#allocation2 + $0x8] sm:$0xff] }
  0x2f   : > { %v392_v7 = vld [vmem:[#allocation2 + $0x38] sm:$0xff]  ;;  %v391_v8 = vld [vmem:[#allocation2 + $0x28] sm:$0xff]  ;;  %v409_v10 = vld [vmem:[#allocation3] sm:$0xff] }
  0x30   : > { %v410_v9 = vld [vmem:[#allocation3 + $0x18] sm:$0xff]  ;;  %v412_v11 = vld [vmem:[#allocation3 + $0x20] sm:$0xff]  ;;  %v411_v12 = vld [vmem:[#allocation3 + $0x10] sm:$0xff] }
  0x31   : > { %v414_v13 = vld [vmem:[#allocation3 + $0x8] sm:$0xff]  ;;  %v416_v15 = vld [vmem:[#allocation3 + $0x38] sm:$0xff]  ;;  %v415_v16 = vld [vmem:[#allocation3 + $0x30] sm:$0xff] }
  0x32   : > { %399 = vadd.xlane.f32.xlu1 %v388_v3  ;;  %395 = vadd.xlane.f32.xlu0 %v386_v4  ;;  %v413_v14 = vld [vmem:[#allocation3 + $0x28] sm:$0xff] }
  0x36   : > { %403 = vadd.xlane.f32.xlu1 %v390_v5  ;;  %401 = vadd.xlane.f32.xlu0 %v389_v6 }
  0x3a   : > { %407 = vadd.xlane.f32.xlu1 %v392_v7  ;;  %405 = vadd.xlane.f32.xlu0 %v391_v8 }
  0x3e   : > { %419 = vadd.xlane.f32.xlu1 %v410_v9  ;;  %417 = vadd.xlane.f32.xlu0 %v409_v10 }
  0x42   : > { %423 = vadd.xlane.f32.xlu1 %v412_v11  ;;  %421 = vadd.xlane.f32.xlu0 %v411_v12 }
  0x46   : > { %427 = vadd.xlane.f32.xlu1 %v414_v13  ;;  %425 = vadd.xlane.f32.xlu0 %v413_v14 }
  0x4a   : > { %431 = vadd.xlane.f32.xlu1 %v416_v15  ;;  %429 = vadd.xlane.f32.xlu0 %v415_v16 }
  0xb7   : > { %v398_v17 = vpop.xlane.xlu1 %397  ;;  %v394_v18 = vpop.xlane.xlu0 %393 }
  0xb8   : > { %v4425_v25 = vmul.f32 0.03125, %v394_v18  ;;  %v4429_v27 = vmul.f32 0.03125, %v398_v17  ;;  %v474_v17 = vld [vmem:[%s5627_s3 + $0x8] sm:$0xff]  ;;  %v473_v18 = vld [vmem:[%s5627_s3] sm:$0xff] }
  0xba   : > { %v449_v31 = vmul.f32 %v4425_v25, %v4425_v25  ;;  %v451_v37 = vmul.f32 %v4429_v27, %v4429_v27 }
  0xbb   : > { %v400_v19 = vpop.xlane.xlu1 %399  ;;  %v396_v20 = vpop.xlane.xlu0 %395 }
  0xbc   : > { %v4427_v26 = vmul.f32 0.03125, %v396_v20  ;;  %v4431_v28 = vmul.f32 0.03125, %v400_v19 }
  0xbe   : > { %v450_v32 = vmul.f32 %v4427_v26, %v4427_v26  ;;  %v452_v38 = vmul.f32 %v4431_v28, %v4431_v28 }
  0xbf   : > { %v404_v21 = vpop.xlane.xlu1 %403  ;;  %v402_v22 = vpop.xlane.xlu0 %401 }
  0xc0   : > { %v4441_v39 = vmul.f32 0.03125, %v404_v21  ;;  %v4443_v46 = vmul.f32 0.03125, %v402_v22  ;;  %v515_v22 = vld [vmem:[%s5628_s4 + $0x8] sm:$0xff] }
  0xc2   : > { %v454_v51 = vmul.f32 %v4441_v39, %v4441_v39  ;;  %v453_v59 = vmul.f32 %v4443_v46, %v4443_v46 }
  0xc3   : > { %v408_v23 = vpop.xlane.xlu1 %407  ;;  %v406_v24 = vpop.xlane.xlu0 %405 }
  0xc4   : > { %v4447_v52 = vmul.f32 0.03125, %v408_v23  ;;  %v4449_v53 = vmul.f32 0.03125, %v406_v24  ;;  %v476_v24 = vld [vmem:[%s5627_s3 + $0x18] sm:$0xff] }
  0xc6   : > { %v456_v0 = vmul.f32 %v4447_v52, %v4447_v52  ;;  %v455_v1 = vmul.f32 %v4449_v53, %v4449_v53 }
  0xc7   : > { %v420_v29 = vpop.xlane.xlu1 %419  ;;  %v418_v30 = vpop.xlane.xlu0 %417 }
  0xc8   : > { %v442_v33 = vmul.f32 0.03125, %v420_v29  ;;  %v441_v34 = vmul.f32 0.03125, %v418_v30  ;;  %v514_v30 = vld [vmem:[%s5628_s4] sm:$0xff] }
  0xca   : > { %v458_v35 = vsub.f32 %v442_v33, %v450_v32  ;;  %v457_v36 = vsub.f32 %v441_v34, %v449_v31  ;;  %v475_v31 = vld [vmem:[%s5627_s3 + $0x10] sm:$0xff] }
  0xcb   : > { %v424_v40 = vpop.xlane.xlu1 %423  ;;  %v422_v41 = vpop.xlane.xlu0 %421 }
  0xcc   : > { %v466_v42 = vmax.f32 %v458_v35, 0.0  ;;  %v465_v43 = vmax.f32 %v457_v36, 0.0  ;;  %v444_v44 = vmul.f32 0.03125, %v424_v40  ;;  %v443_v45 = vmul.f32 0.03125, %v422_v41  ;;  %v478_v40 = vld [vmem:[%s5627_s3 + $0x28] sm:$0xff]  ;;  %v516_v41 = vld [vmem:[%s5628_s4 + $0x10] sm:$0xff] }
  0xce   : > { %v482_v47 = vadd.f32 1e-05, %v466_v42  ;;  %v481_v48 = vadd.f32 1e-05, %v465_v43  ;;  %v460_v49 = vsub.f32 %v444_v44, %v452_v38  ;;  %v459_v50 = vsub.f32 %v443_v45, %v451_v37  ;;  %v517_v37 = vld [vmem:[%s5628_s4 + $0x18] sm:$0xff]  ;;  %v477_v42 = vld [vmem:[%s5627_s3 + $0x20] sm:$0xff] }
  0xcf   : > { %v428_v54 = vpop.xlane.xlu1 %427  ;;  %v426_v55 = vpop.xlane.xlu0 %425 }
  0xd0   : > { %4250 = vrsqrt.f32 %v482_v47  ;;  %v468_v56 = vmax.f32 %v460_v49, 0.0  ;;  %v467_v57 = vmax.f32 %v459_v50, 0.0  ;;  %v446_v58 = vmul.f32 0.03125, %v428_v54  ;;  %v519_v49 = vld [vmem:[%s5628_s4 + $0x28] sm:$0xff]  ;;  %v518_v54 = vld [vmem:[%s5628_s4 + $0x20] sm:$0xff] }
  0xd1   : > { %4252 = vrsqrt.f32 %v481_v48  ;;  %v445_v60 = vmul.f32 0.03125, %v426_v55  ;;  %v479_v55 = vld [vmem:[%s5627_s3 + $0x30] sm:$0xff] }
  0xd2   : > { %v484_v61 = vadd.f32 1e-05, %v468_v56  ;;  %v483_v62 = vadd.f32 1e-05, %v467_v57  ;;  %v462_v63 = vsub.f32 %v446_v58, %v454_v51  ;;  %v480_v51 = vld [vmem:[%s5627_s3 + $0x38] sm:$0xff] }
  0xd3   : > { %v461_v2 = vsub.f32 %v445_v60, %v453_v59  ;;  %v432_v3 = vpop.xlane.xlu1 %431  ;;  %v430_v4 = vpop.xlane.xlu0 %429 }
  0xd4   : > { %4254 = vrsqrt.f32 %v484_v61  ;;  %v470_v5 = vmax.f32 %v462_v63, 0.0  ;;  %v448_v6 = vmul.f32 0.03125, %v432_v3  ;;  %v447_v7 = vmul.f32 0.03125, %v430_v4  ;;  %v521_v61 = vld [vmem:[%s5628_s4 + $0x38] sm:$0xff]  ;;  %v520_v63 = vld [vmem:[%s5628_s4 + $0x30] sm:$0xff] }
  0xd5   : > { %4256 = vrsqrt.f32 %v483_v62  ;;  %v469_v8 = vmax.f32 %v461_v2, 0.0 }
  0xd6   : > { %v486_v9 = vadd.f32 1e-05, %v470_v5  ;;  %v464_v10 = vsub.f32 %v448_v6, %v456_v0  ;;  %v463_v11 = vsub.f32 %v447_v7, %v455_v1 }
  0xd7   : > { %v485_v12 = vadd.f32 1e-05, %v469_v8 }
  0xd8   : > { %4258 = vrsqrt.f32 %v486_v9  ;;  %v472_v13 = vmax.f32 %v464_v10, 0.0  ;;  %v471_v14 = vmax.f32 %v463_v11, 0.0 }
  0xd9   : > { %4260 = vrsqrt.f32 %v485_v12 }
  0xda   : > { %v488_v15 = vadd.f32 1e-05, %v472_v13  ;;  %v487_v16 = vadd.f32 1e-05, %v471_v14 }
  0xdc   : > { %4262 = vrsqrt.f32 %v488_v15 }
  0xdd   : > { %v4251_v19 = vpop.eup %4250  ;;  %4264 = vrsqrt.f32 %v487_v16 }
  0xde   : > { %v4253_v20 = vpop.eup %4252  ;;  %v498_v21 = vmul.f32 %v4251_v19, %v474_v17 }
  0xdf   : > { %v497_v23 = vmul.f32 %v4253_v20, %v473_v18 }
  0xe0   : > { %507 = vst.msk [vmem:[%s5631_s7 + $0x8] sm:$0xff] %vm505_vm0, %v498_v21  ;;  %v523_v29 = vmul.f32 %v498_v21, %v4427_v26 }
  0xe1   : > { %v4255_v32 = vpop.eup %4254  ;;  %506 = vst.msk [vmem:[%s5631_s7] sm:$0xff] %vm505_vm0, %v497_v23  ;;  %v522_v33 = vmul.f32 %v497_v23, %v4425_v25 }
  0xe2   : > { %v4257_v34 = vpop.eup %4256  ;;  %v531_v35 = vsub.f32 %v515_v22, %v523_v29  ;;  %v500_v36 = vmul.f32 %v4255_v32, %v476_v24 }
  0xe3   : > { %v530_v26 = vsub.f32 %v514_v30, %v522_v33  ;;  %v499_v38 = vmul.f32 %v4257_v34, %v475_v31 }
  0xe4   : > { %539 = vst.msk [vmem:[%s5632_s8 + $0x8] sm:$0xff] %vm505_vm0, %v531_v35  ;;  %509 = vst.msk [vmem:[%s5631_s7 + $0x18] sm:$0xff] %vm505_vm0, %v500_v36  ;;  %v525_v25 = vmul.f32 %v500_v36, %v4431_v28 }
  0xe5   : > { %v4259_v43 = vpop.eup %4258  ;;  %538 = vst.msk [vmem:[%s5632_s8] sm:$0xff] %vm505_vm0, %v530_v26  ;;  %508 = vst.msk [vmem:[%s5631_s7 + $0x10] sm:$0xff] %vm505_vm0, %v499_v38  ;;  %v524_v28 = vmul.f32 %v499_v38, %v4429_v27 }
  0xe6   : > { %v4261_v44 = vpop.eup %4260  ;;  %v533_v45 = vsub.f32 %v517_v37, %v525_v25  ;;  %v502_v47 = vmul.f32 %v4259_v43, %v478_v40 }
  0xe7   : > { %v532_v48 = vsub.f32 %v516_v41, %v524_v28  ;;  %v501_v50 = vmul.f32 %v4261_v44, %v477_v42 }
  0xe8   : > { %541 = vst.msk [vmem:[%s5632_s8 + $0x18] sm:$0xff] %vm505_vm0, %v533_v45  ;;  %511 = vst.msk [vmem:[%s5631_s7 + $0x28] sm:$0xff] %vm505_vm0, %v502_v47  ;;  %v527_v27 = vmul.f32 %v502_v47, %v4441_v39 }
  0xe9   : > { %v4263_v56 = vpop.eup %4262  ;;  %540 = vst.msk [vmem:[%s5632_s8 + $0x10] sm:$0xff] %vm505_vm0, %v532_v48  ;;  %510 = vst.msk [vmem:[%s5631_s7 + $0x20] sm:$0xff] %vm505_vm0, %v501_v50  ;;  %v526_v39 = vmul.f32 %v501_v50, %v4443_v46 }
  0xea   : > { %v4265_v57 = vpop.eup %4264  ;;  %v535_v58 = vsub.f32 %v519_v49, %v527_v27  ;;  %v504_v59 = vmul.f32 %v4263_v56, %v480_v51 }
  0xeb   : > { %v534_v60 = vsub.f32 %v518_v54, %v526_v39  ;;  %v503_v62 = vmul.f32 %v4265_v57, %v479_v55 }
  0xec   : > { %543 = vst.msk [vmem:[%s5632_s8 + $0x28] sm:$0xff] %vm505_vm0, %v535_v58  ;;  %513 = vst.msk [vmem:[%s5631_s7 + $0x38] sm:$0xff] %vm505_vm0, %v504_v59  ;;  %v529_v46 = vmul.f32 %v504_v59, %v4447_v52 }
  0xed   : > { %542 = vst.msk [vmem:[%s5632_s8 + $0x20] sm:$0xff] %vm505_vm0, %v534_v60  ;;  %512 = vst.msk [vmem:[%s5631_s7 + $0x30] sm:$0xff] %vm505_vm0, %v503_v62  ;;  %v528_v0 = vmul.f32 %v503_v62, %v4449_v53 }
  0xee   : > { %v537_v1 = vsub.f32 %v521_v61, %v529_v46 }
  0xef   : > { %v536_v2 = vsub.f32 %v520_v63, %v528_v0 }
  0xf0   : > { %545 = vst.msk [vmem:[%s5632_s8 + $0x38] sm:$0xff] %vm505_vm0, %v537_v1 }
  0xf1   : > { %544 = vst.msk [vmem:[%s5632_s8 + $0x30] sm:$0xff] %vm505_vm0, %v536_v2 }
  0xf2 PF: > { %p3552_p11 = scmp.ne.s32.totalorder %s4310_s14, 0 }
  0xf3   : > { %s3553_s12 = sshll.u32 (!%p3552_p11), %s4306_s13, 5 }
  0xf4   : > { %548 = sbr.rel (%p3552_p11) target bundleno = 517 (0x205), region = 60  ;;  %s562_s28 = scalar_lea.vmem (!%p3552_p11), %s5624_s0, %s3553_s12 }
  0xf9   : > { %v549_v52 = vld [vmem:[%s5625_s1] sm:$0xff]  ;;  %vm567_vm1 = vcmask 261120   ;;  %v550_v53 = vld [vmem:[%s5625_s1 + $0x8] sm:$0xff]  ;;  %v551_v3 = vld [vmem:[%s5625_s1 + $0x10] sm:$0xff] }
  0xfa   : > { %v569_v4 = vsel %vm567_vm1, %v549_v52, 0  ;;  %v572_v5 = vsel %vm567_vm1, %v550_v53, 0  ;;  %v575_v6 = vsel %vm567_vm1, %v551_v3, 0  ;;  %v552_v7 = vld [vmem:[%s5625_s1 + $0x18] sm:$0xff]  ;;  %v565_v9 = vld [vmem:[%s562_s28 + $0x10] sm:$0xff]  ;;  %v564_v10 = vld [vmem:[%s562_s28 + $0x8] sm:$0xff] }
  0xfb   : > { %v566_v8 = vld [vmem:[%s562_s28 + $0x18] sm:$0xff]  ;;  %v4597_v11 = vand.u32 4294901760, %v569_v4  ;;  %v4599_v12 = vand.u32 4294901760, %v572_v5  ;;  %v4601_v13 = vand.u32 4294901760, %v575_v6  ;;  %v4605_v15 = vand.u32 4294901760, %v565_v9  ;;  %v563_v17 = vld [vmem:[%s562_s28] sm:$0xff] }
  0xfc   : > { %v4603_v14 = vand.u32 4294901760, %v566_v8  ;;  %v4607_v16 = vand.u32 4294901760, %v564_v10  ;;  %v578_v18 = vsel %vm567_vm1, %v552_v7, 0  ;;  %v4610_v19 = vand.u32 4294901760, %v563_v17  ;;  %v553_v45 = vld [vmem:[%s5625_s1 + $0x20] sm:$0xff]  ;;  %v554_v47 = vld [vmem:[%s5625_s1 + $0x28] sm:$0xff] }
  0xfd   : > { %v4613_v20 = vsub.f32 %v569_v4, %v4597_v11  ;;  %v4616_v21 = vsub.f32 %v572_v5, %v4599_v12  ;;  %v4619_v22 = vsub.f32 %v575_v6, %v4601_v13  ;;  %3828 = vmatprep.mubr.f32.mxu1 %v4597_v11  ;;  %v4625_v24 = vsub.f32 %v565_v9, %v4605_v15  ;;  %v555_v48 = vld [vmem:[%s5625_s1 + $0x30] sm:$0xff]  ;;  %v556_v39 = vld [vmem:[%s5625_s1 + $0x38] sm:$0xff] }
  0xfe   : > { %3800 = vmatprep.subr.mxu0 %v4603_v14  ;;  %v767_v23 = vsub.f32 %v566_v8, %v4603_v14  ;;  %v4627_v29 = vand.u32 4294901760, %v578_v18  ;;  %v4630_v30 = vsub.f32 %v564_v10, %v4607_v16  ;;  %v4637_v34 = vsub.f32 %v563_v17, %v4610_v19 }
  0xff   : > { %3801 = vmatpush3.msra.mxu0 %v4603_v14  ;;  %v663_v31 = vand.u32 4294901760, %v4613_v20  ;;  %v673_v32 = vand.u32 4294901760, %v4616_v21  ;;  %v683_v33 = vand.u32 4294901760, %v4619_v22  ;;  %v4643_v36 = vand.u32 4294901760, %v4625_v24 }
 0x100   : > { %3802 = vmatprep.subr.mxu0 %v4605_v15  ;;  %v4640_v35 = vand.u32 4294901760, %v767_v23  ;;  %v4646_v26 = vsub.f32 %v578_v18, %v4627_v29  ;;  %v4649_v37 = vand.u32 4294901760, %v4630_v30  ;;  %v4662_v41 = vand.u32 4294901760, %v4637_v34 }
 0x101   : > { %3803 = vmatpush3.msra.mxu0 %v4605_v15  ;;  %v664_v38 = vsub.f32 %v4613_v20, %v663_v31  ;;  %v674_v40 = vsub.f32 %v4616_v21, %v673_v32  ;;  %v684_v25 = vsub.f32 %v4619_v22, %v683_v33  ;;  %v776_v43 = vsub.f32 %v4625_v24, %v4643_v36 }
 0x102   : > { %3804 = vmatprep.subr.mxu0 %v4607_v16  ;;  %v769_v42 = vsub.f32 %v767_v23, %v4640_v35  ;;  %v693_v28 = vand.u32 4294901760, %v4646_v26  ;;  %v783_v44 = vsub.f32 %v4630_v30, %v4649_v37  ;;  %v790_v27 = vsub.f32 %v4637_v34, %v4662_v41 }
 0x103   : > { %3805 = vmatpush3.msra.mxu0 %v4607_v16  ;;  %v665_v49 = vand.u32 4294901760, %v664_v38  ;;  %v675_v50 = vand.u32 4294901760, %v674_v40  ;;  %v685_v51 = vand.u32 4294901760, %v684_v25  ;;  %v777_v55 = vand.u32 4294901760, %v776_v43 }
 0x104   : > { %3806 = vmatprep.subr.mxu0 %v4610_v19  ;;  %v770_v54 = vand.u32 4294901760, %v769_v42  ;;  %v694_v56 = vsub.f32 %v4646_v26, %v693_v28  ;;  %v784_v57 = vand.u32 4294901760, %v783_v44  ;;  %v581_v58 = vsel %vm567_vm1, %v553_v45, 0 }
 0x105   : > { %3807 = vmatpush3.msra.mxu0 %v4610_v19  ;;  %3808 = vmatprep.mubr.f32.mxu0 %v665_v49  ;;  %v584_v59 = vsel %vm567_vm1, %v554_v47, 0  ;;  %v587_v60 = vsel %vm567_vm1, %v555_v48, 0  ;;  %v4694_v62 = vand.u32 4294901760, %v581_v58  ;;  %v791_v0 = vand.u32 4294901760, %v790_v27 }
 0x106   : > { %3809 = vmatmul.mubr.f32.vlgmr.msra.gmra.mxu0 %v675_v50  ;;  %3820 = vmatprep.subr.mxu1 %v770_v54  ;;  %v695_v61 = vand.u32 4294901760, %v694_v56  ;;  %v4696_v46 = vand.u32 4294901760, %v584_v59  ;;  %v4698_v63 = vand.u32 4294901760, %v587_v60  ;;  %v590_v1 = vsel %vm567_vm1, %v556_v39, 0 }
 0x107   : > { %3821 = vmatpush3.msra.mxu1 %v770_v54  ;;  %3811 = vmatprep.mubr.f32.mxu0 %v685_v51  ;;  %v4702_v2 = vsub.f32 %v581_v58, %v4694_v62  ;;  %v4710_v3 = vand.u32 4294901760, %v590_v1 }
 0x108   : > { %3822 = vmatprep.subr.mxu1 %v777_v55  ;;  %3840 = vmatprep.subr.mxu0 %v767_v23  ;;  %v4705_v52 = vsub.f32 %v584_v59, %v4696_v46  ;;  %v4708_v53 = vsub.f32 %v587_v60, %v4698_v63 }
 0x109   : > { %3823 = vmatpush3.msra.mxu1 %v777_v55  ;;  %3841 = vmatpush3.msra.mxu0 %v767_v23  ;;  %v703_v4 = vand.u32 4294901760, %v4702_v2  ;;  %v4716_v7 = vsub.f32 %v590_v1, %v4710_v3 }
 0x10a   : > { %3812 = vmatmul.mubr.f32.gmra.mxu0 %v695_v61  ;;  %3824 = vmatprep.subr.mxu1 %v784_v57  ;;  %v713_v5 = vand.u32 4294901760, %v4705_v52  ;;  %v723_v6 = vand.u32 4294901760, %v4708_v53 }
 0x10b   : > { %3825 = vmatpush3.msra.mxu1 %v784_v57  ;;  %3842 = vmatprep.subr.mxu0 %v4625_v24  ;;  %v704_v8 = vsub.f32 %v4702_v2, %v703_v4  ;;  %v733_v17 = vand.u32 4294901760, %v4716_v7 }
 0x10c   : > { %3826 = vmatprep.subr.mxu1 %v791_v0  ;;  %v714_v9 = vsub.f32 %v4705_v52, %v713_v5  ;;  %v724_v10 = vsub.f32 %v4708_v53, %v723_v6  ;;  %3843 = vmatpush3.msra.mxu0 %v4625_v24 }
 0x10d   : > { %3827 = vmatpush3.msra.mxu1 %v791_v0  ;;  %3844 = vmatprep.subr.mxu0 %v4630_v30  ;;  %v705_v18 = vand.u32 4294901760, %v704_v8  ;;  %v734_v40 = vsub.f32 %v4716_v7, %v733_v17 }
 0x10e   : > { %v715_v23 = vand.u32 4294901760, %v714_v9  ;;  %3829 = vmatmul.mubr.f32.vlgmr.msra.gmra.mxu1 %v4599_v12  ;;  %3860 = vmatprep.subr.mxu1 %v4603_v14  ;;  %v725_v38 = vand.u32 4294901760, %v724_v10  ;;  %v1411_v9 = vld [vmem:[#allocation3 + $0x18] sm:$0xff] }
 0x10f   : > { %3861 = vmatpush3.msra.mxu1 %v4603_v14  ;;  %3831 = vmatprep.mubr.f32.mxu1 %v4601_v13  ;;  %v735_v24 = vand.u32 4294901760, %v734_v40 }
 0x110   : > { %3814 = vmatprep.mubr.f32.mxu0 %v705_v18  ;;  %3862 = vmatprep.subr.mxu1 %v4605_v15 }
 0x111   : > { %3815 = vmatmul.mubr.f32.gmra.mxu0 %v715_v23  ;;  %3863 = vmatpush3.msra.mxu1 %v4605_v15 }
 0x112   : > { %3817 = vmatprep.mubr.f32.mxu0 %v725_v38  ;;  %3832 = vmatmul.mubr.f32.gmra.mxu1 %v4627_v29 }
 0x113   : > { %3845 = vmatpush3.msra.mxu0 %v4630_v30  ;;  %3834 = vmatprep.mubr.f32.mxu1 %v4694_v62 }
 0x114   : > { %3846 = vmatprep.subr.mxu0 %v4637_v34  ;;  %3864 = vmatprep.subr.mxu1 %v4607_v16 }
 0x115   : > { %3818 = vmatmul.mubr.f32.gmra.mxu0 %v735_v24  ;;  %3865 = vmatpush3.msra.mxu1 %v4607_v16 }
 0x116   : > { %3847 = vmatpush3.msra.mxu0 %v4637_v34  ;;  %3848 = vmatprep.mubr.f32.mxu0 %v4613_v20 }
 0x117   : > { %3835 = vmatmul.mubr.f32.gmra.mxu1 %v4696_v46  ;;  %3866 = vmatprep.subr.mxu1 %v4610_v19 }
 0x118   : > { %3837 = vmatprep.mubr.f32.mxu1 %v4698_v63  ;;  %3867 = vmatpush3.msra.mxu1 %v4610_v19 }
 0x119   : > { %3849 = vmatmul.mubr.f32.vlgmr.msra.gmra.mxu0 %v4616_v21  ;;  %3880 = vmatprep.subr.mxu0 %v4640_v35 }
 0x11a   : > { %3851 = vmatprep.mubr.f32.mxu0 %v4619_v22  ;;  %3881 = vmatpush3.msra.mxu0 %v4640_v35 }
 0x11b   : > { %3838 = vmatmul.mubr.f32.gmra.mxu1 %v4710_v3  ;;  %3900 = vmatprep.subr.mxu1 %v4603_v14 }
 0x11c   : > { %3868 = vmatprep.mubr.f32.mxu1 %v663_v31  ;;  %3882 = vmatprep.subr.mxu0 %v4643_v36 }
 0x11d   : > { %3852 = vmatmul.mubr.f32.gmra.mxu0 %v4646_v26 }
 0x11e   : > { %3854 = vmatprep.mubr.f32.mxu0 %v4702_v2  ;;  %3883 = vmatpush3.msra.mxu0 %v4643_v36 }
 0x11f   : > { %3869 = vmatmul.mubr.f32.vlgmr.msra.gmra.mxu1 %v673_v32  ;;  %3884 = vmatprep.subr.mxu0 %v4649_v37 }
 0x120   : > { %3901 = vmatpush3.msra.mxu1 %v4603_v14  ;;  %3871 = vmatprep.mubr.f32.mxu1 %v683_v33 }
 0x121   : > { %3855 = vmatmul.mubr.f32.gmra.mxu0 %v4705_v52  ;;  %3902 = vmatprep.subr.mxu1 %v4605_v15  ;;  %v1387_v52 = vld [vmem:[#allocation2] sm:$0xff] }
 0x122   : > { %3857 = vmatprep.mubr.f32.mxu0 %v4708_v53  ;;  %3885 = vmatpush3.msra.mxu0 %v4649_v37 }
 0x123   : > { %3872 = vmatmul.mubr.f32.gmra.mxu1 %v693_v28  ;;  %3886 = vmatprep.subr.mxu0 %v4662_v41 }
 0x124   : > { %3903 = vmatpush3.msra.mxu1 %v4605_v15  ;;  %3874 = vmatprep.mubr.f32.mxu1 %v703_v4 }
 0x125   : > { %3858 = vmatmul.mubr.f32.gmra.mxu0 %v4716_v7  ;;  %3904 = vmatprep.subr.mxu1 %v4607_v16 }
 0x126   : > { %3887 = vmatpush3.msra.mxu0 %v4662_v41  ;;  %3888 = vmatprep.mubr.f32.mxu0 %v4597_v11 }
 0x127   : > { %3875 = vmatmul.mubr.f32.gmra.mxu1 %v713_v5 }
 0x128   : > { %3905 = vmatpush3.msra.mxu1 %v4607_v16  ;;  %3877 = vmatprep.mubr.f32.mxu1 %v723_v6 }
 0x129   : > { %3889 = vmatmul.mubr.f32.vlgmr.msra.gmra.mxu0 %v4599_v12  ;;  %3906 = vmatprep.subr.mxu1 %v4610_v19 }
 0x12a   : > { %3891 = vmatprep.mubr.f32.mxu0 %v4601_v13  ;;  %3907 = vmatpush3.msra.mxu1 %v4610_v19 }
 0x12b   : > { %3878 = vmatmul.mubr.f32.gmra.mxu1 %v733_v17  ;;  %v1386_v17 = vld [vmem:[#allocation2 + $0x30] sm:$0xff] }
 0x12c   : > { %3908 = vmatprep.mubr.f32.mxu1 %v4597_v11 }
 0x12d   : > { %3892 = vmatmul.mubr.f32.gmra.mxu0 %v4627_v29 }
 0x12e   : > { %3894 = vmatprep.mubr.f32.mxu0 %v4694_v62 }
 0x12f   : > { %3909 = vmatmul.mubr.f32.vlgmr.msra.gmra.mxu1 %v4599_v12 }
 0x130   : > { %3911 = vmatprep.mubr.f32.mxu1 %v4601_v13 }
 0x131   : > { %3895 = vmatmul.mubr.f32.gmra.mxu0 %v4696_v46 }
 0x132   : > { %3897 = vmatprep.mubr.f32.mxu0 %v4698_v63 }
 0x133   : > { %3912 = vmatmul.mubr.f32.gmra.mxu1 %v4627_v29 }
 0x134   : > { %3914 = vmatprep.mubr.f32.mxu1 %v4694_v62 }
 0x135   : > { %3898 = vmatmul.mubr.f32.gmra.mxu0 %v4710_v3 }
 0x137   : > { %3915 = vmatmul.mubr.f32.gmra.mxu1 %v4696_v46 }
 0x138   : > { %3917 = vmatprep.mubr.f32.mxu1 %v4698_v63 }
 0x13b   : > { %3918 = vmatmul.mubr.f32.gmra.mxu1 %v4710_v3 }
 0x1c6   : > { %v3810_v11 = vpop.f32.mrf.mxu0 }
 0x1c8   : > { %v667_v12 = vpop.f32.mrf.mxu0 }
 0x1ca   : > { %v3813_v14 = vpop.f32.mrf.mxu0 }
 0x1cc   : > { %v687_v13 = vpop.f32.mrf.mxu0 }
 0x1ce   : > { %v3830_v15 = vpop.f32.mrf.mxu1 }
 0x1cf   : > { %v835_v49 = vadd.f32 %v3830_v15, %v3810_v11  ;;  %v1410_v15 = vld [vmem:[#allocation3] sm:$0xff] }
 0x1d0   : > { %v828_v16 = vpop.f32.mrf.mxu1 }
 0x1d1   : > { %v3816_v19 = vpop.f32.mrf.mxu0  ;;  %v829_v27 = vadd.f32 %v828_v16, %v667_v12 }
 0x1d2   : > { %v3833_v20 = vpop.f32.mrf.mxu1 }
 0x1d3   : > { %v707_v21 = vpop.f32.mrf.mxu0  ;;  %v847_v58 = vadd.f32 %v3833_v20, %v3813_v14 }
 0x1d4   : > { %v840_v22 = vpop.f32.mrf.mxu1 }
 0x1d5   : > { %v3819_v29 = vpop.f32.mrf.mxu0  ;;  %v841_v61 = vadd.f32 %v840_v22, %v687_v13 }
 0x1d7   : > { %v4804_v30 = vpop.f32.mrf.mxu0  ;;  %v3836_v31 = vpop.f32.mrf.mxu1 }
 0x1d8   : > { %v859_v63 = vadd.f32 %v3836_v31, %v3816_v19  ;;  %v1389_v31 = vld [vmem:[#allocation2 + $0x10] sm:$0xff] }
 0x1d9   : > { %v3850_v32 = vpop.f32.mrf.mxu0  ;;  %v852_v33 = vpop.f32.mrf.mxu1 }
 0x1da   : > { %v958_v54 = vadd.f32 %v3850_v32, %v835_v49  ;;  %v853_v5 = vadd.f32 %v852_v33, %v707_v21 }
 0x1db   : > { %v950_v34 = vpop.f32.mrf.mxu0  ;;  %v3839_v35 = vpop.f32.mrf.mxu1 }
 0x1dc   : > { %v951_v39 = vadd.f32 %v950_v34, %v829_v27  ;;  %v871_v24 = vadd.f32 %v3839_v35, %v3819_v29 }
 0x1dd   : > { %v3853_v36 = vpop.f32.mrf.mxu0  ;;  %v864_v26 = vpop.f32.mrf.mxu1 }
 0x1de   : > { %v972_v0 = vadd.f32 %v3853_v36, %v847_v58  ;;  %v865_v32 = vadd.f32 %v864_v26, %v4804_v30 }
 0x1df   : > { %v964_v37 = vpop.f32.mrf.mxu0  ;;  %v3870_v25 = vpop.f32.mrf.mxu1 }
 0x1e0   : > { %v1085_v57 = vadd.f32 %v3870_v25, %v958_v54  ;;  %v965_v53 = vadd.f32 %v964_v37, %v841_v61  ;;  %v1388_v25 = vld [vmem:[#allocation2 + $0x18] sm:$0xff]  ;;  %v1391_v54 = vld [vmem:[#allocation2 + $0x20] sm:$0xff] }
 0x1e1   : > { %v3856_v41 = vpop.f32.mrf.mxu0  ;;  %v1076_v42 = vpop.f32.mrf.mxu1 }
 0x1e2   : > { %v1077_v62 = vadd.f32 %v1076_v42, %v951_v39  ;;  %v986_v6 = vadd.f32 %v3856_v41, %v859_v63  ;;  %v1413_v42 = vld [vmem:[#allocation3 + $0x20] sm:$0xff] }
 0x1e3   : > { %v978_v43 = vpop.f32.mrf.mxu0  ;;  %v3873_v28 = vpop.f32.mrf.mxu1 }
 0x1e4   : > { %v1101_v7 = vadd.f32 %v3873_v28, %v972_v0  ;;  %v979_v11 = vadd.f32 %v978_v43, %v853_v5  ;;  %v1417_v5 = vld [vmem:[#allocation3 + $0x38] sm:$0xff] }
 0x1e5   : > { %v3859_v44 = vpop.f32.mrf.mxu0  ;;  %v1092_v45 = vpop.f32.mrf.mxu1 }
 0x1e6   : > { %v1093_v18 = vadd.f32 %v1092_v45, %v965_v53  ;;  %v1000_v33 = vadd.f32 %v3859_v44, %v871_v24 }
 0x1e7   : > { %v992_v47 = vpop.f32.mrf.mxu0  ;;  %v3876_v48 = vpop.f32.mrf.mxu1 }
 0x1e8   : > { %v1117_v12 = vadd.f32 %v3876_v48, %v986_v6  ;;  %v993_v28 = vadd.f32 %v992_v47, %v865_v32 }
 0x1e9   : > { %v3890_v50 = vpop.f32.mrf.mxu0  ;;  %v1108_v51 = vpop.f32.mrf.mxu1 }
 0x1ea   : > { %v1222_v46 = vadd.f32 %v3890_v50, %v1085_v57  ;;  %v1109_v29 = vadd.f32 %v1108_v51, %v979_v11  ;;  %v1412_v50 = vld [vmem:[#allocation3 + $0x10] sm:$0xff] }
 0x1eb   : > { %v1215_v55 = vpop.f32.mrf.mxu0  ;;  %v3879_v56 = vpop.f32.mrf.mxu1 }
 0x1ec   : > { %v1216_v3 = vadd.f32 %v1215_v55, %v1077_v62  ;;  %v1133_v45 = vadd.f32 %v3879_v56, %v1000_v33  ;;  %v1390_v62 = vld [vmem:[#allocation2 + $0x8] sm:$0xff] }
 0x1ed   : > { %v3893_v59 = vpop.f32.mrf.mxu0  ;;  %v1124_v60 = vpop.f32.mrf.mxu1 }
 0x1ee   : > { %v1234_v14 = vadd.f32 %v3893_v59, %v1101_v7  ;;  %v1125_v51 = vadd.f32 %v1124_v60, %v993_v28  ;;  %v1415_v59 = vld [vmem:[#allocation3 + $0x8] sm:$0xff] }
 0x1ef   : > { %v1227_v1 = vpop.f32.mrf.mxu0  ;;  %v3910_v2 = vpop.f32.mrf.mxu1  ;;  %v1392_v7 = vld [vmem:[#allocation2 + $0x28] sm:$0xff] }
 0x1f0   : > { %v1339_v4 = vadd.f32 %v3910_v2, %v1222_v46  ;;  %v1228_v19 = vadd.f32 %v1227_v1, %v1093_v18  ;;  %v1414_v1 = vld [vmem:[#allocation3 + $0x28] sm:$0xff]  ;;  %v1416_v18 = vld [vmem:[#allocation3 + $0x30] sm:$0xff] }
 0x1f1   : > { %v3896_v8 = vpop.f32.mrf.mxu0  ;;  %v1332_v10 = vpop.f32.mrf.mxu1 }
 0x1f2   : > { %v1379_v23 = vmul.f32 %v1339_v4, %v1339_v4  ;;  %v1395_v38 = vadd.f32 %v1387_v52, %v1339_v4  ;;  %v1333_v40 = vadd.f32 %v1332_v10, %v1216_v3  ;;  %v1246_v35 = vadd.f32 %v3896_v8, %v1117_v12  ;;  %v1393_v52 = vld [vmem:[#allocation2 + $0x38] sm:$0xff] }
 0x1f3   : > { %v1239_v13 = vpop.f32.mrf.mxu0  ;;  %v3913_v16 = vpop.f32.mrf.mxu1 }
 0x1f4   : > { %1403 = vst [vmem:[#allocation2] sm:$0xff] %v1395_v38  ;;  %v1419_v20 = vadd.f32 %v1411_v9, %v1379_v23  ;;  %v1378_v21 = vmul.f32 %v1333_v40, %v1333_v40  ;;  %v1394_v22 = vadd.f32 %v1386_v17, %v1333_v40  ;;  %v1351_v36 = vadd.f32 %v3913_v16, %v1234_v14 }
 0x1f5   : > { %v3899_v34 = vpop.f32.mrf.mxu0  ;;  %v1344_v37 = vpop.f32.mrf.mxu1  ;;  %v1240_v30 = vadd.f32 %v1239_v13, %v1109_v29 }
 0x1f6   : > { %1427 = vst [vmem:[#allocation3 + $0x18] sm:$0xff] %v1419_v20  ;;  %1402 = vst [vmem:[#allocation2 + $0x30] sm:$0xff] %v1394_v22  ;;  %v1418_v41 = vadd.f32 %v1410_v15, %v1378_v21  ;;  %v1345_v43 = vadd.f32 %v1344_v37, %v1228_v19  ;;  %v1381_v48 = vmul.f32 %v1351_v36, %v1351_v36 }
 0x1f7   : > { %v1397_v49 = vadd.f32 %v1389_v31, %v1351_v36  ;;  %v3916_v27 = vpop.f32.mrf.mxu1  ;;  %v1251_v26 = vpop.f32.mrf.mxu0  ;;  %v1258_v57 = vadd.f32 %v3899_v34, %v1133_v45 }
 0x1f8   : > { %1426 = vst [vmem:[#allocation3] sm:$0xff] %v1418_v41  ;;  %v1380_v44 = vmul.f32 %v1345_v43, %v1345_v43  ;;  %v1396_v55 = vadd.f32 %v1388_v25, %v1345_v43  ;;  %v1363_v39 = vadd.f32 %v3916_v27, %v1246_v35  ;;  %v1421_v58 = vadd.f32 %v1413_v42, %v1381_v48 }
 0x1f9   : > { %1405 = vst [vmem:[#allocation2 + $0x10] sm:$0xff] %v1397_v49  ;;  %v1356_v61 = vpop.f32.mrf.mxu1  ;;  %v1252_v0 = vadd.f32 %v1251_v26, %v1125_v51 }
 0x1fa   : > { %1404 = vst [vmem:[#allocation2 + $0x18] sm:$0xff] %v1396_v55  ;;  %v1420_v47 = vadd.f32 %v1412_v50, %v1380_v44  ;;  %v1383_v56 = vmul.f32 %v1363_v39, %v1363_v39  ;;  %v1399_v46 = vadd.f32 %v1391_v54, %v1363_v39  ;;  %v1357_v63 = vadd.f32 %v1356_v61, %v1240_v30 }
 0x1fb   : > { %1429 = vst [vmem:[#allocation3 + $0x20] sm:$0xff] %v1421_v58  ;;  %v3919_v2 = vpop.f32.mrf.mxu1 }
 0x1fc   : > { %1428 = vst [vmem:[#allocation3 + $0x10] sm:$0xff] %v1420_v47  ;;  %1407 = vst [vmem:[#allocation2 + $0x20] sm:$0xff] %v1399_v46  ;;  %v1423_v53 = vadd.f32 %v1415_v59, %v1383_v56  ;;  %v1382_v60 = vmul.f32 %v1357_v63, %v1357_v63  ;;  %v1398_v3 = vadd.f32 %v1390_v62, %v1357_v63 }
 0x1fd   : > { %v1375_v4 = vadd.f32 %v3919_v2, %v1258_v57  ;;  %v1368_v6 = vpop.f32.mrf.mxu1 }
 0x1fe   : > { %1431 = vst [vmem:[#allocation3 + $0x8] sm:$0xff] %v1423_v53  ;;  %1406 = vst [vmem:[#allocation2 + $0x8] sm:$0xff] %v1398_v3  ;;  %v1422_v8 = vadd.f32 %v1414_v1, %v1382_v60  ;;  %v1369_v17 = vadd.f32 %v1368_v6, %v1252_v0 }
 0x1ff   : > { %v1385_v9 = vmul.f32 %v1375_v4, %v1375_v4  ;;  %v1401_v10 = vadd.f32 %v1393_v52, %v1375_v4 }
 0x200   : > { %1430 = vst [vmem:[#allocation3 + $0x28] sm:$0xff] %v1422_v8  ;;  %v1384_v38 = vmul.f32 %v1369_v17, %v1369_v17  ;;  %v1400_v40 = vadd.f32 %v1392_v7, %v1369_v17 }
 0x201   : > { %1409 = vst [vmem:[#allocation2 + $0x38] sm:$0xff] %v1401_v10  ;;  %v1425_v23 = vadd.f32 %v1417_v5, %v1385_v9 }
 0x202   : > { %1408 = vst [vmem:[#allocation2 + $0x28] sm:$0xff] %v1400_v40  ;;  %v1424_v24 = vadd.f32 %v1416_v18, %v1384_v38 }
 0x203   : > { %1433 = vst [vmem:[#allocation3 + $0x38] sm:$0xff] %v1425_v23 }
 0x204   : > { %1432 = vst [vmem:[#allocation3 + $0x30] sm:$0xff] %v1424_v24 }
 0x205 PF: > { %p3554_p12 = scmp.ne.s32.totalorder %s4310_s14, 1 }
 0x207   : > { %1436 = sbr.rel (%p3554_p12) target bundleno = 1079 (0x437), region = 64 }
 0x20c   : > { %s3555_s26 = sshll.u32 %s4306_s13, 5  ;;  %v1437_v11 = vld [vmem:[%s5625_s1] sm:$0xff]  ;;  %vm1455_vm2 = vcmask 261120   ;;  %v1438_v12 = vld [vmem:[%s5625_s1 + $0x8] sm:$0xff]  ;;  %v1439_v14 = vld [vmem:[%s5625_s1 + $0x10] sm:$0xff]  ;;  %v4325_v20 = vmov 0  }
 0x20d   : > { %s1450_s22 = scalar_lea.vmem %s5624_s0, %s3555_s26  ;;  %v1457_v13 = vsel %vm1455_vm2, %v1437_v11, 0  ;;  %v1460_v15 = vsel %vm1455_vm2, %v1438_v12, 0  ;;  %v1463_v16 = vsel %vm1455_vm2, %v1439_v14, 0  ;;  %v1440_v19 = vld [vmem:[%s5625_s1 + $0x18] sm:$0xff]  ;;  %4266 = vset.pattern.permute.xlu0 %v4325_v20  ;;  %4267 = vset.pattern.permute.xlu1 %v4325_v20  ;;  %v2272_v39 = vld [vmem:[%s5631_s7 + $0x30] sm:$0xff]  ;;  %v2271_v61 = vld [vmem:[%s5631_s7 + $0x28] sm:$0xff] }
 0x20e   : > { %v1454_v21 = vld [vmem:[%s1450_s22 + $0x18] sm:$0xff]  ;;  %v1453_v22 = vld [vmem:[%s1450_s22 + $0x10] sm:$0xff]  ;;  %v1452_v31 = vld [vmem:[%s1450_s22 + $0x8] sm:$0xff]  ;;  %v4827_v32 = vand.u32 4294901760, %v1457_v13  ;;  %v4829_v33 = vand.u32 4294901760, %v1460_v15  ;;  %v4831_v34 = vand.u32 4294901760, %v1463_v16 }
 0x20f   : > { %v4833_v36 = vand.u32 4294901760, %v1454_v21  ;;  %v4835_v37 = vand.u32 4294901760, %v1453_v22  ;;  %v4837_v25 = vand.u32 4294901760, %v1452_v31  ;;  %v1451_v29 = vld [vmem:[%s1450_s22] sm:$0xff]  ;;  %v1466_v35 = vsel %vm1455_vm2, %v1440_v19, 0  ;;  %v2273_v45 = vld [vmem:[%s5631_s7 + $0x38] sm:$0xff] }
 0x210   : > { %v4840_v41 = vand.u32 4294901760, %v1451_v29  ;;  %v4843_v42 = vsub.f32 %v1457_v13, %v4827_v32  ;;  %v4846_v43 = vsub.f32 %v1460_v15, %v4829_v33  ;;  %v4849_v28 = vsub.f32 %v1463_v16, %v4831_v34  ;;  %3948 = vmatprep.mubr.f32.mxu1 %v4827_v32  ;;  %v2329_v48 = vld [vmem:[%s5632_s8 + $0x38] sm:$0xff]  ;;  %2311 = vperm.xlu0 %4266, %v2273_v45   ;;  %v1441_v52 = vld [vmem:[%s5625_s1 + $0x20] sm:$0xff]  ;;  %v1442_v53 = vld [vmem:[%s5625_s1 + $0x28] sm:$0xff] }
 0x211   : > { %3920 = vmatprep.subr.mxu0 %v4833_v36  ;;  %v4860_v49 = vsub.f32 %v1454_v21, %v4833_v36  ;;  %v4863_v50 = vsub.f32 %v1453_v22, %v4835_v37  ;;  %v4865_v27 = vand.u32 4294901760, %v1466_v35  ;;  %v4868_v54 = vsub.f32 %v1452_v31, %v4837_v25  ;;  %2367 = vperm.xlu1 %4267, %v2329_v48   ;;  %v1443_v60 = vld [vmem:[%s5625_s1 + $0x30] sm:$0xff]  ;;  %v1444_v10 = vld [vmem:[%s5625_s1 + $0x38] sm:$0xff] }
 0x212   : > { %3921 = vmatpush3.msra.mxu0 %v4833_v36  ;;  %v1551_v30 = vand.u32 4294901760, %v4843_v42  ;;  %v1561_v26 = vand.u32 4294901760, %v4846_v43  ;;  %v1571_v44 = vand.u32 4294901760, %v4849_v28  ;;  %v4875_v55 = vsub.f32 %v1451_v29, %v4840_v41 }
 0x213   : > { %3922 = vmatprep.subr.mxu0 %v4835_v37  ;;  %v4882_v51 = vand.u32 4294901760, %v4860_v49  ;;  %v4885_v57 = vand.u32 4294901760, %v4863_v50  ;;  %v4888_v58 = vsub.f32 %v1466_v35, %v4865_v27  ;;  %v4891_v59 = vand.u32 4294901760, %v4868_v54 }
 0x214   : > { %3923 = vmatpush3.msra.mxu0 %v4835_v37  ;;  %v1552_v62 = vsub.f32 %v4843_v42, %v1551_v30  ;;  %v1562_v47 = vsub.f32 %v4846_v43, %v1561_v26  ;;  %v1572_v56 = vsub.f32 %v4849_v28, %v1571_v44  ;;  %v4907_v46 = vand.u32 4294901760, %v4875_v55  ;;  %2306 = vperm.xlu0 %4266, %v2272_v39  }
 0x215   : > { %3924 = vmatprep.subr.mxu0 %v4837_v25  ;;  %v1657_v63 = vsub.f32 %v4860_v49, %v4882_v51  ;;  %v1664_v0 = vsub.f32 %v4863_v50, %v4885_v57  ;;  %v1581_v1 = vand.u32 4294901760, %v4888_v58  ;;  %v1671_v2 = vsub.f32 %v4868_v54, %v4891_v59  ;;  %2301 = vperm.xlu1 %4267, %v2271_v61  }
 0x216   : > { %3925 = vmatpush3.msra.mxu0 %v4837_v25  ;;  %v1553_v3 = vand.u32 4294901760, %v1552_v62  ;;  %v1563_v4 = vand.u32 4294901760, %v1562_v47  ;;  %v1573_v5 = vand.u32 4294901760, %v1572_v56  ;;  %v1678_v6 = vsub.f32 %v4875_v55, %v4907_v46 }
 0x217   : > { %3926 = vmatprep.subr.mxu0 %v4840_v41  ;;  %v1658_v7 = vand.u32 4294901760, %v1657_v63  ;;  %v1665_v8 = vand.u32 4294901760, %v1664_v0  ;;  %v1582_v9 = vsub.f32 %v4888_v58, %v1581_v1  ;;  %v1672_v17 = vand.u32 4294901760, %v1671_v2 }
 0x218   : > { %3927 = vmatpush3.msra.mxu0 %v4840_v41  ;;  %3928 = vmatprep.mubr.f32.mxu0 %v1553_v3  ;;  %v1469_v18 = vsel %vm1455_vm2, %v1441_v52, 0  ;;  %v1472_v23 = vsel %vm1455_vm2, %v1442_v53, 0  ;;  %v1475_v38 = vsel %vm1455_vm2, %v1443_v60, 0  ;;  %v1679_v14 = vand.u32 4294901760, %v1678_v6 }
 0x219   : > { %3929 = vmatmul.mubr.f32.vlgmr.msra.gmra.mxu0 %v1563_v4  ;;  %3940 = vmatprep.subr.mxu1 %v1658_v7  ;;  %v1583_v40 = vand.u32 4294901760, %v1582_v9  ;;  %v4940_v24 = vand.u32 4294901760, %v1469_v18  ;;  %v4942_v11 = vand.u32 4294901760, %v1472_v23  ;;  %v4944_v12 = vand.u32 4294901760, %v1475_v38 }
 0x21a   : > { %3941 = vmatpush3.msra.mxu1 %v1658_v7  ;;  %3931 = vmatprep.mubr.f32.mxu0 %v1573_v5  ;;  %v1478_v13 = vsel %vm1455_vm2, %v1444_v10, 0  ;;  %vm2394_vm3 = vcmask 523264  }
 0x21b   : > { %3942 = vmatprep.subr.mxu1 %v1665_v8  ;;  %3960 = vmatprep.subr.mxu0 %v4860_v49  ;;  %v4949_v15 = vsub.f32 %v1469_v18, %v4940_v24  ;;  %v4952_v16 = vsub.f32 %v1472_v23, %v4942_v11  ;;  %v4955_v19 = vsub.f32 %v1475_v38, %v4944_v12  ;;  %v4957_v20 = vand.u32 4294901760, %v1478_v13 }
 0x21c   : > { %3943 = vmatpush3.msra.mxu1 %v1665_v8  ;;  %3961 = vmatpush3.msra.mxu0 %v4860_v49 }
 0x21d   : > { %3932 = vmatmul.mubr.f32.gmra.mxu0 %v1583_v40  ;;  %3944 = vmatprep.subr.mxu1 %v1672_v17  ;;  %v1591_v21 = vand.u32 4294901760, %v4949_v15  ;;  %v1601_v22 = vand.u32 4294901760, %v4952_v16  ;;  %v1611_v31 = vand.u32 4294901760, %v4955_v19  ;;  %v4964_v29 = vsub.f32 %v1478_v13, %v4957_v20 }
 0x21e   : > { %3945 = vmatpush3.msra.mxu1 %v1672_v17  ;;  %3962 = vmatprep.subr.mxu0 %v4863_v50 }
 0x21f   : > { %3946 = vmatprep.subr.mxu1 %v1679_v14  ;;  %v1592_v35 = vsub.f32 %v4949_v15, %v1591_v21  ;;  %v1602_v45 = vsub.f32 %v4952_v16, %v1601_v22  ;;  %v1612_v48 = vsub.f32 %v4955_v19, %v1611_v31  ;;  %3963 = vmatpush3.msra.mxu0 %v4863_v50  ;;  %v1621_v49 = vand.u32 4294901760, %v4964_v29 }
 0x220   : > { %3947 = vmatpush3.msra.mxu1 %v1679_v14  ;;  %3964 = vmatprep.subr.mxu0 %v4868_v54 }
 0x221   : > { %v1593_v39 = vand.u32 4294901760, %v1592_v35  ;;  %v1603_v61 = vand.u32 4294901760, %v1602_v45  ;;  %3949 = vmatmul.mubr.f32.vlgmr.msra.gmra.mxu1 %v4829_v33  ;;  %3980 = vmatprep.subr.mxu1 %v4833_v36  ;;  %v1613_v62 = vand.u32 4294901760, %v1612_v48  ;;  %v1622_v47 = vsub.f32 %v4964_v29, %v1621_v49 }
 0x222   : > { %3981 = vmatpush3.msra.mxu1 %v4833_v36  ;;  %3951 = vmatprep.mubr.f32.mxu1 %v4831_v34 }
 0x223   : > { %3934 = vmatprep.mubr.f32.mxu0 %v1593_v39  ;;  %3982 = vmatprep.subr.mxu1 %v4835_v37  ;;  %v1623_v50 = vand.u32 4294901760, %v1622_v47 }
 0x224   : > { %3935 = vmatmul.mubr.f32.gmra.mxu0 %v1603_v61  ;;  %3983 = vmatpush3.msra.mxu1 %v4835_v37 }
 0x225   : > { %3937 = vmatprep.mubr.f32.mxu0 %v1613_v62  ;;  %3952 = vmatmul.mubr.f32.gmra.mxu1 %v4865_v27 }
 0x226   : > { %3965 = vmatpush3.msra.mxu0 %v4868_v54  ;;  %3954 = vmatprep.mubr.f32.mxu1 %v4940_v24  ;;  %v2328_v54 = vld [vmem:[%s5632_s8 + $0x30] sm:$0xff] }
 0x227   : > { %3966 = vmatprep.subr.mxu0 %v4875_v55  ;;  %3984 = vmatprep.subr.mxu1 %v4837_v25 }
 0x228   : > { %3938 = vmatmul.mubr.f32.gmra.mxu0 %v1623_v50  ;;  %3985 = vmatpush3.msra.mxu1 %v4837_v25 }
 0x229   : > { %3967 = vmatpush3.msra.mxu0 %v4875_v55  ;;  %3968 = vmatprep.mubr.f32.mxu0 %v4843_v42  ;;  %v2269_v42 = vld [vmem:[%s5631_s7 + $0x18] sm:$0xff] }
 0x22a   : > { %3955 = vmatmul.mubr.f32.gmra.mxu1 %v4942_v11  ;;  %3986 = vmatprep.subr.mxu1 %v4840_v41 }
 0x22b   : > { %3957 = vmatprep.mubr.f32.mxu1 %v4944_v12  ;;  %3987 = vmatpush3.msra.mxu1 %v4840_v41 }
 0x22c   : > { %3969 = vmatmul.mubr.f32.vlgmr.msra.gmra.mxu0 %v4846_v43  ;;  %4000 = vmatprep.subr.mxu0 %v4882_v51  ;;  %v2268_v43 = vld [vmem:[%s5631_s7 + $0x10] sm:$0xff] }
 0x22d   : > { %3971 = vmatprep.mubr.f32.mxu0 %v4849_v28  ;;  %4001 = vmatpush3.msra.mxu0 %v4882_v51  ;;  %v2323_v28 = vld [vmem:[%s5632_s8 + $0x8] sm:$0xff] }
 0x22e   : > { %3958 = vmatmul.mubr.f32.gmra.mxu1 %v4957_v20  ;;  %4020 = vmatprep.subr.mxu1 %v4833_v36 }
 0x22f   : > { %3988 = vmatprep.mubr.f32.mxu1 %v1551_v30  ;;  %4002 = vmatprep.subr.mxu0 %v4885_v57  ;;  %v2386_v30 = vld [vmem:[%s5626_s2] sm:$0xff] }
 0x230   : > { %3972 = vmatmul.mubr.f32.gmra.mxu0 %v4888_v58  ;;  %2362 = vperm.xlu0 %4266, %v2328_v54  }
 0x231   : > { %3974 = vmatprep.mubr.f32.mxu0 %v4949_v15  ;;  %4003 = vmatpush3.msra.mxu0 %v4885_v57 }
 0x232   : > { %3989 = vmatmul.mubr.f32.vlgmr.msra.gmra.mxu1 %v1561_v26  ;;  %4004 = vmatprep.subr.mxu0 %v4891_v59  ;;  %v2396_v26 = vsel %vm2394_vm3, %v2386_v30, 0 }
 0x233   : > { %4021 = vmatpush3.msra.mxu1 %v4833_v36  ;;  %3991 = vmatprep.mubr.f32.mxu1 %v1571_v44  ;;  %v2270_v36 = vld [vmem:[%s5631_s7 + $0x20] sm:$0xff]  ;;  %v5096_v44 = vand.u32 4294901760, %v2396_v26 }
 0x234   : > { %3975 = vmatmul.mubr.f32.gmra.mxu0 %v4952_v16  ;;  %4022 = vmatprep.subr.mxu1 %v4835_v37 }
 0x235   : > { %3977 = vmatprep.mubr.f32.mxu0 %v4955_v19  ;;  %4005 = vmatpush3.msra.mxu0 %v4891_v59  ;;  %5638 = vst [vmem:[#allocation6_spill] sm:$0xff] %v5096_v44  ;;  %v5099_v55 = vsub.f32 %v2396_v26, %v5096_v44 }
 0x236   : > { %3992 = vmatmul.mubr.f32.gmra.mxu1 %v1581_v1  ;;  %4006 = vmatprep.subr.mxu0 %v4907_v46 }
 0x237   : > { %4023 = vmatpush3.msra.mxu1 %v4835_v37  ;;  %3994 = vmatprep.mubr.f32.mxu1 %v1591_v21  ;;  %v2327_v37 = vld [vmem:[%s5632_s8 + $0x28] sm:$0xff]  ;;  %v5635_v51 = vand.u32 4294901760, %v5099_v55 }
 0x238   : > { %3978 = vmatmul.mubr.f32.gmra.mxu0 %v4964_v29  ;;  %4024 = vmatprep.subr.mxu1 %v4837_v25 }
 0x239   : > { %4007 = vmatpush3.msra.mxu0 %v4907_v46  ;;  %4008 = vmatprep.mubr.f32.mxu0 %v4827_v32  ;;  %v2495_v57 = vsub.f32 %v5099_v55, %v5635_v51 }
 0x23a   : > { %3995 = vmatmul.mubr.f32.gmra.mxu1 %v1601_v22  ;;  %2296 = vperm.xlu1 %4267, %v2270_v36  }
 0x23b   : > { %4025 = vmatpush3.msra.mxu1 %v4837_v25  ;;  %3997 = vmatprep.mubr.f32.mxu1 %v1611_v31  ;;  %v2326_v25 = vld [vmem:[%s5632_s8 + $0x20] sm:$0xff]  ;;  %v2496_v58 = vand.u32 4294901760, %v2495_v57 }
 0x23c   : > { %4009 = vmatmul.mubr.f32.vlgmr.msra.gmra.mxu0 %v4829_v33  ;;  %4026 = vmatprep.subr.mxu1 %v4840_v41 }
 0x23d   : > { %4011 = vmatprep.mubr.f32.mxu0 %v4831_v34  ;;  %4027 = vmatpush3.msra.mxu1 %v4840_v41  ;;  %v2267_v41 = vld [vmem:[%s5631_s7 + $0x8] sm:$0xff] }
 0x23e   : > { %3998 = vmatmul.mubr.f32.gmra.mxu1 %v1621_v49  ;;  %2357 = vperm.xlu0 %4266, %v2327_v37  }
 0x23f   : > { %4028 = vmatprep.mubr.f32.mxu1 %v4827_v32  ;;  %2291 = vperm.xlu1 %4267, %v2269_v42   ;;  %v2325_v32 = vld [vmem:[%s5632_s8 + $0x18] sm:$0xff] }
 0x240   : > { %4012 = vmatmul.mubr.f32.gmra.mxu0 %v4865_v27 }
 0x241   : > { %4014 = vmatprep.mubr.f32.mxu0 %v4940_v24 }
 0x242   : > { %4029 = vmatmul.mubr.f32.vlgmr.msra.gmra.mxu1 %v4829_v33  ;;  %2352 = vperm.xlu0 %4266, %v2326_v25   ;;  %v2324_v33 = vld [vmem:[%s5632_s8 + $0x10] sm:$0xff] }
 0x243   : > { %4031 = vmatprep.mubr.f32.mxu1 %v4831_v34  ;;  %2286 = vperm.xlu1 %4267, %v2268_v43   ;;  %v2266_v34 = vld [vmem:[%s5631_s7] sm:$0xff] }
 0x244   : > { %4015 = vmatmul.mubr.f32.gmra.mxu0 %v4942_v11 }
 0x245   : > { %4017 = vmatprep.mubr.f32.mxu0 %v4944_v12 }
 0x246   : > { %4032 = vmatmul.mubr.f32.gmra.mxu1 %v4865_v27  ;;  %2347 = vperm.xlu0 %4266, %v2325_v32   ;;  %v2322_v27 = vld [vmem:[%s5632_s8] sm:$0xff] }
 0x247   : > { %4034 = vmatprep.mubr.f32.mxu1 %v4940_v24  ;;  %2281 = vperm.xlu1 %4267, %v2267_v41  }
 0x248   : > { %4018 = vmatmul.mubr.f32.gmra.mxu0 %v4957_v20 }
 0x249   : > { %4056 = vmatprep.mubr.f32.mxu0 %v2496_v58 }
 0x24a   : > { %4035 = vmatmul.mubr.f32.gmra.mxu1 %v4942_v11  ;;  %2342 = vperm.xlu0 %4266, %v2324_v33  }
 0x24b   : > { %4037 = vmatprep.mubr.f32.mxu1 %v4944_v12  ;;  %2276 = vperm.xlu1 %4267, %v2266_v34  }
 0x24e   : > { %4038 = vmatmul.mubr.f32.gmra.mxu1 %v4957_v20  ;;  %2337 = vperm.xlu0 %4266, %v2323_v28  }
 0x24f   : > { %2332 = vperm.xlu1 %4267, %v2322_v27   ;;  %4084 = vmatprep.mubr.f32.mxu1 %v5096_v44 }
 0x28b   : > { %v5106_v4 = vpop.permute.xlu0 %2311 }
 0x28c   : > { %v5108_v7 = vpop.permute.xlu1 %2367 }
 0x28f   : > { %v5110_v18 = vpop.permute.xlu0 %2306 }
 0x290   : > { %v5112_v40 = vpop.permute.xlu1 %2301 }
 0x2ab   : > { %v5114_v13 = vpop.permute.xlu0 %2362 }
 0x2b5   : > { %v5116_v19 = vpop.permute.xlu1 %2296 }
 0x2b9   : > { %v5118_v29 = vpop.permute.xlu0 %2357 }
 0x2ba   : > { %v2292_v48 = vpop.permute.xlu1 %2291 }
 0x2bd   : > { %v5120_v54 = vpop.permute.xlu0 %2352 }
 0x2be   : > { %v2287_v43 = vpop.permute.xlu1 %2286 }
 0x2d9   : > { %v3930_v59 = vpop.f32.mrf.mxu0 }
 0x2db   : > { %v1555_v56 = vpop.f32.mrf.mxu0 }
 0x2dd   : > { %v3933_v46 = vpop.f32.mrf.mxu0 }
 0x2df   : > { %v1575_v63 = vpop.f32.mrf.mxu0 }
 0x2e1   : > { %v3950_v0 = vpop.f32.mrf.mxu1 }
 0x2e2   : > { %v1723_v32 = vadd.f32 %v3950_v0, %v3930_v59 }
 0x2e3   : > { %v1716_v1 = vpop.f32.mrf.mxu1 }
 0x2e4   : > { %v3936_v2 = vpop.f32.mrf.mxu0  ;;  %v1717_v26 = vadd.f32 %v1716_v1, %v1555_v56 }
 0x2e5   : > { %v3953_v52 = vpop.f32.mrf.mxu1 }
 0x2e6   : > { %v1595_v53 = vpop.f32.mrf.mxu0  ;;  %v1735_v61 = vadd.f32 %v3953_v52, %v3933_v46 }
 0x2e7   : > { %v1728_v60 = vpop.f32.mrf.mxu1 }
 0x2e8   : > { %v3939_v3 = vpop.f32.mrf.mxu0  ;;  %v1729_v36 = vadd.f32 %v1728_v60, %v1575_v63  ;;  %v2348_v63 = vpop.permute.xlu0 %2347 }
 0x2ea   : > { %v1615_v5 = vpop.f32.mrf.mxu0  ;;  %v3956_v6 = vpop.f32.mrf.mxu1 }
 0x2eb   : > { %v1747_v41 = vadd.f32 %v3956_v6, %v3936_v2 }
 0x2ec   : > { %v3970_v8 = vpop.f32.mrf.mxu0  ;;  %v1740_v9 = vpop.f32.mrf.mxu1 }
 0x2ed   : > { %v1741_v27 = vadd.f32 %v1740_v9, %v1595_v53  ;;  %v1846_v57 = vadd.f32 %v3970_v8, %v1723_v32  ;;  %v2282_v53 = vpop.permute.xlu1 %2281 }
 0x2ee   : > { %v1838_v10 = vpop.f32.mrf.mxu0  ;;  %v3959_v17 = vpop.f32.mrf.mxu1 }
 0x2ef   : > { %v1839_v44 = vadd.f32 %v1838_v10, %v1717_v26 }
 0x2f0   : > { %v3973_v23 = vpop.f32.mrf.mxu0  ;;  %v1752_v38 = vpop.f32.mrf.mxu1 }
 0x2f1   : > { %v1860_v50 = vadd.f32 %v3973_v23, %v1735_v61  ;;  %v1759_v61 = vadd.f32 %v3959_v17, %v3939_v3  ;;  %v1753_v6 = vadd.f32 %v1752_v38, %v1615_v5 }
 0x2f2   : > { %v1852_v24 = vpop.f32.mrf.mxu0  ;;  %v3990_v11 = vpop.f32.mrf.mxu1 }
 0x2f3   : > { %v1853_v33 = vadd.f32 %v1852_v24, %v1729_v36 }
 0x2f4   : > { %v3976_v12 = vpop.f32.mrf.mxu0  ;;  %v1964_v14 = vpop.f32.mrf.mxu1 }
 0x2f5   : > { %v1874_v58 = vadd.f32 %v3976_v12, %v1747_v41  ;;  %v1965_v56 = vadd.f32 %v1964_v14, %v1839_v44  ;;  %v2387_v44 = vld [vmem:[%s5626_s2 + $0x8] sm:$0xff] }
 0x2f6   : > { %v1866_v15 = vpop.f32.mrf.mxu0  ;;  %v3993_v16 = vpop.f32.mrf.mxu1 }
 0x2f7   : > { %v1989_v25 = vadd.f32 %v3993_v16, %v1860_v50  ;;  %v1867_v51 = vadd.f32 %v1866_v15, %v1741_v27  ;;  %v1973_v16 = vadd.f32 %v3990_v11, %v1846_v57 }
 0x2f8   : > { %v3979_v20 = vpop.f32.mrf.mxu0  ;;  %v1980_v21 = vpop.f32.mrf.mxu1 }
 0x2f9   : > { %v1981_v46 = vadd.f32 %v1980_v21, %v1853_v33  ;;  %v1888_v24 = vadd.f32 %v3979_v20, %v1759_v61 }
 0x2fa   : > { %v1880_v22 = vpop.f32.mrf.mxu0  ;;  %v3996_v31 = vpop.f32.mrf.mxu1 }
 0x2fb   : > { %v2005_v50 = vadd.f32 %v3996_v31, %v1874_v58 }
 0x2fc   : > { %v4010_v35 = vpop.f32.mrf.mxu0  ;;  %v1996_v45 = vpop.f32.mrf.mxu1 }
 0x2fd   : > { %v1997_v9 = vadd.f32 %v1996_v45, %v1867_v51  ;;  %v2110_v1 = vadd.f32 %v4010_v35, %v1973_v16  ;;  %v2277_v35 = vpop.permute.xlu1 %2276 }
 0x2fe   : > { %v2103_v49 = vpop.f32.mrf.mxu0  ;;  %v3999_v39 = vpop.f32.mrf.mxu1 }
 0x2ff   : > { %v2021_v3 = vadd.f32 %v3999_v39, %v1888_v24  ;;  %v2104_v36 = vadd.f32 %v2103_v49, %v1965_v56 }
 0x300   : > { %v4013_v62 = vpop.f32.mrf.mxu0  ;;  %v2012_v47 = vpop.f32.mrf.mxu1 }
 0x301   : > { %v2122_v30 = vadd.f32 %v4013_v62, %v1989_v25  ;;  %v1881_v62 = vadd.f32 %v1880_v22, %v1753_v6  ;;  %v2343_v25 = vpop.permute.xlu0 %2342 }
 0x302   : > { %v2115_v37 = vpop.f32.mrf.mxu0  ;;  %v4030_v42 = vpop.f32.mrf.mxu1 }
 0x303   : > { %v2116_v59 = vadd.f32 %v2115_v37, %v1981_v46  ;;  %v2227_v10 = vadd.f32 %v4030_v42, %v2110_v1  ;;  %v2013_v32 = vadd.f32 %v2012_v47, %v1881_v62 }
 0x304   : > { %v4016_v34 = vpop.f32.mrf.mxu0  ;;  %v2220_v28 = vpop.f32.mrf.mxu1 }
 0x305   : > { %v2134_v8 = vadd.f32 %v4016_v34, %v2005_v50  ;;  %v2221_v51 = vadd.f32 %v2220_v28, %v2104_v36  ;;  %v2315_v42 = vmul.f32 %v2282_v53, %v2227_v10 }
 0x306   : > { %v2127_v52 = vpop.f32.mrf.mxu0  ;;  %v4033_v23 = vpop.f32.mrf.mxu1 }
 0x307   : > { %v2239_v60 = vadd.f32 %v4033_v23, %v2122_v30  ;;  %v2128_v17 = vadd.f32 %v2127_v52, %v1997_v9  ;;  %v2314_v30 = vmul.f32 %v2277_v35, %v2221_v51  ;;  %v2391_v9 = vld [vmem:[%s5626_s2 + $0x28] sm:$0xff] }
 0x308   : > { %v4019_v0 = vpop.f32.mrf.mxu0  ;;  %v2232_v2 = vpop.f32.mrf.mxu1  ;;  %v2411_v36 = vsel %vm2394_vm3, %v2391_v9, 0 }
 0x309   : > { %v2233_v12 = vadd.f32 %v2232_v2, %v2116_v59  ;;  %v2317_v15 = vmul.f32 %v2292_v48, %v2239_v60  ;;  %v2146_v5 = vadd.f32 %v4019_v0, %v2021_v3 }
 0x30a   : > { %v4036_v21 = vpop.f32.mrf.mxu1  ;;  %v2139_v11 = vpop.f32.mrf.mxu0 }
 0x30b   : > { %v2251_v31 = vadd.f32 %v4036_v21, %v2134_v8  ;;  %v2316_v38 = vmul.f32 %v2287_v43, %v2233_v12  ;;  %v2373_v45 = vadd.f32 %v2348_v63, %v2317_v15  ;;  %v2140_v48 = vadd.f32 %v2139_v11, %v2013_v32  ;;  %v2333_v63 = vpop.permute.xlu1 %2332 }
 0x30c   : > { %v2244_v37 = vpop.f32.mrf.mxu1  ;;  %v2399_v43 = vsel %vm2394_vm3, %v2387_v44, 0  ;;  %v2370_v59 = vadd.f32 %v2333_v63, %v2314_v30 }
 0x30d   : > { %v2245_v20 = vadd.f32 %v2244_v37, %v2128_v17  ;;  %v2319_v14 = vmul.f32 %v5112_v40, %v2251_v31  ;;  %v2372_v33 = vadd.f32 %v2343_v25, %v2316_v38  ;;  %v2388_v40 = vld [vmem:[%s5626_s2 + $0x10] sm:$0xff]  ;;  %v2381_v57 = vmax.f32 %v2373_v45, 0.0 }
 0x30e   : > { %v4039_v22 = vpop.f32.mrf.mxu1  ;;  %v5141_v23 = vand.u32 4294901760, %v2399_v43  ;;  %v2402_v61 = vsel %vm2394_vm3, %v2388_v40, 0  ;;  %v2378_v17 = vmax.f32 %v2370_v59, 0.0 }
 0x30f   : > { %v2318_v49 = vmul.f32 %v5116_v19, %v2245_v20  ;;  %v2263_v39 = vadd.f32 %v4039_v22, %v2146_v5  ;;  %v2375_v47 = vadd.f32 %v5118_v29, %v2319_v14  ;;  %v2338_v19 = vpop.permute.xlu0 %2337  ;;  %v2380_v60 = vmax.f32 %v2372_v33, 0.0  ;;  %v2392_v22 = vld [vmem:[%s5626_s2 + $0x30] sm:$0xff] }
 0x310   : > { %v2256_v41 = vpop.f32.mrf.mxu1  ;;  %v2371_v52 = vadd.f32 %v2338_v19, %v2315_v42  ;;  %v5151_v2 = vand.u32 4294901760, %v2381_v57  ;;  %v5162_v56 = vsub.f32 %v2399_v43, %v5141_v23  ;;  %v5164_v1 = vand.u32 4294901760, %v2402_v61 }
 0x311   : > { %v2374_v34 = vadd.f32 %v5120_v54, %v2318_v49  ;;  %v2321_v28 = vmul.f32 %v5106_v4, %v2263_v39  ;;  %v2257_v27 = vadd.f32 %v2256_v41, %v2140_v48  ;;  %v2383_v26 = vmax.f32 %v2375_v47, 0.0  ;;  %v2389_v54 = vld [vmem:[%s5626_s2 + $0x18] sm:$0xff] }
 0x312   : > { %v2405_v0 = vsel %vm2394_vm3, %v2389_v54, 0  ;;  %v5167_v12 = vand.u32 4294901760, %v2380_v60  ;;  %v5183_v10 = vsub.f32 %v2381_v57, %v5151_v2  ;;  %v2504_v32 = vand.u32 4294901760, %v5162_v56  ;;  %v2393_v41 = vld [vmem:[%s5626_s2 + $0x38] sm:$0xff] }
 0x313   : > { %v2382_v58 = vmax.f32 %v2374_v34, 0.0  ;;  %v2377_v29 = vadd.f32 %v5108_v7, %v2321_v28  ;;  %v2320_v46 = vmul.f32 %v5110_v18, %v2257_v27  ;;  %v5139_v4 = vand.u32 4294901760, %v2383_v26  ;;  %v2390_v18 = vld [vmem:[%s5626_s2 + $0x20] sm:$0xff] }
 0x314   : > { %v2408_v8 = vsel %vm2394_vm3, %v2390_v18, 0  ;;  %v5179_v15 = vand.u32 4294901760, %v2405_v0  ;;  %v5200_v5 = vsub.f32 %v2402_v61, %v5164_v1  ;;  %v5205_v20 = vsub.f32 %v2380_v60, %v5167_v12 }
 0x315   : > { %v5144_v16 = vand.u32 4294901760, %v2382_v58  ;;  %v2385_v50 = vmax.f32 %v2377_v29, 0.0  ;;  %v2376_v7 = vadd.f32 %v5114_v13, %v2320_v46  ;;  %v5154_v6 = vsub.f32 %v2383_v26, %v5139_v4 }
 0x316   : > { %v2379_v13 = vmax.f32 %v2371_v52, 0.0  ;;  %v5202_v38 = vand.u32 4294901760, %v2408_v8  ;;  %v5219_v35 = vand.u32 4294901760, %v2378_v17  ;;  %v5223_v45 = vsub.f32 %v2405_v0, %v5179_v15 }
 0x317   : > { %v5156_v24 = vand.u32 4294901760, %v2385_v50  ;;  %v2384_v53 = vmax.f32 %v2376_v7, 0.0  ;;  %v5170_v21 = vsub.f32 %v2382_v58, %v5144_v16  ;;  %v5193_v37 = vand.u32 4294901760, %v5154_v6 }
 0x318   : > { %v5195_v25 = vand.u32 4294901760, %v2379_v13  ;;  %v5225_v48 = vand.u32 4294901760, %v2411_v36  ;;  %v5233_v47 = vand.u32 4294901760, %v5183_v10  ;;  %v2505_v33 = vsub.f32 %v5162_v56, %v2504_v32 }
 0x319   : > { %v5173_v62 = vsub.f32 %v2385_v50, %v5156_v24  ;;  %v5175_v3 = vand.u32 4294901760, %v2384_v53  ;;  %4040 = vmatprep.subr.mxu0 %v5156_v24  ;;  %v5214_v14 = vand.u32 4294901760, %v5170_v21  ;;  %v2606_v42 = vsub.f32 %v5154_v6, %v5193_v37 }
 0x31a   : > { %4041 = vmatpush3.msra.mxu0 %v5156_v24  ;;  %v5239_v43 = vsub.f32 %v2379_v13, %v5195_v25  ;;  %v2514_v34 = vand.u32 4294901760, %v5200_v5  ;;  %v2414_v28 = vsel %vm2394_vm3, %v2392_v22, 0  ;;  %v5251_v30 = vand.u32 4294901760, %v5205_v20 }
 0x31b   : > { %v5186_v11 = vsub.f32 %v2384_v53, %v5175_v3  ;;  %4042 = vmatprep.subr.mxu0 %v5175_v3  ;;  %v5190_v31 = vand.u32 4294901760, %v5173_v62  ;;  %v2613_v40 = vsub.f32 %v5170_v21, %v5214_v14  ;;  %v5254_v26 = vsub.f32 %v2408_v8, %v5202_v38 }
 0x31c   : > { %4043 = vmatpush3.msra.mxu0 %v5175_v3  ;;  %v5257_v19 = vsub.f32 %v2378_v17, %v5219_v35  ;;  %v2524_v57 = vand.u32 4294901760, %v5223_v45  ;;  %v2417_v58 = vsel %vm2394_vm3, %v2393_v41, 0  ;;  %v2607_v29 = vand.u32 4294901760, %v2606_v42 }
 0x31d   : > { %4044 = vmatprep.subr.mxu0 %v5139_v4  ;;  %v2592_v44 = vsub.f32 %v5173_v62, %v5190_v31  ;;  %v5211_v51 = vand.u32 4294901760, %v5186_v11  ;;  %v2620_v46 = vsub.f32 %v5183_v10, %v5233_v47  ;;  %v5266_v54 = vsub.f32 %v2411_v36, %v5225_v48 }
 0x31e   : > { %4045 = vmatpush3.msra.mxu0 %v5139_v4  ;;  %v5268_v52 = vand.u32 4294901760, %v2414_v28  ;;  %v2506_v61 = vand.u32 4294901760, %v2505_v33  ;;  %v2515_v63 = vsub.f32 %v5200_v5, %v2514_v34  ;;  %v5275_v60 = vand.u32 4294901760, %v5239_v43 }
 0x31f   : > { %4046 = vmatprep.subr.mxu0 %v5144_v16  ;;  %v2593_v49 = vand.u32 4294901760, %v2592_v44  ;;  %v2599_v39 = vsub.f32 %v5186_v11, %v5211_v51  ;;  %v2614_v50 = vand.u32 4294901760, %v2613_v40  ;;  %v2627_v7 = vsub.f32 %v5205_v20, %v5251_v30 }
 0x320   : > { %4047 = vmatpush3.msra.mxu0 %v5144_v16  ;;  %v2534_v18 = vand.u32 4294901760, %v5254_v26  ;;  %v5281_v59 = vand.u32 4294901760, %v2417_v58  ;;  %v2525_v0 = vsub.f32 %v5223_v45, %v2524_v57  ;;  %v5288_v53 = vand.u32 4294901760, %v5257_v19 }
 0x321   : > { %4048 = vmatprep.subr.mxu0 %v5151_v2  ;;  %4068 = vmatprep.subr.mxu1 %v2593_v49  ;;  %v2600_v27 = vand.u32 4294901760, %v2599_v39  ;;  %v2621_v9 = vand.u32 4294901760, %v2620_v46  ;;  %v2544_v13 = vand.u32 4294901760, %v5266_v54  ;;  %v5293_v8 = vsub.f32 %v2414_v28, %v5268_v52 }
 0x322   : > { %4049 = vmatpush3.msra.mxu0 %v5151_v2  ;;  %4069 = vmatpush3.msra.mxu1 %v2593_v49  ;;  %v2516_v17 = vand.u32 4294901760, %v2515_v63  ;;  %v2634_v36 = vsub.f32 %v5239_v43, %v5275_v60  ;;  %v2628_v44 = vand.u32 4294901760, %v2627_v7  ;;  %v2535_v22 = vsub.f32 %v5254_v26, %v2534_v18 }
 0x323   : > { %4050 = vmatprep.subr.mxu0 %v5167_v12  ;;  %4070 = vmatprep.subr.mxu1 %v2600_v27  ;;  %v5302_v49 = vsub.f32 %v2417_v58, %v5281_v59  ;;  %v2526_v39 = vand.u32 4294901760, %v2525_v0  ;;  %v2641_v42 = vsub.f32 %v5257_v19, %v5288_v53  ;;  %v2545_v41 = vsub.f32 %v5266_v54, %v2544_v13 }
 0x324   : > { %4051 = vmatpush3.msra.mxu0 %v5167_v12  ;;  %4071 = vmatpush3.msra.mxu1 %v2600_v27  ;;  %v2554_v33 = vand.u32 4294901760, %v5293_v8  ;;  %v2635_v28 = vand.u32 4294901760, %v2634_v36  ;;  %v2536_v27 = vand.u32 4294901760, %v2535_v22 }
 0x325   : > { %4052 = vmatprep.subr.mxu0 %v5195_v25  ;;  %4072 = vmatprep.subr.mxu1 %v2607_v29  ;;  %v2564_v40 = vand.u32 4294901760, %v5302_v49  ;;  %v2546_v58 = vand.u32 4294901760, %v2545_v41 }
 0x326   : > { %4053 = vmatpush3.msra.mxu0 %v5195_v25  ;;  %4073 = vmatpush3.msra.mxu1 %v2607_v29  ;;  %v2555_v29 = vsub.f32 %v5293_v8, %v2554_v33 }
 0x327   : > { %4054 = vmatprep.subr.mxu0 %v5219_v35  ;;  %4074 = vmatprep.subr.mxu1 %v2614_v50 }
 0x328   : > { %4055 = vmatpush3.msra.mxu0 %v5219_v35  ;;  %4075 = vmatpush3.msra.mxu1 %v2614_v50  ;;  %v2556_v46 = vand.u32 4294901760, %v2555_v29 }
 0x329   : > { %4057 = vmatmul.mubr.f32.vlgmr.msra.gmra.mxu0 %v2506_v61  ;;  %4076 = vmatprep.subr.mxu1 %v2621_v9 }
 0x32a   : > { %4096 = vmatprep.subr.mxu0 %v5173_v62  ;;  %4077 = vmatpush3.msra.mxu1 %v2621_v9 }
 0x32b   : > { %4097 = vmatpush3.msra.mxu0 %v5173_v62  ;;  %4078 = vmatprep.subr.mxu1 %v2628_v44  ;;  %v2642_v62 = vand.u32 4294901760, %v2641_v42 }
 0x32c   : > { %4098 = vmatprep.subr.mxu0 %v5186_v11  ;;  %4059 = vmatprep.mubr.f32.mxu0 %v2516_v17 }
 0x32d   : > { %4079 = vmatpush3.msra.mxu1 %v2628_v44  ;;  %4099 = vmatpush3.msra.mxu0 %v5186_v11  ;;  %v2565_v11 = vsub.f32 %v5302_v49, %v2564_v40 }
 0x32e   : > { %4060 = vmatmul.mubr.f32.gmra.mxu0 %v2526_v39  ;;  %4080 = vmatprep.subr.mxu1 %v2635_v28 }
 0x32f   : > { %4100 = vmatprep.subr.mxu0 %v5154_v6  ;;  %4081 = vmatpush3.msra.mxu1 %v2635_v28 }
 0x330   : > { %4101 = vmatpush3.msra.mxu0 %v5154_v6  ;;  %4082 = vmatprep.subr.mxu1 %v2642_v62  ;;  %v2566_v6 = vand.u32 4294901760, %v2565_v11 }
 0x331   : > { %4102 = vmatprep.subr.mxu0 %v5170_v21  ;;  %4062 = vmatprep.mubr.f32.mxu0 %v2536_v27 }
 0x332   : > { %4083 = vmatpush3.msra.mxu1 %v2642_v62  ;;  %4103 = vmatpush3.msra.mxu0 %v5170_v21  ;;  %v5639_v21 = vand.u32 4294901760, %v5099_v55 }
 0x333   : > { %4063 = vmatmul.mubr.f32.gmra.mxu0 %v2546_v58  ;;  %4085 = vmatmul.mubr.f32.vlgmr.msra.gmra.mxu1 %v5141_v23 }
 0x334   : > { %4104 = vmatprep.subr.mxu0 %v5183_v10  ;;  %4124 = vmatprep.subr.mxu1 %v5156_v24 }
 0x335   : > { %4105 = vmatpush3.msra.mxu0 %v5183_v10  ;;  %4125 = vmatpush3.msra.mxu1 %v5156_v24 }
 0x336   : > { %4106 = vmatprep.subr.mxu0 %v5205_v20  ;;  %4126 = vmatprep.subr.mxu1 %v5175_v3 }
 0x337   : > { %4065 = vmatprep.mubr.f32.mxu0 %v2556_v46  ;;  %4087 = vmatprep.mubr.f32.mxu1 %v5164_v1 }
 0x338   : > { %4107 = vmatpush3.msra.mxu0 %v5205_v20  ;;  %4127 = vmatpush3.msra.mxu1 %v5175_v3 }
 0x339   : > { %4066 = vmatmul.mubr.f32.gmra.mxu0 %v2566_v6  ;;  %4088 = vmatmul.mubr.f32.gmra.mxu1 %v5179_v15 }
 0x33a   : > { %4108 = vmatprep.subr.mxu0 %v5239_v43  ;;  %4128 = vmatprep.subr.mxu1 %v5139_v4 }
 0x33b   : > { %4109 = vmatpush3.msra.mxu0 %v5239_v43  ;;  %4129 = vmatpush3.msra.mxu1 %v5139_v4 }
 0x33c   : > { %4110 = vmatprep.subr.mxu0 %v5257_v19  ;;  %4130 = vmatprep.subr.mxu1 %v5144_v16 }
 0x33d   : > { %4090 = vmatprep.mubr.f32.mxu1 %v5202_v38  ;;  %4111 = vmatpush3.msra.mxu0 %v5257_v19 }
 0x33e   : > { %4112 = vmatprep.mubr.f32.mxu0 %v5099_v55  ;;  %4131 = vmatpush3.msra.mxu1 %v5144_v16  ;;  %v5640_v55 = vld [vmem:[#allocation6_spill] sm:$0xff] }
 0x33f   : > { %4091 = vmatmul.mubr.f32.gmra.mxu1 %v5225_v48  ;;  %4113 = vmatmul.mubr.f32.vlgmr.msra.gmra.mxu0 %v5162_v56 }
 0x340   : > { %4132 = vmatprep.subr.mxu1 %v5151_v2  ;;  %4152 = vmatprep.subr.mxu0 %v5190_v31 }
 0x341   : > { %4133 = vmatpush3.msra.mxu1 %v5151_v2  ;;  %4153 = vmatpush3.msra.mxu0 %v5190_v31 }
 0x342   : > { %4134 = vmatprep.subr.mxu1 %v5167_v12  ;;  %4154 = vmatprep.subr.mxu0 %v5211_v51 }
 0x343   : > { %4093 = vmatprep.mubr.f32.mxu1 %v5268_v52  ;;  %4115 = vmatprep.mubr.f32.mxu0 %v5200_v5 }
 0x344   : > { %4135 = vmatpush3.msra.mxu1 %v5167_v12  ;;  %4155 = vmatpush3.msra.mxu0 %v5211_v51 }
 0x345   : > { %4094 = vmatmul.mubr.f32.gmra.mxu1 %v5281_v59  ;;  %4116 = vmatmul.mubr.f32.gmra.mxu0 %v5223_v45 }
 0x346   : > { %4136 = vmatprep.subr.mxu1 %v5195_v25  ;;  %4156 = vmatprep.subr.mxu0 %v5193_v37 }
 0x347   : > { %4137 = vmatpush3.msra.mxu1 %v5195_v25  ;;  %4157 = vmatpush3.msra.mxu0 %v5193_v37 }
 0x348   : > { %4138 = vmatprep.subr.mxu1 %v5219_v35  ;;  %4158 = vmatprep.subr.mxu0 %v5214_v14 }
 0x349   : > { %4118 = vmatprep.mubr.f32.mxu0 %v5254_v26  ;;  %4139 = vmatpush3.msra.mxu1 %v5219_v35 }
 0x34a   : > { %4140 = vmatprep.mubr.f32.mxu1 %v5639_v21  ;;  %4159 = vmatpush3.msra.mxu0 %v5214_v14 }
 0x34b   : > { %4119 = vmatmul.mubr.f32.gmra.mxu0 %v5266_v54  ;;  %4141 = vmatmul.mubr.f32.vlgmr.msra.gmra.mxu1 %v2504_v32  ;;  %v3257_v54 = vlaneseq }
 0x34c   : > { %4160 = vmatprep.subr.mxu0 %v5233_v47  ;;  %4180 = vmatprep.subr.mxu1 %v5156_v24 }
 0x34d   : > { %4161 = vmatpush3.msra.mxu0 %v5233_v47  ;;  %4181 = vmatpush3.msra.mxu1 %v5156_v24 }
 0x34e   : > { %4162 = vmatprep.subr.mxu0 %v5251_v30  ;;  %4182 = vmatprep.subr.mxu1 %v5175_v3 }
 0x34f   : > { %4121 = vmatprep.mubr.f32.mxu0 %v5293_v8  ;;  %4143 = vmatprep.mubr.f32.mxu1 %v2514_v34 }
 0x350   : > { %4163 = vmatpush3.msra.mxu0 %v5251_v30  ;;  %4183 = vmatpush3.msra.mxu1 %v5175_v3 }
 0x351   : > { %4122 = vmatmul.mubr.f32.gmra.mxu0 %v5302_v49  ;;  %4144 = vmatmul.mubr.f32.gmra.mxu1 %v2524_v57 }
 0x352   : > { %4164 = vmatprep.subr.mxu0 %v5275_v60  ;;  %4184 = vmatprep.subr.mxu1 %v5139_v4 }
 0x353   : > { %4165 = vmatpush3.msra.mxu0 %v5275_v60  ;;  %4185 = vmatpush3.msra.mxu1 %v5139_v4 }
 0x354   : > { %4166 = vmatprep.subr.mxu0 %v5288_v53  ;;  %4186 = vmatprep.subr.mxu1 %v5144_v16 }
 0x355   : > { %4146 = vmatprep.mubr.f32.mxu1 %v2534_v18  ;;  %4167 = vmatpush3.msra.mxu0 %v5288_v53 }
 0x356   : > { %4168 = vmatprep.mubr.f32.mxu0 %v5640_v55  ;;  %4187 = vmatpush3.msra.mxu1 %v5144_v16 }
 0x357   : > { %4147 = vmatmul.mubr.f32.gmra.mxu1 %v2544_v13  ;;  %4169 = vmatmul.mubr.f32.vlgmr.msra.gmra.mxu0 %v5141_v23 }
 0x358   : > { %4188 = vmatprep.subr.mxu1 %v5151_v2  ;;  %4149 = vmatprep.mubr.f32.mxu1 %v2554_v33 }
 0x359   : > { %4189 = vmatpush3.msra.mxu1 %v5151_v2  ;;  %4171 = vmatprep.mubr.f32.mxu0 %v5164_v1 }
 0x35a   : > { %4190 = vmatprep.subr.mxu1 %v5167_v12 }
 0x35b   : > { %4191 = vmatpush3.msra.mxu1 %v5167_v12  ;;  %4172 = vmatmul.mubr.f32.gmra.mxu0 %v5179_v15 }
 0x35c   : > { %4150 = vmatmul.mubr.f32.gmra.mxu1 %v2564_v40  ;;  %4192 = vmatprep.subr.mxu1 %v5195_v25  ;;  %v3281_v40 = vld [vmem:[#allocation4 + $0x20] sm:$0xff] }
 0x35d   : > { %4193 = vmatpush3.msra.mxu1 %v5195_v25  ;;  %4174 = vmatprep.mubr.f32.mxu0 %v5202_v38 }
 0x35e   : > { %4194 = vmatprep.subr.mxu1 %v5219_v35  ;;  %4196 = vmatprep.mubr.f32.mxu1 %v5640_v55 }
 0x35f   : > { %4195 = vmatpush3.msra.mxu1 %v5219_v35  ;;  %4175 = vmatmul.mubr.f32.gmra.mxu0 %v5225_v48 }
 0x360   : > { %4197 = vmatmul.mubr.f32.vlgmr.msra.gmra.mxu1 %v5141_v23  ;;  %4177 = vmatprep.mubr.f32.mxu0 %v5268_v52 }
 0x361   : > { %4199 = vmatprep.mubr.f32.mxu1 %v5164_v1 }
 0x363   : > { %4178 = vmatmul.mubr.f32.gmra.mxu0 %v5281_v59 }
 0x364   : > { %4200 = vmatmul.mubr.f32.gmra.mxu1 %v5179_v15 }
 0x365   : > { %4202 = vmatprep.mubr.f32.mxu1 %v5202_v38 }
 0x368   : > { %4203 = vmatmul.mubr.f32.gmra.mxu1 %v5225_v48 }
 0x369   : > { %4205 = vmatprep.mubr.f32.mxu1 %v5268_v52 }
 0x36c   : > { %4206 = vmatmul.mubr.f32.gmra.mxu1 %v5281_v59  ;;  %v5430_v59 = vand.u32 127, %v3257_v54 }
 0x36e   : > { %vm3261_vm4 = vcmp.lt.s32.totalorder %v5430_v59, 16 }
 0x3e9   : > { %v4058_v4 = vpop.f32.mrf.mxu0 }
 0x3eb   : > { %v2498_v16 = vpop.f32.mrf.mxu0 }
 0x3ee   : > { %v4061_v2 = vpop.f32.mrf.mxu0 }
 0x3f0   : > { %v2518_v23 = vpop.f32.mrf.mxu0 }
 0x3f3   : > { %v4064_v24 = vpop.f32.mrf.mxu0  ;;  %v4086_v56 = vpop.f32.mrf.mxu1 }
 0x3f4   : > { %v2686_v52 = vadd.f32 %v4086_v56, %v4058_v4  ;;  %v3305_v4 = vld [vmem:[#allocation5] sm:$0xff] }
 0x3f5   : > { %v2538_v12 = vpop.f32.mrf.mxu0  ;;  %v2679_v1 = vpop.f32.mrf.mxu1 }
 0x3f6   : > { %v2680_v60 = vadd.f32 %v2679_v1, %v2498_v16 }
 0x3f9   : > { %v4067_v3 = vpop.f32.mrf.mxu0  ;;  %v4089_v10 = vpop.f32.mrf.mxu1 }
 0x3fa   : > { %v2698_v0 = vadd.f32 %v4089_v10, %v4061_v2  ;;  %v3280_v2 = vld [vmem:[#allocation4 + $0x28] sm:$0xff] }
 0x3fb   : > { %v2558_v31 = vpop.f32.mrf.mxu0  ;;  %v2691_v15 = vpop.f32.mrf.mxu1 }
 0x3fc   : > { %v2692_v17 = vadd.f32 %v2691_v15, %v2518_v23 }
 0x3ff   : > { %v4092_v37 = vpop.f32.mrf.mxu1  ;;  %v4114_v25 = vpop.f32.mrf.mxu0 }
 0x400   : > { %v2817_v50 = vadd.f32 %v4114_v25, %v2686_v52  ;;  %v2710_v39 = vadd.f32 %v4092_v37, %v4064_v24 }
 0x401   : > { %v2703_v32 = vpop.f32.mrf.mxu1  ;;  %v2809_v5 = vpop.f32.mrf.mxu0 }
 0x402   : > { %v2810_v53 = vadd.f32 %v2809_v5, %v2680_v60  ;;  %v2704_v62 = vadd.f32 %v2703_v32, %v2538_v12  ;;  %v3283_v32 = vld [vmem:[#allocation4 + $0x10] sm:$0xff] }
 0x405   : > { %v4095_v38 = vpop.f32.mrf.mxu1  ;;  %v4117_v20 = vpop.f32.mrf.mxu0 }
 0x406   : > { %v2831_v36 = vadd.f32 %v4117_v20, %v2698_v0  ;;  %v2722_v58 = vadd.f32 %v4095_v38, %v4067_v3  ;;  %v3304_v3 = vld [vmem:[#allocation5 + $0x8] sm:$0xff]  ;;  %v3285_v0 = vld [vmem:[#allocation4 + $0x30] sm:$0xff] }
 0x407   : > { %v2715_v51 = vpop.f32.mrf.mxu1  ;;  %v2823_v14 = vpop.f32.mrf.mxu0 }
 0x408   : > { %v2824_v41 = vadd.f32 %v2823_v14, %v2692_v17  ;;  %v2716_v23 = vadd.f32 %v2715_v51, %v2558_v31 }
 0x40b   : > { %v4120_v35 = vpop.f32.mrf.mxu0  ;;  %v4142_v45 = vpop.f32.mrf.mxu1 }
 0x40c   : > { %v2948_v9 = vadd.f32 %v4142_v45, %v2817_v50  ;;  %v2845_v29 = vadd.f32 %v4120_v35, %v2710_v39  ;;  %v3306_v50 = vld [vmem:[#allocation5 + $0x10] sm:$0xff]  ;;  %v3284_v39 = vld [vmem:[#allocation4 + $0x8] sm:$0xff] }
 0x40d   : > { %v2837_v48 = vpop.f32.mrf.mxu0  ;;  %v2939_v47 = vpop.f32.mrf.mxu1 }
 0x40e   : > { %v2940_v44 = vadd.f32 %v2939_v47, %v2810_v53  ;;  %v2838_v24 = vadd.f32 %v2837_v48, %v2704_v62  ;;  %v3307_v47 = vld [vmem:[#allocation5 + $0x20] sm:$0xff]  ;;  %v3308_v62 = vld [vmem:[#allocation5 + $0x30] sm:$0xff] }
 0x411   : > { %v4123_v43 = vpop.f32.mrf.mxu0  ;;  %v4145_v34 = vpop.f32.mrf.mxu1 }
 0x412   : > { %v2964_v33 = vadd.f32 %v4145_v34, %v2831_v36  ;;  %v2859_v5 = vadd.f32 %v4123_v43, %v2722_v58 }
 0x413   : > { %v5428_v30 = vpop.f32.mrf.mxu0  ;;  %v2955_v26 = vpop.f32.mrf.mxu1 }
 0x414   : > { %v2956_v6 = vadd.f32 %v2955_v26, %v2824_v41  ;;  %v3282_v26 = vld [vmem:[#allocation4 + $0x38] sm:$0xff] }
 0x417   : > { %v4148_v19 = vpop.f32.mrf.mxu1  ;;  %v4170_v57 = vpop.f32.mrf.mxu0 }
 0x418   : > { %v3097_v22 = vadd.f32 %v4170_v57, %v2948_v9  ;;  %v2980_v15 = vadd.f32 %v4148_v19, %v2845_v29  ;;  %v2852_v19 = vadd.f32 %v5428_v30, %v2716_v23 }
 0x419   : > { %v2971_v61 = vpop.f32.mrf.mxu1  ;;  %v3090_v63 = vpop.f32.mrf.mxu0 }
 0x41a   : > { %v3091_v28 = vadd.f32 %v3090_v63, %v2940_v44  ;;  %v2972_v31 = vadd.f32 %v2971_v61, %v2838_v24 }
 0x41b   : > { %v4173_v7 = vpop.f32.mrf.mxu0 }
 0x41c   : > { %v4151_v18 = vpop.f32.mrf.mxu1  ;;  %v3109_v21 = vadd.f32 %v4173_v7, %v2964_v33 }
 0x41d   : > { %v3102_v13 = vpop.f32.mrf.mxu0  ;;  %v2996_v63 = vadd.f32 %v4151_v18, %v2859_v5 }
 0x41e   : > { %v5432_v8 = vpop.f32.mrf.mxu1  ;;  %v3103_v37 = vadd.f32 %v3102_v13, %v2956_v6 }
 0x41f   : > { %v4176_v49 = vpop.f32.mrf.mxu0  ;;  %v2988_v36 = vadd.f32 %v5432_v8, %v2852_v19  ;;  %v3287_v8 = vld [vmem:[#allocation4] sm:$0xff] }
 0x420   : > { %v4198_v42 = vpop.f32.mrf.mxu1  ;;  %v3121_v51 = vadd.f32 %v4176_v49, %v2980_v15 }
 0x421   : > { %v3218_v27 = vadd.f32 %v4198_v42, %v3097_v22  ;;  %v3114_v11 = vpop.f32.mrf.mxu0  ;;  %v3309_v22 = vld [vmem:[#allocation5 + $0x18] sm:$0xff] }
 0x422   : > { %v3211_v46 = vpop.f32.mrf.mxu1  ;;  %v3115_v60 = vadd.f32 %v3114_v11, %v2972_v31 }
 0x423   : > { %v3265_v55 = vsel %vm3261_vm4, %v3218_v27, 0.0  ;;  %v3212_v16 = vadd.f32 %v3211_v46, %v3091_v28  ;;  %v4179_v35 = vpop.f32.mrf.mxu0 }
 0x424   : > { %v3273_v56 = vmul.f32 %v3265_v55, %v3265_v55  ;;  %v3289_v1 = vadd.f32 %v3281_v40, %v3265_v55  ;;  %v4201_v10 = vpop.f32.mrf.mxu1  ;;  %v3133_v44 = vadd.f32 %v4179_v35, %v2996_v63  ;;  %v3311_v55 = vld [vmem:[#allocation5 + $0x38] sm:$0xff] }
 0x425   : > { %v3264_v12 = vsel %vm3261_vm4, %v3212_v16, 0.0  ;;  %v3230_v25 = vadd.f32 %v4201_v10, %v3109_v21  ;;  %v3126_v9 = vpop.f32.mrf.mxu0  ;;  %v3286_v16 = vld [vmem:[#allocation4 + $0x18] sm:$0xff] }
 0x426   : > { %3297 = vst [vmem:[#allocation4 + $0x20] sm:$0xff] %v3289_v1  ;;  %v3313_v38 = vadd.f32 %v3305_v4, %v3273_v56  ;;  %v3272_v20 = vmul.f32 %v3264_v12, %v3264_v12  ;;  %v3288_v14 = vadd.f32 %v3280_v2, %v3264_v12  ;;  %v3223_v45 = vpop.f32.mrf.mxu1  ;;  %v3127_v27 = vadd.f32 %v3126_v9, %v2988_v36  ;;  %v3310_v1 = vld [vmem:[#allocation5 + $0x28] sm:$0xff] }
 0x427   : > { %v3267_v48 = vsel %vm3261_vm4, %v3230_v25, 0.0  ;;  %v3224_v34 = vadd.f32 %v3223_v45, %v3103_v37 }
 0x428   : > { %3321 = vst [vmem:[#allocation5] sm:$0xff] %v3313_v38  ;;  %3296 = vst [vmem:[#allocation4 + $0x28] sm:$0xff] %v3288_v14  ;;  %v3312_v57 = vadd.f32 %v3304_v3, %v3272_v20  ;;  %v3275_v43 = vmul.f32 %v3267_v48, %v3267_v48  ;;  %v3291_v54 = vadd.f32 %v3283_v32, %v3267_v48  ;;  %v4204_v52 = vpop.f32.mrf.mxu1 }
 0x429   : > { %v3266_v61 = vsel %vm3261_vm4, %v3224_v34, 0.0  ;;  %v3242_v7 = vadd.f32 %v4204_v52, %v3121_v51 }
 0x42a   : > { %3320 = vst [vmem:[#allocation5 + $0x8] sm:$0xff] %v3312_v57  ;;  %3299 = vst [vmem:[#allocation4 + $0x10] sm:$0xff] %v3291_v54  ;;  %v3315_v53 = vadd.f32 %v3307_v47, %v3275_v43  ;;  %v3274_v13 = vmul.f32 %v3266_v61, %v3266_v61  ;;  %v3290_v30 = vadd.f32 %v3282_v26, %v3266_v61  ;;  %v3235_v17 = vpop.f32.mrf.mxu1 }
 0x42b   : > { %v3269_v18 = vsel %vm3261_vm4, %v3242_v7, 0.0  ;;  %v3236_v49 = vadd.f32 %v3235_v17, %v3115_v60 }
 0x42c   : > { %3323 = vst [vmem:[#allocation5 + $0x20] sm:$0xff] %v3315_v53  ;;  %3298 = vst [vmem:[#allocation4 + $0x38] sm:$0xff] %v3290_v30  ;;  %v3314_v42 = vadd.f32 %v3306_v50, %v3274_v13  ;;  %v3277_v41 = vmul.f32 %v3269_v18, %v3269_v18  ;;  %v3293_v33 = vadd.f32 %v3285_v0, %v3269_v18  ;;  %v4207_v28 = vpop.f32.mrf.mxu1 }
 0x42d   : > { %v3268_v40 = vsel %vm3261_vm4, %v3236_v49, 0.0  ;;  %v3254_v58 = vadd.f32 %v4207_v28, %v3133_v44 }
 0x42e   : > { %3322 = vst [vmem:[#allocation5 + $0x10] sm:$0xff] %v3314_v42  ;;  %3301 = vst [vmem:[#allocation4 + $0x30] sm:$0xff] %v3293_v33  ;;  %v3317_v29 = vadd.f32 %v3309_v22, %v3277_v41  ;;  %v3276_v11 = vmul.f32 %v3268_v40, %v3268_v40  ;;  %v3292_v46 = vadd.f32 %v3284_v39, %v3268_v40  ;;  %v3247_v6 = vpop.f32.mrf.mxu1 }
 0x42f   : > { %v3271_v21 = vsel %vm3261_vm4, %v3254_v58, 0.0  ;;  %v3248_v4 = vadd.f32 %v3247_v6, %v3127_v27 }
 0x430   : > { %3325 = vst [vmem:[#allocation5 + $0x18] sm:$0xff] %v3317_v29  ;;  %3300 = vst [vmem:[#allocation4 + $0x8] sm:$0xff] %v3292_v46  ;;  %v3316_v2 = vadd.f32 %v3308_v62, %v3276_v11  ;;  %v3279_v23 = vmul.f32 %v3271_v21, %v3271_v21  ;;  %v3295_v24 = vadd.f32 %v3287_v8, %v3271_v21 }
 0x431   : > { %v3270_v56 = vsel %vm3261_vm4, %v3248_v4, 0.0 }
 0x432   : > { %3324 = vst [vmem:[#allocation5 + $0x30] sm:$0xff] %v3316_v2  ;;  %3303 = vst [vmem:[#allocation4] sm:$0xff] %v3295_v24  ;;  %v3319_v10 = vadd.f32 %v3311_v55, %v3279_v23  ;;  %v3278_v15 = vmul.f32 %v3270_v56, %v3270_v56  ;;  %v3294_v37 = vadd.f32 %v3286_v16, %v3270_v56 }
 0x434   : > { %3327 = vst [vmem:[#allocation5 + $0x38] sm:$0xff] %v3319_v10  ;;  %3302 = vst [vmem:[#allocation4 + $0x18] sm:$0xff] %v3294_v37  ;;  %v3318_v12 = vadd.f32 %v3310_v1, %v3278_v15 }
 0x436   : > { %3326 = vst [vmem:[#allocation5 + $0x28] sm:$0xff] %v3318_v12 }
 0x437 PF: > { %p3328_p13 = pnand %p380_p9, %p340_p6 }
 0x439   : > { %3331 = sbr.rel (%p3328_p13) target bundleno = 1283 (0x503), region = 68 }
 0x43e   : > { %v3334_v3 = vld [vmem:[#allocation4 + $0x38] sm:$0xff]  ;;  %v3332_v59 = vld [vmem:[#allocation4 + $0x28] sm:$0xff]  ;;  %v3335_v25 = vld [vmem:[#allocation4 + $0x10] sm:$0xff]  ;;  %vm3452_vm5 = vcmask 7168  }
 0x43f   : > { %3344 = vadd.xlane.f32.xlu1 %v3334_v3  ;;  %3340 = vadd.xlane.f32.xlu0 %v3332_v59  ;;  %v3333_v32 = vld [vmem:[#allocation4 + $0x20] sm:$0xff]  ;;  %v3337_v5 = vld [vmem:[#allocation4 + $0x30] sm:$0xff]  ;;  %v3336_v38 = vld [vmem:[#allocation4 + $0x8] sm:$0xff] }
 0x440   : > { %v3339_v20 = vld [vmem:[#allocation4] sm:$0xff]  ;;  %v3338_v14 = vld [vmem:[#allocation4 + $0x18] sm:$0xff]  ;;  %v3356_v45 = vld [vmem:[#allocation5 + $0x8] sm:$0xff] }
 0x441   : > { %v3357_v35 = vld [vmem:[#allocation5] sm:$0xff]  ;;  %v3358_v51 = vld [vmem:[#allocation5 + $0x10] sm:$0xff]  ;;  %v3361_v48 = vld [vmem:[#allocation5 + $0x18] sm:$0xff] }
 0x442   : > { %v3359_v31 = vld [vmem:[#allocation5 + $0x20] sm:$0xff]  ;;  %v3360_v47 = vld [vmem:[#allocation5 + $0x30] sm:$0xff]  ;;  %v3363_v34 = vld [vmem:[#allocation5 + $0x38] sm:$0xff] }
 0x443   : > { %3346 = vadd.xlane.f32.xlu1 %v3335_v25  ;;  %3342 = vadd.xlane.f32.xlu0 %v3333_v32  ;;  %v3362_v26 = vld [vmem:[#allocation5 + $0x28] sm:$0xff] }
 0x447   : > { %3350 = vadd.xlane.f32.xlu1 %v3337_v5  ;;  %3348 = vadd.xlane.f32.xlu0 %v3336_v38 }
 0x44b   : > { %3354 = vadd.xlane.f32.xlu1 %v3339_v20  ;;  %3352 = vadd.xlane.f32.xlu0 %v3338_v14 }
 0x44f   : > { %3366 = vadd.xlane.f32.xlu1 %v3357_v35  ;;  %3364 = vadd.xlane.f32.xlu0 %v3356_v45 }
 0x453   : > { %3370 = vadd.xlane.f32.xlu1 %v3359_v31  ;;  %3368 = vadd.xlane.f32.xlu0 %v3358_v51 }
 0x457   : > { %3374 = vadd.xlane.f32.xlu1 %v3361_v48  ;;  %3372 = vadd.xlane.f32.xlu0 %v3360_v47 }
 0x45b   : > { %3378 = vadd.xlane.f32.xlu1 %v3363_v34  ;;  %3376 = vadd.xlane.f32.xlu0 %v3362_v26 }
 0x4c8   : > { %v3345_v19 = vpop.xlane.xlu1 %3344  ;;  %v3341_v57 = vpop.xlane.xlu0 %3340 }
 0x4c9   : > { %v5457_v50 = vmul.f32 0.03125, %v3341_v57  ;;  %v5461_v0 = vmul.f32 0.03125, %v3345_v19  ;;  %v3421_v19 = vld [vmem:[%s5629_s5 + $0x8] sm:$0xff]  ;;  %v3420_v57 = vld [vmem:[%s5629_s5] sm:$0xff] }
 0x4cb   : > { %v3396_v30 = vmul.f32 %v5457_v50, %v5457_v50  ;;  %v3398_v49 = vmul.f32 %v5461_v0, %v5461_v0 }
 0x4cc   : > { %v3347_v43 = vpop.xlane.xlu1 %3346  ;;  %v3343_v54 = vpop.xlane.xlu0 %3342 }
 0x4cd   : > { %v5459_v7 = vmul.f32 0.03125, %v3343_v54  ;;  %v5463_v53 = vmul.f32 0.03125, %v3347_v43 }
 0x4cf   : > { %v3397_v17 = vmul.f32 %v5459_v7, %v5459_v7  ;;  %v3399_v39 = vmul.f32 %v5463_v53, %v5463_v53 }
 0x4d0   : > { %v3351_v52 = vpop.xlane.xlu1 %3350  ;;  %v3349_v63 = vpop.xlane.xlu0 %3348 }
 0x4d1   : > { %v5473_v42 = vmul.f32 0.03125, %v3351_v52  ;;  %v5475_v58 = vmul.f32 0.03125, %v3349_v63  ;;  %v3462_v63 = vld [vmem:[%s5630_s6 + $0x8] sm:$0xff] }
 0x4d3   : > { %v3401_v6 = vmul.f32 %v5473_v42, %v5473_v42  ;;  %v3400_v56 = vmul.f32 %v5475_v58, %v5475_v58 }
 0x4d4   : > { %v3355_v60 = vpop.xlane.xlu1 %3354  ;;  %v3353_v61 = vpop.xlane.xlu0 %3352 }
 0x4d5   : > { %v5479_v21 = vmul.f32 0.03125, %v3355_v60  ;;  %v5481_v55 = vmul.f32 0.03125, %v3353_v61  ;;  %v3423_v61 = vld [vmem:[%s5629_s5 + $0x18] sm:$0xff] }
 0x4d7   : > { %v3403_v12 = vmul.f32 %v5479_v21, %v5479_v21  ;;  %v3402_v3 = vmul.f32 %v5481_v55, %v5481_v55 }
 0x4d8   : > { %v3367_v9 = vpop.xlane.xlu1 %3366  ;;  %v3365_v13 = vpop.xlane.xlu0 %3364 }
 0x4d9   : > { %v3389_v36 = vmul.f32 0.03125, %v3367_v9  ;;  %v3388_v44 = vmul.f32 0.03125, %v3365_v13  ;;  %v3461_v13 = vld [vmem:[%s5630_s6] sm:$0xff] }
 0x4db   : > { %v3405_v18 = vsub.f32 %v3389_v36, %v3397_v17  ;;  %v3404_v22 = vsub.f32 %v3388_v44, %v3396_v30  ;;  %v3422_v30 = vld [vmem:[%s5629_s5 + $0x10] sm:$0xff] }
 0x4dc   : > { %v3371_v41 = vpop.xlane.xlu1 %3370  ;;  %v3369_v33 = vpop.xlane.xlu0 %3368 }
 0x4dd   : > { %v3413_v28 = vmax.f32 %v3405_v18, 0.0  ;;  %v3412_v27 = vmax.f32 %v3404_v22, 0.0  ;;  %v3391_v40 = vmul.f32 0.03125, %v3371_v41  ;;  %v3390_v62 = vmul.f32 0.03125, %v3369_v33  ;;  %v3425_v41 = vld [vmem:[%s5629_s5 + $0x28] sm:$0xff]  ;;  %v3463_v33 = vld [vmem:[%s5630_s6 + $0x10] sm:$0xff] }
 0x4df   : > { %v3429_v8 = vadd.f32 1e-05, %v3413_v28  ;;  %v3428_v29 = vadd.f32 1e-05, %v3412_v27  ;;  %v3407_v11 = vsub.f32 %v3391_v40, %v3399_v39  ;;  %v3406_v46 = vsub.f32 %v3390_v62, %v3398_v49  ;;  %v3464_v49 = vld [vmem:[%s5630_s6 + $0x18] sm:$0xff]  ;;  %v3424_v28 = vld [vmem:[%s5629_s5 + $0x20] sm:$0xff] }
 0x4e0   : > { %v3375_v4 = vpop.xlane.xlu1 %3374  ;;  %v3373_v16 = vpop.xlane.xlu0 %3372 }
 0x4e1   : > { %4268 = vrsqrt.f32 %v3429_v8  ;;  %v3415_v2 = vmax.f32 %v3407_v11, 0.0  ;;  %v3414_v23 = vmax.f32 %v3406_v46, 0.0  ;;  %v3393_v24 = vmul.f32 0.03125, %v3375_v4  ;;  %v3466_v11 = vld [vmem:[%s5630_s6 + $0x28] sm:$0xff]  ;;  %v3465_v4 = vld [vmem:[%s5630_s6 + $0x20] sm:$0xff] }
 0x4e2   : > { %4270 = vrsqrt.f32 %v3428_v29  ;;  %v3392_v1 = vmul.f32 0.03125, %v3373_v16  ;;  %v3426_v16 = vld [vmem:[%s5629_s5 + $0x30] sm:$0xff] }
 0x4e3   : > { %v3431_v10 = vadd.f32 1e-05, %v3415_v2  ;;  %v3430_v15 = vadd.f32 1e-05, %v3414_v23  ;;  %v3409_v37 = vsub.f32 %v3393_v24, %v3401_v6  ;;  %v3427_v6 = vld [vmem:[%s5629_s5 + $0x38] sm:$0xff] }
 0x4e4   : > { %v3408_v59 = vsub.f32 %v3392_v1, %v3400_v56  ;;  %v3379_v25 = vpop.xlane.xlu1 %3378  ;;  %v3377_v32 = vpop.xlane.xlu0 %3376 }
 0x4e5   : > { %4272 = vrsqrt.f32 %v3431_v10  ;;  %v3417_v5 = vmax.f32 %v3409_v37, 0.0  ;;  %v3395_v38 = vmul.f32 0.03125, %v3379_v25  ;;  %v3394_v20 = vmul.f32 0.03125, %v3377_v32  ;;  %v3468_v10 = vld [vmem:[%s5630_s6 + $0x38] sm:$0xff]  ;;  %v3467_v37 = vld [vmem:[%s5630_s6 + $0x30] sm:$0xff] }
 0x4e6   : > { %4274 = vrsqrt.f32 %v3430_v15  ;;  %v3416_v14 = vmax.f32 %v3408_v59, 0.0 }
 0x4e7   : > { %v3433_v35 = vadd.f32 1e-05, %v3417_v5  ;;  %v3411_v45 = vsub.f32 %v3395_v38, %v3403_v12  ;;  %v3410_v31 = vsub.f32 %v3394_v20, %v3402_v3 }
 0x4e8   : > { %v3432_v51 = vadd.f32 1e-05, %v3416_v14 }
 0x4e9   : > { %4276 = vrsqrt.f32 %v3433_v35  ;;  %v3419_v48 = vmax.f32 %v3411_v45, 0.0  ;;  %v3418_v47 = vmax.f32 %v3410_v31, 0.0 }
 0x4ea   : > { %4278 = vrsqrt.f32 %v3432_v51 }
 0x4eb   : > { %v3435_v34 = vadd.f32 1e-05, %v3419_v48  ;;  %v3434_v26 = vadd.f32 1e-05, %v3418_v47 }
 0x4ed   : > { %4280 = vrsqrt.f32 %v3435_v34 }
 0x4ee   : > { %v4269_v43 = vpop.eup %4268  ;;  %4282 = vrsqrt.f32 %v3434_v26 }
 0x4ef   : > { %v4271_v54 = vpop.eup %4270  ;;  %v3445_v52 = vmul.f32 %v4269_v43, %v3421_v19 }
 0x4f0   : > { %v3444_v60 = vmul.f32 %v4271_v54, %v3420_v57 }
 0x4f1   : > { %3454 = vst.msk [vmem:[%s5633_s9 + $0x8] sm:$0xff] %vm3452_vm5, %v3445_v52  ;;  %v3470_v9 = vmul.f32 %v3445_v52, %v5459_v7 }
 0x4f2   : > { %v4273_v17 = vpop.eup %4272  ;;  %3453 = vst.msk [vmem:[%s5633_s9] sm:$0xff] %vm3452_vm5, %v3444_v60  ;;  %v3469_v36 = vmul.f32 %v3444_v60, %v5457_v50 }
 0x4f3   : > { %v4275_v44 = vpop.eup %4274  ;;  %v3478_v18 = vsub.f32 %v3462_v63, %v3470_v9  ;;  %v3447_v22 = vmul.f32 %v4273_v17, %v3423_v61 }
 0x4f4   : > { %v3477_v7 = vsub.f32 %v3461_v13, %v3469_v36  ;;  %v3446_v39 = vmul.f32 %v4275_v44, %v3422_v30 }
 0x4f5   : > { %3486 = vst.msk [vmem:[%s5634_s10 + $0x8] sm:$0xff] %vm3452_vm5, %v3478_v18  ;;  %3456 = vst.msk [vmem:[%s5633_s9 + $0x18] sm:$0xff] %vm3452_vm5, %v3447_v22  ;;  %v3472_v50 = vmul.f32 %v3447_v22, %v5463_v53 }
 0x4f6   : > { %v4277_v27 = vpop.eup %4276  ;;  %3485 = vst.msk [vmem:[%s5634_s10] sm:$0xff] %vm3452_vm5, %v3477_v7  ;;  %3455 = vst.msk [vmem:[%s5633_s9 + $0x10] sm:$0xff] %vm3452_vm5, %v3446_v39  ;;  %v3471_v53 = vmul.f32 %v3446_v39, %v5461_v0 }
 0x4f7   : > { %v4279_v40 = vpop.eup %4278  ;;  %v3480_v62 = vsub.f32 %v3464_v49, %v3472_v50  ;;  %v3449_v8 = vmul.f32 %v4277_v27, %v3425_v41 }
 0x4f8   : > { %v3479_v29 = vsub.f32 %v3463_v33, %v3471_v53  ;;  %v3448_v46 = vmul.f32 %v4279_v40, %v3424_v28 }
 0x4f9   : > { %3488 = vst.msk [vmem:[%s5634_s10 + $0x18] sm:$0xff] %vm3452_vm5, %v3480_v62  ;;  %3458 = vst.msk [vmem:[%s5633_s9 + $0x28] sm:$0xff] %vm3452_vm5, %v3449_v8  ;;  %v3474_v0 = vmul.f32 %v3449_v8, %v5473_v42 }
 0x4fa   : > { %v4281_v2 = vpop.eup %4280  ;;  %3487 = vst.msk [vmem:[%s5634_s10 + $0x10] sm:$0xff] %vm3452_vm5, %v3479_v29  ;;  %3457 = vst.msk [vmem:[%s5633_s9 + $0x20] sm:$0xff] %vm3452_vm5, %v3448_v46  ;;  %v3473_v42 = vmul.f32 %v3448_v46, %v5475_v58 }
 0x4fb   : > { %v4283_v23 = vpop.eup %4282  ;;  %v3482_v24 = vsub.f32 %v3466_v11, %v3474_v0  ;;  %v3451_v56 = vmul.f32 %v4281_v2, %v3427_v6 }
 0x4fc   : > { %v3481_v1 = vsub.f32 %v3465_v4, %v3473_v42  ;;  %v3450_v15 = vmul.f32 %v4283_v23, %v3426_v16 }
 0x4fd   : > { %3490 = vst.msk [vmem:[%s5634_s10 + $0x28] sm:$0xff] %vm3452_vm5, %v3482_v24  ;;  %3460 = vst.msk [vmem:[%s5633_s9 + $0x38] sm:$0xff] %vm3452_vm5, %v3451_v56  ;;  %v3476_v58 = vmul.f32 %v3451_v56, %v5479_v21 }
 0x4fe   : > { %3489 = vst.msk [vmem:[%s5634_s10 + $0x20] sm:$0xff] %vm3452_vm5, %v3481_v1  ;;  %3459 = vst.msk [vmem:[%s5633_s9 + $0x30] sm:$0xff] %vm3452_vm5, %v3450_v15  ;;  %v3475_v12 = vmul.f32 %v3450_v15, %v5481_v55 }
 0x4ff   : > { %v3484_v3 = vsub.f32 %v3468_v10, %v3476_v58 }
 0x500   : > { %v3483_v59 = vsub.f32 %v3467_v37, %v3475_v12 }
 0x501   : > { %3492 = vst.msk [vmem:[%s5634_s10 + $0x38] sm:$0xff] %vm3452_vm5, %v3484_v3 }
 0x502   : > { %3491 = vst.msk [vmem:[%s5634_s10 + $0x30] sm:$0xff] %vm3452_vm5, %v3483_v59 }
 0x503 PF: > { %s21_s17 = sadd.s32 1, %s4322_s17   ;;  %s5641_s13 = smov %s4314_s15 }
 0x504   : > { %p18_p0 = scmp.ge.s32.totalorder %s21_s17, 6   ;;  %s5642_s14 = smov %s4318_s16 }
 0x505   : > { %s5643_s15 = smov %s5646_s18  ;;  %s5644_s16 = smov %s5650_s19 }
 0x506   :  { %20 = sbr.rel (!%p18_p0) target bundleno = 3 (0x3), region = 117 }

</bundles_post_ra>
